<compile_context>
chip_gen: v5e
topology: v5e:2x2
jax: 0.10.0
libtpu: 0.0.40
codegen_flags: <defaults>
</compile_context>

<pallas_src>
import functools

import jax
import jax.numpy as jnp
from jax import lax
from jax.experimental import pallas as pl
from jax.experimental.pallas import tpu as pltpu


def _round_up(n, m):
    return ((n + m - 1) // m) * m


def _cdiv(a, b):
    return -(-a // b)


def _softmax_lastdim(z, valid_cols):
    """Numerically stable softmax along the last axis.

    Columns >= valid_cols (zero padding of the latent dim) are masked to -inf so
    they contribute exactly 0. Normalization is an exact f32 division so each
    row sums to 1 to f32 rounding (the approx EUP reciprocal is not accurate
    enough for the row-sum check).
    """
    ncols = z.shape[-1]
    if valid_cols < ncols:
        col = lax.broadcasted_iota(jnp.int32, z.shape, z.ndim - 1)
        z = jnp.where(col < valid_cols, z, -jnp.inf)
    m = jnp.max(z, axis=-1, keepdims=True)
    e = jnp.exp(z - m)
    return e / jnp.sum(e, axis=-1, keepdims=True)


def _mlp_kernel(x_ref,
                w1_ref, b1_ref,
                w2_ref, b2_ref,
                w3_ref, b3_ref,
                w4_ref, b4_ref,
                latent_ref, out_ref,
                *, latent_valid):
    # bf16 operands feed the MXU; accumulation and all VPU/EUP math stay f32.
    x = x_ref[...].astype(jnp.bfloat16)          # per-tile cast, no host pre-pass

    # fc1 + relu
    h = jnp.dot(x, w1_ref[...], preferred_element_type=jnp.float32) + b1_ref[...]
    h = jnp.maximum(h, 0.0)

    # fc2 + relu
    h = jnp.dot(h.astype(jnp.bfloat16), w2_ref[...],
                preferred_element_type=jnp.float32) + b2_ref[...]
    h = jnp.maximum(h, 0.0)

    # fc3 + softmax -> latent (mask any padded latent columns)
    z3 = jnp.dot(h.astype(jnp.bfloat16), w3_ref[...],
                 preferred_element_type=jnp.float32) + b3_ref[...]
    latent = _softmax_lastdim(z3, latent_valid)
    latent_ref[...] = latent.astype(latent_ref.dtype)

    # fc4 + softmax -> output (output head is unpadded -> no masking needed)
    z4 = jnp.dot(latent.astype(jnp.bfloat16), w4_ref[...],
                 preferred_element_type=jnp.float32) + b4_ref[...]
    out_ref[...] = _softmax_lastdim(z4, z4.shape[-1]).astype(out_ref.dtype)


def prepare_params(params, compute_dtype=jnp.bfloat16):
    """One-time pad + cast of the weights (call once, outside the hot path).

    Hidden/latent dims are zero-padded to multiples of 128 so intermediate
    activations are lane-dense. The input dim (Din) and the output head (O) are
    left unpadded: full-dim blocks are legal, and the unpadded O=18 head writes
    ~7x fewer bytes than a padded 128-wide slab. Weights are cast to bf16 for
    the MXU; biases stay f32.  Returns (prepared_arrays, latent_valid_cols).
    """
    (w1, b1), (w2, b2), (w3, b3), (w4, b4) = params
    din, hdim = w1.shape
    ldim = w3.shape[1]
    odim = w4.shape[1]
    h_p = _round_up(hdim, 128)
    l_p = _round_up(ldim, 128)

    def pad2(a, rows, cols, dtype):
        a = jnp.asarray(a)
        if a.ndim == 1:
            a = a.reshape(1, -1)
        buf = jnp.zeros((rows, cols), dtype)
        return buf.at[: a.shape[0], : a.shape[1]].set(a.astype(dtype))

    prepared = (
        pad2(w1, din, h_p, compute_dtype), pad2(b1, 1, h_p, jnp.float32),
        pad2(w2, h_p, h_p, compute_dtype), pad2(b2, 1, h_p, jnp.float32),
        pad2(w3, h_p, l_p, compute_dtype), pad2(b3, 1, l_p, jnp.float32),
        pad2(w4, l_p, odim, compute_dtype), pad2(b4, 1, odim, jnp.float32),
    )
    return prepared, int(ldim)


@functools.partial(jax.jit, static_argnames=("latent_valid", "block_b"))
def news_embedding_forward(x, prepared, *, latent_valid, block_b=512):
    """Full 4-layer MLP in one Pallas kernel, tiled over the batch axis."""
    w1p, b1p, w2p, b2p, w3p, b3p, w4p, b4p = prepared
    B, din = x.shape
    h_p = w1p.shape[1]
    l_p = w3p.shape[1]
    odim = w4p.shape[1]
    assert w1p.shape[0] == din

    # ---- batch tiling ---------------------------------------------------------
    # One tile if the batch fits (no artificial split: v5e/v6e are single-TC so
    # extra grid steps are pure overhead); otherwise 512-row tiles (multiple of
    # 256 -> full-M for the 2x256x256 MXU; 16-multiple keeps bf16 (16,128)
    # sublane packing).  "parallel" lets Mosaic shard steps across v7x's 2 TCs.
    block_b = max(256, _round_up(block_b, 256))
    if B <= block_b:
        tb = max(16, _round_up(B, 16))
        steps = 1
    else:
        tb = block_b
        steps = _cdiv(B, tb)
    B_p = tb * steps

    # Pad only the batch axis of x (same dtype; the bf16 cast happens per tile
    # inside the kernel, so there is no extra HBM pass over the activations).
    x_in = x if B_p == B else jnp.zeros((B_p, din), x.dtype).at[:B].set(x)

    # ---- VMEM budget ------------------------------------------------------------
    itemsize = jnp.dtype(x.dtype).itemsize
    need = (
        2 * tb * din * itemsize                              # double-buffered x tiles
        + 2 * (tb * l_p + tb * odim) * 4                     # double-buffered output tiles
        + 2 * ((din * h_p + h_p * h_p + h_p * l_p + l_p * odim) * 2
               + (2 * h_p + l_p + odim) * 4)                 # weights + biases (2 buffers)
        + 6 * tb * max(h_p, l_p) * 4                         # f32 intermediates
    )
    try:
        cap = pltpu.get_tpu_info().vmem_capacity_bytes
    except Exception:  # no TPU queryable (e.g. interpret mode): assume v7x's 64 MiB
        cap = 64 << 20
    # Leave ~8 MiB headroom for compiler-internal scratch instead of a hard cap
    # equal to v7x's entire per-TC VMEM.
    vmem_limit = int(min(cap - (8 << 20), max(need, 32 << 20)))

    # Weights/biases for this model are <0.5 MiB total, so default double
    # buffering of these constant blocks is negligible.
    # TODO(synk): for very wide embeddings (Din*H_p bf16 approaching ~half the
    # per-TC VMEM budget), single-buffer these constant blocks and add a
    # K-reduction grid axis over Din with an f32 scratch accumulator for fc1.
    rep = lambda shape: pl.BlockSpec(shape, lambda i: (0, 0))

    latent_p, output_p = pl.pallas_call(
        functools.partial(_mlp_kernel, latent_valid=latent_valid),
        out_shape=(
            jax.ShapeDtypeStruct((B_p, l_p), jnp.float32),
            jax.ShapeDtypeStruct((B_p, odim), jnp.float32),
        ),
        grid_spec=pltpu.PrefetchScalarGridSpec(
            num_scalar_prefetch=0,
            grid=(steps,),
            in_specs=[
                pl.BlockSpec((tb, din), lambda i: (i, 0)),   # full-Din block (== array dim)
                rep((din, h_p)), rep((1, h_p)),
                rep((h_p, h_p)), rep((1, h_p)),
                rep((h_p, l_p)), rep((1, l_p)),
                rep((l_p, odim)), rep((1, odim)),
            ],
            out_specs=[
                pl.BlockSpec((tb, l_p), lambda i: (i, 0)),
                pl.BlockSpec((tb, odim), lambda i: (i, 0)),  # unpadded output head
            ],
        ),
        compiler_params=pltpu.CompilerParams(
            dimension_semantics=("parallel",),
            vmem_limit_bytes=vmem_limit,
        ),
    )(x_in, w1p, b1p, w2p, b2p, w3p, b3p, w4p, b4p)

    latent = latent_p if (B_p == B and l_p == latent_valid) else latent_p[:B, :latent_valid]
    output = output_p if B_p == B else output_p[:B]
    return latent, output


def init_params(key, input_dim, hidden_dim, latent_dim, output_dim):
    """Xavier-normal weights (gain=1) + zero biases, matching the module's init.
    Weights stored as [in, out] so the kernel computes x @ W."""
    def xavier_normal(k, fan_in, fan_out):
        std = jnp.sqrt(2.0 / (fan_in + fan_out))
        return jax.random.normal(k, (fan_in, fan_out), dtype=jnp.float32) * std

    k1, k2, k3, k4 = jax.random.split(key, 4)
    return (
        (xavier_normal(k1, input_dim, hidden_dim), jnp.zeros((hidden_dim,), jnp.float32)),
        (xavier_normal(k2, hidden_dim, hidden_dim), jnp.zeros((hidden_dim,), jnp.float32)),
        (xavier_normal(k3, hidden_dim, latent_dim), jnp.zeros((latent_dim,), jnp.float32)),
        (xavier_normal(k4, latent_dim, output_dim), jnp.zeros((output_dim,), jnp.float32)),
    )


def reference_forward(x, params):
    """Pure-JAX f32 reference of the PyTorch forward, for verification."""
    (w1, b1), (w2, b2), (w3, b3), (w4, b4) = params
    h = jax.nn.relu(x @ w1 + b1)
    h = jax.nn.relu(h @ w2 + b2)
    latent = jax.nn.softmax(h @ w3 + b3, axis=-1)
    output = jax.nn.softmax(latent @ w4 + b4, axis=-1)
    return latent, output


if __name__ == "__main__":
    # Module-consistent sizes: hidden = latent = 256 (as in the original script),
    # output = #news categories (18 for MIND), modest input/batch for a quick run.
    batch = 256
    input_dimension = 300
    hidden_dimension = 256
    latent_dimension = 256
    output_dimension = 18

    key = jax.random.PRNGKey(0)
    k_x, k_p = jax.random.split(key)
    x = jax.random.normal(k_x, (batch, input_dimension), dtype=jnp.float32)
    params = init_params(k_p, input_dimension, hidden_dimension,
                         latent_dimension, output_dimension)

    # One-time weight pad/cast, hoisted out of the jitted per-call path.
    prepared, latent_valid = prepare_params(params)

    latent, output = news_embedding_forward(x, prepared, latent_valid=latent_valid)
    jax.block_until_ready((latent, output))

    # Verify against the pure-JAX f32 reference (bf16 matmuls -> looser tolerance).
    latent_ref, output_ref = reference_forward(x, params)
    assert latent.shape == (batch, latent_dimension)
    assert output.shape == (batch, output_dimension)
    assert jnp.allclose(latent, latent_ref, atol=2e-2, rtol=2e-2)
    assert jnp.allclose(output, output_ref, atol=2e-2, rtol=2e-2)
    # softmax rows sum to 1 (exact f32 normalization in the kernel)
    assert jnp.allclose(jnp.sum(latent, axis=-1), 1.0, atol=2e-3)
    assert jnp.allclose(jnp.sum(output, axis=-1), 1.0, atol=2e-3)

    print("KERNEL_OK")
</pallas_src>

<mosaic_0001>
module attributes {stable_mosaic.version = 11 : i64} {
  func.func @_mlp_kernel(%arg0: i32, %arg1: memref<256x300xf32, #tpu.memory_space<vmem>>, %arg2: memref<300x256xbf16, #tpu.memory_space<vmem>>, %arg3: memref<1x256xf32, #tpu.memory_space<vmem>>, %arg4: memref<256x256xbf16, #tpu.memory_space<vmem>>, %arg5: memref<1x256xf32, #tpu.memory_space<vmem>>, %arg6: memref<256x256xbf16, #tpu.memory_space<vmem>>, %arg7: memref<1x256xf32, #tpu.memory_space<vmem>>, %arg8: memref<256x18xbf16, #tpu.memory_space<vmem>>, %arg9: memref<1x18xf32, #tpu.memory_space<vmem>>, %arg10: memref<256x256xf32, #tpu.memory_space<vmem>>, %arg11: memref<256x18xf32, #tpu.memory_space<vmem>>) attributes {dimension_semantics = [#tpu.dimension_semantics<parallel>], iteration_bounds = array<i64: 1>, scalar_prefetch = 0 : i64, scratch_operands = 0 : i64, tpu.core_type = #tpu.core_type<tc>, window_params = [{transform_indices = @transform_0, window_bounds = array<i64: 256, 300>}, {pipeline_mode = #tpu.pipeline_mode<synchronous>, transform_indices = @transform_1, window_bounds = array<i64: 300, 256>}, {pipeline_mode = #tpu.pipeline_mode<synchronous>, transform_indices = @transform_2, window_bounds = array<i64: 1, 256>}, {pipeline_mode = #tpu.pipeline_mode<synchronous>, transform_indices = @transform_3, window_bounds = array<i64: 256, 256>}, {pipeline_mode = #tpu.pipeline_mode<synchronous>, transform_indices = @transform_4, window_bounds = array<i64: 1, 256>}, {pipeline_mode = #tpu.pipeline_mode<synchronous>, transform_indices = @transform_5, window_bounds = array<i64: 256, 256>}, {pipeline_mode = #tpu.pipeline_mode<synchronous>, transform_indices = @transform_6, window_bounds = array<i64: 1, 256>}, {pipeline_mode = #tpu.pipeline_mode<synchronous>, transform_indices = @transform_7, window_bounds = array<i64: 256, 18>}, {pipeline_mode = #tpu.pipeline_mode<synchronous>, transform_indices = @transform_8, window_bounds = array<i64: 1, 18>}, {transform_indices = @transform_9, window_bounds = array<i64: 256, 256>}, {transform_indices = @transform_10, window_bounds = array<i64: 256, 18>}]} {
    %c0 = arith.constant 0 : index
    %c0_0 = arith.constant 0 : index
    %0 = vector.load %arg1[%c0, %c0_0] : memref<256x300xf32, #tpu.memory_space<vmem>>, vector<256x300xf32>
    %1 = arith.truncf %0 : vector<256x300xf32> to vector<256x300xbf16>
    %c0_1 = arith.constant 0 : index
    %c0_2 = arith.constant 0 : index
    %2 = vector.load %arg2[%c0_1, %c0_2] : memref<300x256xbf16, #tpu.memory_space<vmem>>, vector<300x256xbf16>
    %cst = arith.constant dense<0.000000e+00> : vector<256x256xf32>
    %3 = tpu.matmul %1, %2, %cst {dimension_numbers = #tpu.dot_dimension_numbers<[1], [0], [0], [1], [0, 0, 1, 1], [], []>} : vector<256x300xbf16>, vector<300x256xbf16>, vector<256x256xf32> -> vector<256x256xf32>
    %c0_3 = arith.constant 0 : index
    %c0_4 = arith.constant 0 : index
    %4 = vector.load %arg3[%c0_3, %c0_4] : memref<1x256xf32, #tpu.memory_space<vmem>>, vector<1x256xf32>
    %5 = vector.broadcast %4 : vector<1x256xf32> to vector<256x256xf32>
    %6 = arith.addf %3, %5 : vector<256x256xf32>
    %cst_5 = arith.constant 0.000000e+00 : f32
    %7 = vector.broadcast %cst_5 : f32 to vector<256x256xf32>
    %8 = arith.maximumf %6, %7 : vector<256x256xf32>
    %9 = arith.truncf %8 : vector<256x256xf32> to vector<256x256xbf16>
    %c0_6 = arith.constant 0 : index
    %c0_7 = arith.constant 0 : index
    %10 = vector.load %arg4[%c0_6, %c0_7] : memref<256x256xbf16, #tpu.memory_space<vmem>>, vector<256x256xbf16>
    %cst_8 = arith.constant dense<0.000000e+00> : vector<256x256xf32>
    %11 = tpu.matmul %9, %10, %cst_8 {dimension_numbers = #tpu.dot_dimension_numbers<[1], [0], [0], [1], [0, 0, 1, 1], [], []>} : vector<256x256xbf16>, vector<256x256xbf16>, vector<256x256xf32> -> vector<256x256xf32>
    %c0_9 = arith.constant 0 : index
    %c0_10 = arith.constant 0 : index
    %12 = vector.load %arg5[%c0_9, %c0_10] : memref<1x256xf32, #tpu.memory_space<vmem>>, vector<1x256xf32>
    %13 = vector.broadcast %12 : vector<1x256xf32> to vector<256x256xf32>
    %14 = arith.addf %11, %13 : vector<256x256xf32>
    %cst_11 = arith.constant 0.000000e+00 : f32
    %15 = vector.broadcast %cst_11 : f32 to vector<256x256xf32>
    %16 = arith.maximumf %14, %15 : vector<256x256xf32>
    %17 = arith.truncf %16 : vector<256x256xf32> to vector<256x256xbf16>
    %c0_12 = arith.constant 0 : index
    %c0_13 = arith.constant 0 : index
    %18 = vector.load %arg6[%c0_12, %c0_13] : memref<256x256xbf16, #tpu.memory_space<vmem>>, vector<256x256xbf16>
    %cst_14 = arith.constant dense<0.000000e+00> : vector<256x256xf32>
    %19 = tpu.matmul %17, %18, %cst_14 {dimension_numbers = #tpu.dot_dimension_numbers<[1], [0], [0], [1], [0, 0, 1, 1], [], []>} : vector<256x256xbf16>, vector<256x256xbf16>, vector<256x256xf32> -> vector<256x256xf32>
    %c0_15 = arith.constant 0 : index
    %c0_16 = arith.constant 0 : index
    %20 = vector.load %arg7[%c0_15, %c0_16] : memref<1x256xf32, #tpu.memory_space<vmem>>, vector<1x256xf32>
    %21 = vector.broadcast %20 : vector<1x256xf32> to vector<256x256xf32>
    %22 = arith.addf %19, %21 : vector<256x256xf32>
    %cst_17 = arith.constant dense<0xFF800000> : vector<256xf32>
    %23 = vector.multi_reduction <maximumf>, %22, %cst_17 [1] : vector<256x256xf32> to vector<256xf32>
    %24 = vector.shape_cast %23 : vector<256xf32> to vector<256x1xf32>
    %25 = vector.broadcast %24 : vector<256x1xf32> to vector<256x256xf32>
    %26 = arith.subf %22, %25 : vector<256x256xf32>
    %27 = math.exp %26 : vector<256x256xf32>
    %cst_18 = arith.constant dense<0.000000e+00> : vector<256xf32>
    %28 = vector.multi_reduction <add>, %27, %cst_18 [1] : vector<256x256xf32> to vector<256xf32>
    %29 = vector.shape_cast %28 : vector<256xf32> to vector<256x1xf32>
    %30 = vector.broadcast %29 : vector<256x1xf32> to vector<256x256xf32>
    %31 = arith.divf %27, %30 : vector<256x256xf32>
    %c0_19 = arith.constant 0 : index
    %c0_20 = arith.constant 0 : index
    %32 = vector.load %arg10[%c0_19, %c0_20] : memref<256x256xf32, #tpu.memory_space<vmem>>, vector<256x256xf32>
    tpu.vector_store %arg10[%c0_19, %c0_20], %31 {strides = array<i32>} : memref<256x256xf32, #tpu.memory_space<vmem>>, vector<256x256xf32>,
    %33 = arith.truncf %31 : vector<256x256xf32> to vector<256x256xbf16>
    %c0_21 = arith.constant 0 : index
    %c0_22 = arith.constant 0 : index
    %34 = vector.load %arg8[%c0_21, %c0_22] : memref<256x18xbf16, #tpu.memory_space<vmem>>, vector<256x18xbf16>
    %cst_23 = arith.constant dense<0.000000e+00> : vector<256x18xf32>
    %35 = tpu.matmul %33, %34, %cst_23 {dimension_numbers = #tpu.dot_dimension_numbers<[1], [0], [0], [1], [0, 0, 1, 1], [], []>} : vector<256x256xbf16>, vector<256x18xbf16>, vector<256x18xf32> -> vector<256x18xf32>
    %c0_24 = arith.constant 0 : index
    %c0_25 = arith.constant 0 : index
    %36 = vector.load %arg9[%c0_24, %c0_25] : memref<1x18xf32, #tpu.memory_space<vmem>>, vector<1x18xf32>
    %37 = vector.broadcast %36 : vector<1x18xf32> to vector<256x18xf32>
    %38 = arith.addf %35, %37 : vector<256x18xf32>
    %cst_26 = arith.constant dense<0xFF800000> : vector<256xf32>
    %39 = vector.multi_reduction <maximumf>, %38, %cst_26 [1] : vector<256x18xf32> to vector<256xf32>
    %40 = vector.shape_cast %39 : vector<256xf32> to vector<256x1xf32>
    %41 = vector.broadcast %40 : vector<256x1xf32> to vector<256x18xf32>
    %42 = arith.subf %38, %41 : vector<256x18xf32>
    %43 = math.exp %42 : vector<256x18xf32>
    %cst_27 = arith.constant dense<0.000000e+00> : vector<256xf32>
    %44 = vector.multi_reduction <add>, %43, %cst_27 [1] : vector<256x18xf32> to vector<256xf32>
    %45 = vector.shape_cast %44 : vector<256xf32> to vector<256x1xf32>
    %46 = vector.broadcast %45 : vector<256x1xf32> to vector<256x18xf32>
    %47 = arith.divf %43, %46 : vector<256x18xf32>
    %c0_28 = arith.constant 0 : index
    %c0_29 = arith.constant 0 : index
    %48 = vector.load %arg11[%c0_28, %c0_29] : memref<256x18xf32, #tpu.memory_space<vmem>>, vector<256x18xf32>
    tpu.vector_store %arg11[%c0_28, %c0_29], %47 {strides = array<i32>} : memref<256x18xf32, #tpu.memory_space<vmem>>, vector<256x18xf32>,
    return
  }
  func.func @transform_0(%arg0: i32) -> (i32, i32) {
    %c0_i32 = arith.constant 0 : i32
    %c0_i32_0 = arith.constant 0 : i32
    return %arg0, %c0_i32 : i32, i32
  }
  func.func @transform_1(%arg0: i32) -> (i32, i32) {
    %c0_i32 = arith.constant 0 : i32
    %c0_i32_0 = arith.constant 0 : i32
    %c0_i32_1 = arith.constant 0 : i32
    return %c0_i32, %c0_i32_0 : i32, i32
  }
  func.func @transform_2(%arg0: i32) -> (i32, i32) {
    %c0_i32 = arith.constant 0 : i32
    %c0_i32_0 = arith.constant 0 : i32
    %c0_i32_1 = arith.constant 0 : i32
    return %c0_i32, %c0_i32_0 : i32, i32
  }
  func.func @transform_3(%arg0: i32) -> (i32, i32) {
    %c0_i32 = arith.constant 0 : i32
    %c0_i32_0 = arith.constant 0 : i32
    %c0_i32_1 = arith.constant 0 : i32
    return %c0_i32, %c0_i32_0 : i32, i32
  }
  func.func @transform_4(%arg0: i32) -> (i32, i32) {
    %c0_i32 = arith.constant 0 : i32
    %c0_i32_0 = arith.constant 0 : i32
    %c0_i32_1 = arith.constant 0 : i32
    return %c0_i32, %c0_i32_0 : i32, i32
  }
  func.func @transform_5(%arg0: i32) -> (i32, i32) {
    %c0_i32 = arith.constant 0 : i32
    %c0_i32_0 = arith.constant 0 : i32
    %c0_i32_1 = arith.constant 0 : i32
    return %c0_i32, %c0_i32_0 : i32, i32
  }
  func.func @transform_6(%arg0: i32) -> (i32, i32) {
    %c0_i32 = arith.constant 0 : i32
    %c0_i32_0 = arith.constant 0 : i32
    %c0_i32_1 = arith.constant 0 : i32
    return %c0_i32, %c0_i32_0 : i32, i32
  }
  func.func @transform_7(%arg0: i32) -> (i32, i32) {
    %c0_i32 = arith.constant 0 : i32
    %c0_i32_0 = arith.constant 0 : i32
    %c0_i32_1 = arith.constant 0 : i32
    return %c0_i32, %c0_i32_0 : i32, i32
  }
  func.func @transform_8(%arg0: i32) -> (i32, i32) {
    %c0_i32 = arith.constant 0 : i32
    %c0_i32_0 = arith.constant 0 : i32
    %c0_i32_1 = arith.constant 0 : i32
    return %c0_i32, %c0_i32_0 : i32, i32
  }
  func.func @transform_9(%arg0: i32) -> (i32, i32) {
    %c0_i32 = arith.constant 0 : i32
    %c0_i32_0 = arith.constant 0 : i32
    return %arg0, %c0_i32 : i32, i32
  }
  func.func @transform_10(%arg0: i32) -> (i32, i32) {
    %c0_i32 = arith.constant 0 : i32
    %c0_i32_0 = arith.constant 0 : i32
    return %arg0, %c0_i32 : i32, i32
  }
}

</mosaic_0001>

<bundles_post_ra>
// kernel: news_embedding_forward.1
= control target key start
LH: loop header
LB: loop body
LE: loop exit
PB: predicated region body
PF: predicated region fallthrough
CT: control target
= control target key end

     0   :  { %vm461_vm0 = vcmask 1045504   ;;  %vm412_vm1 = vcmask 359424   ;;  %s9212_s0 = inlined_call_operand.vmem [shape: f32[256,300], index: 0, kind: input, shape index: {}]   ;;  %s9213_s1 = inlined_call_operand.vmem [shape: bf16[300,256], index: 1, kind: input, shape index: {}]   ;;  %s9214_s2 = inlined_call_operand.vmem [shape: f32[1,256], index: 2, kind: input, shape index: {}]   ;;  %s9215_s3 = inlined_call_operand.vmem [shape: bf16[256,256], index: 3, kind: input, shape index: {}]   ;;  %s9216_s4 = inlined_call_operand.vmem [shape: f32[1,256], index: 4, kind: input, shape index: {}]   ;;  %s9217_s5 = inlined_call_operand.vmem [shape: bf16[256,256], index: 5, kind: input, shape index: {}]   ;;  %s9218_s6 = inlined_call_operand.vmem [shape: f32[1,256], index: 6, kind: input, shape index: {}]   ;;  %s9219_s7 = inlined_call_operand.vmem [shape: bf16[256,18], index: 7, kind: input, shape index: {}]   ;;  %s9220_s8 = inlined_call_operand.vmem [shape: f32[1,18], index: 8, kind: input, shape index: {}]   ;;  %s9221_s9 = inlined_call_operand.hbm [shape: f32[256,256], index: 9, kind: output, shape index: {0}]   ;;  %s9222_s10 = inlined_call_operand.vmem [shape: f32[256,18], index: 10, kind: output, shape index: {1}]  }
   0x1   :  { %v4485_v0 = vld [vmem:[%s9213_s1 + $0x70] sm:$0xf]  ;;  %v4946_v1 = vld [vmem:[%s9213_s1 + $0x74] sm:$0xf0]  ;;  %v4573_v5 = vld [vmem:[%s9213_s1 + $0x120] sm:$0xf] }
   0x2   :  { %v4549_v2 = vld [vmem:[%s9213_s1 + $0xf0] sm:$0xf]  ;;  %v4486_v3 = vor.u32 %v4946_v1, %v4485_v0  ;;  %v4962_v4 = vld [vmem:[%s9213_s1 + $0xf4] sm:$0xf0]  ;;  %v4968_v6 = vld [vmem:[%s9213_s1 + $0x124] sm:$0x30] }
   0x3   :  { %v4550_v7 = vor.u32 %v4962_v4, %v4549_v2  ;;  %v4574_v8 = vor.u32 %v4968_v6, %v4573_v5  ;;  %v4477_v9 = vld [vmem:[%s9213_s1 + $0x60] sm:$0xf]  ;;  %v4944_v10 = vld [vmem:[%s9213_s1 + $0x64] sm:$0xf0]  ;;  %v4565_v14 = vld [vmem:[%s9213_s1 + $0x110] sm:$0xf] }
   0x4   :  { %468 = vmatpush.bf16.msra.mxu0 %v4486_v3  ;;  %v4478_v11 = vor.u32 %v4944_v10, %v4477_v9  ;;  %v4541_v12 = vld [vmem:[%s9213_s1 + $0xe0] sm:$0xf]  ;;  %v4960_v13 = vld [vmem:[%s9213_s1 + $0xe4] sm:$0xf0]  ;;  %v4966_v17 = vld [vmem:[%s9213_s1 + $0x114] sm:$0xf0] }
   0x5   :  { %557 = vmatpush.bf16.msra.mxu1 %v4550_v7  ;;  %v463_v15 = vsel %vm461_vm0, %v4574_v8, 0  ;;  %v4542_v16 = vor.u32 %v4960_v13, %v4541_v12  ;;  %v4469_v18 = vld [vmem:[%s9213_s1 + $0x50] sm:$0xf]  ;;  %v4566_v19 = vor.u32 %v4966_v17, %v4565_v14  ;;  %v4942_v20 = vld [vmem:[%s9213_s1 + $0x54] sm:$0xf0]  ;;  %v41_v33 = vld [vmem:[%s9212_s0 + $0x28] sm:$0xff] }
   0x6   :  { %651 = vmatpush.bf16.msra.mxu2 %v463_v15  ;;  %v4533_v21 = vld [vmem:[%s9213_s1 + $0xd0] sm:$0xf]  ;;  %v4958_v22 = vld [vmem:[%s9213_s1 + $0xd4] sm:$0xf0]  ;;  %v4557_v23 = vld [vmem:[%s9213_s1 + $0x100] sm:$0xf]  ;;  %v4470_v25 = vor.u32 %v4942_v20, %v4469_v18 }
   0x7   :  { %v4964_v24 = vld [vmem:[%s9213_s1 + $0x104] sm:$0xf0]  ;;  %v4534_v26 = vor.u32 %v4958_v22, %v4533_v21  ;;  %v4461_v27 = vld [vmem:[%s9213_s1 + $0x40] sm:$0xf]  ;;  %v38_v29 = vld [vmem:[%s9212_s0 + $0x10] sm:$0xff] }
   0x8   :  { %469 = vmatpush.bf16.msra.mxu0 %v4478_v11  ;;  %v4940_v28 = vld [vmem:[%s9213_s1 + $0x44] sm:$0xf0]  ;;  %v4558_v30 = vor.u32 %v4964_v24, %v4557_v23  ;;  %v4525_v31 = vld [vmem:[%s9213_s1 + $0xc0] sm:$0xf]  ;;  %v4961_v35 = vld [vmem:[%s9213_s1 + $0xf4] sm:$0xf]  ;;  %v5538_v38 = vpack.c.bf16 %v41_v33, %v38_v29 }
   0x9   :  { %558 = vmatpush.bf16.msra.mxu1 %v4542_v16  ;;  %v4956_v32 = vld [vmem:[%s9213_s1 + $0xc4] sm:$0xf0]  ;;  %v4462_v34 = vor.u32 %v4940_v28, %v4461_v27  ;;  %v4551_v36 = vld [vmem:[%s9213_s1 + $0xf8] sm:$0xf0]  ;;  %v4453_v39 = vld [vmem:[%s9213_s1 + $0x30] sm:$0xf] }
   0xa   :  { %652 = vmatpush.bf16.msra.mxu2 %v4566_v19  ;;  %v4526_v37 = vor.u32 %v4956_v32, %v4525_v31  ;;  %v4938_v40 = vld [vmem:[%s9213_s1 + $0x34] sm:$0xf0]  ;;  %v4554_v41 = vor.u32 %v4961_v35, %v4551_v36  ;;  %v4517_v42 = vld [vmem:[%s9213_s1 + $0xb0] sm:$0xf]  ;;  %v4445_v46 = vld [vmem:[%s9213_s1 + $0x20] sm:$0xf] }
   0xb   :  { %v4954_v43 = vld [vmem:[%s9213_s1 + $0xb4] sm:$0xf0]  ;;  %v4454_v44 = vor.u32 %v4938_v40, %v4453_v39  ;;  %v4936_v47 = vld [vmem:[%s9213_s1 + $0x24] sm:$0xf0]  ;;  %v4509_v48 = vld [vmem:[%s9213_s1 + $0xa0] sm:$0xf] }
   0xc   :  { %470 = vmatpush.bf16.msra.mxu0 %v4470_v25  ;;  %v4518_v45 = vor.u32 %v4954_v43, %v4517_v42  ;;  %v4952_v49 = vld [vmem:[%s9213_s1 + $0xa4] sm:$0xf0]  ;;  %v4446_v50 = vor.u32 %v4936_v47, %v4445_v46  ;;  %v4959_v51 = vld [vmem:[%s9213_s1 + $0xe4] sm:$0xf]  ;;  %v4543_v52 = vld [vmem:[%s9213_s1 + $0xe8] sm:$0xf0] }
   0xd   :  { %559 = vmatpush.bf16.msra.mxu1 %v4534_v26  ;;  %v4510_v53 = vor.u32 %v4952_v49, %v4509_v48  ;;  %v4437_v54 = vld [vmem:[%s9213_s1 + $0x10] sm:$0xf]  ;;  %v4934_v55 = vld [vmem:[%s9213_s1 + $0x14] sm:$0xf0]  ;;  %v4546_v56 = vor.u32 %v4959_v51, %v4543_v52 }
   0xe   :  { %653 = vmatpush.bf16.msra.mxu2 %v4558_v30 }
  0x10   :  { %471 = vmatpush.bf16.msra.mxu0 %v4462_v34 }
  0x11   :  { %560 = vmatpush.bf16.msra.mxu1 %v4526_v37  ;;  %4579 = vmatmul.msk.bf16.vlgmr.msra.gmra.mxu2 %vm412_vm1, %v5538_v38 }
  0x12   :  { %824 = vmatpush.bf16.msrb.mxu2 %v4554_v41 }
  0x14   :  { %472 = vmatpush.bf16.msra.mxu0 %v4454_v44 }
  0x15   :  { %561 = vmatpush.bf16.msra.mxu1 %v4518_v45 }
  0x16   :  { %16 = vsyncpa [#allocation3], 0  ;;  %v4501_v57 = vld [vmem:[%s9213_s1 + $0x90] sm:$0xf]  ;;  %v4950_v58 = vld [vmem:[%s9213_s1 + $0x94] sm:$0xf0]  ;;  %825 = vmatpush.bf16.msrb.mxu2 %v4546_v56  ;;  %v4438_v59 = vor.u32 %v4934_v55, %v4437_v54 }
  0x17   :  { %v4967_v60 = vld [vmem:[%s9213_s1 + $0x124] sm:$0xf]  ;;  %v4575_v61 = vld [vmem:[%s9213_s1 + $0x128] sm:$0x30]  ;;  %v4502_v62 = vor.u32 %v4950_v58, %v4501_v57  ;;  %v4429_v63 = vld [vmem:[%s9213_s1] sm:$0xf] }
  0x18   :  { %473 = vmatpush.bf16.msra.mxu0 %v4446_v50  ;;  %v4932_v0 = vld [vmem:[%s9213_s1 + $0x4] sm:$0xf0]  ;;  %v44_v1 = vld [vmem:[%s9212_s0 + $0x40] sm:$0xff]  ;;  %v47_v4 = vld [vmem:[%s9212_s0 + $0x58] sm:$0xff]  ;;  %v4578_v5 = vor.u32 %v4967_v60, %v4575_v61  ;;  %s5401_s19 = smov [#allocation2]   ;;  %s5403_s21 = smov 16  }
  0x19   :  { %562 = vmatpush.bf16.msra.mxu1 %v4510_v53  ;;  %v4493_v2 = vld [vmem:[%s9213_s1 + $0x80] sm:$0xf]  ;;  %v4948_v3 = vld [vmem:[%s9213_s1 + $0x84] sm:$0xf0]  ;;  %v4430_v6 = vor.u32 %v4932_v0, %v4429_v63  ;;  %v39_v8 = vld [vmem:[%s9212_s0 + $0x18] sm:$0xff]  ;;  %v5614_v10 = vpack.c.bf16 %v47_v4, %v44_v1  ;;  %s4409_s20 = sshll.u32 %s5401_s19, 4  ;;  %s4410_s20 = int_to_ptr.vmem [resolvable:$true] %s4409_s20 }
  0x1a   :  { %v36_v7 = vld [vmem:[%s9212_s0] sm:$0xff]  ;;  %v4494_v9 = vor.u32 %v4948_v3, %v4493_v2  ;;  %v37_v11 = vld [vmem:[%s9212_s0 + $0x8] sm:$0xff]  ;;  %v466_v14 = vsel %vm461_vm0, %v4578_v5, 0  ;;  %v50_v16 = vld [vmem:[%s9212_s0 + $0x70] sm:$0xff] }
  0x1b   :  { %v40_v12 = vld [vmem:[%s9212_s0 + $0x20] sm:$0xff]  ;;  %v5622_v13 = vpack.c.bf16 %v39_v8, %v36_v7  ;;  %v53_v17 = vld [vmem:[%s9212_s0 + $0x88] sm:$0xff]  ;;  %v42_v18 = vld [vmem:[%s9212_s0 + $0x30] sm:$0xff] }
  0x1c   :  { %474 = vmatpush.bf16.msra.mxu0 %v4438_v59  ;;  %v5625_v15 = vpack.c.bf16 %v40_v12, %v37_v11  ;;  %v45_v19 = vld [vmem:[%s9212_s0 + $0x48] sm:$0xff]  ;;  %v5643_v20 = vpack.c.bf16 %v53_v17, %v50_v16  ;;  %v43_v21 = vld [vmem:[%s9212_s0 + $0x38] sm:$0xff]  ;;  %v46_v22 = vld [vmem:[%s9212_s0 + $0x50] sm:$0xff] }
  0x1d   :  { %563 = vmatpush.bf16.msra.mxu1 %v4502_v62  ;;  %v5651_v23 = vpack.c.bf16 %v45_v19, %v42_v18  ;;  %v5653_v24 = vpack.c.bf16 %v46_v22, %v43_v21  ;;  %v4957_v25 = vld [vmem:[%s9213_s1 + $0xd4] sm:$0xf]  ;;  %v4535_v26 = vld [vmem:[%s9213_s1 + $0xd8] sm:$0xf0]  ;;  %v56_v28 = vld [vmem:[%s9212_s0 + $0xa0] sm:$0xff] }
  0x1e   :  { %v4538_v27 = vor.u32 %v4957_v25, %v4535_v26  ;;  %v59_v29 = vld [vmem:[%s9212_s0 + $0xb8] sm:$0xff]  ;;  %v48_v30 = vld [vmem:[%s9212_s0 + $0x60] sm:$0xff]  ;;  %v49_v33 = vld [vmem:[%s9212_s0 + $0x68] sm:$0xff] }
  0x1f   :  { %v51_v31 = vld [vmem:[%s9212_s0 + $0x78] sm:$0xff]  ;;  %v5677_v32 = vpack.c.bf16 %v59_v29, %v56_v28  ;;  %v52_v34 = vld [vmem:[%s9212_s0 + $0x80] sm:$0xff]  ;;  %v62_v37 = vld [vmem:[%s9212_s0 + $0xd0] sm:$0xff] }
  0x20   :  { %475 = vmatpush.bf16.msra.mxu0 %v4430_v6  ;;  %826 = vmatpush.bf16.msrb.mxu2 %v4538_v27  ;;  %v5685_v35 = vpack.c.bf16 %v51_v31, %v48_v30  ;;  %v5687_v36 = vpack.c.bf16 %v52_v34, %v49_v33  ;;  %v65_v39 = vld [vmem:[%s9212_s0 + $0xe8] sm:$0xff]  ;;  %v54_v40 = vld [vmem:[%s9212_s0 + $0x90] sm:$0xff]  ;;  %v55_v43 = vld [vmem:[%s9212_s0 + $0x98] sm:$0xff] }
  0x21   :  { %564 = vmatpush.bf16.msra.mxu1 %v4494_v9  ;;  %4580 = vmatmul.msk.bf16.gmra.mxu2 %vm412_vm1, %v5614_v10  ;;  %v57_v41 = vld [vmem:[%s9212_s0 + $0xa8] sm:$0xff]  ;;  %v5705_v42 = vpack.c.bf16 %v65_v39, %v62_v37  ;;  %v58_v44 = vld [vmem:[%s9212_s0 + $0xb0] sm:$0xff]  ;;  %v4567_v48 = vld [vmem:[%s9213_s1 + $0x118] sm:$0xf0] }
  0x22   :  { %v5713_v45 = vpack.c.bf16 %v57_v41, %v54_v40  ;;  %v5715_v46 = vpack.c.bf16 %v58_v44, %v55_v43  ;;  %v4965_v47 = vld [vmem:[%s9213_s1 + $0x114] sm:$0xf]  ;;  %v4955_v49 = vld [vmem:[%s9213_s1 + $0xc4] sm:$0xf]  ;;  %v4527_v51 = vld [vmem:[%s9213_s1 + $0xc8] sm:$0xf0] }
  0x23   :  { %476 = vmatmul.bf16.vlgmr.msra.gmra.mxu0 %v5622_v13  ;;  %v4570_v50 = vor.u32 %v4965_v47, %v4567_v48  ;;  %v4530_v52 = vor.u32 %v4955_v49, %v4527_v51  ;;  %v68_v53 = vld [vmem:[%s9212_s0 + $0x100] sm:$0xff]  ;;  %v71_v54 = vld [vmem:[%s9212_s0 + $0x118] sm:$0xff]  ;;  %v61_v58 = vld [vmem:[%s9212_s0 + $0xc8] sm:$0xff] }
  0x24   :  { %918 = vmatpush.bf16.msrb.mxu0 %v466_v14  ;;  %565 = vmatmul.bf16.vlgmr.msra.gmra.mxu1 %v5625_v15  ;;  %v60_v55 = vld [vmem:[%s9212_s0 + $0xc0] sm:$0xff]  ;;  %v63_v56 = vld [vmem:[%s9212_s0 + $0xd8] sm:$0xff]  ;;  %v5745_v57 = vpack.c.bf16 %v71_v54, %v68_v53  ;;  %v74_v62 = vld [vmem:[%s9212_s0 + $0x130] sm:$0xff] }
  0x25   :  { %827 = vmatpush.bf16.msrb.mxu2 %v4530_v52  ;;  %v64_v59 = vld [vmem:[%s9212_s0 + $0xe0] sm:$0xff]  ;;  %v5753_v60 = vpack.c.bf16 %v63_v56, %v60_v55  ;;  %v77_v63 = vld [vmem:[%s9212_s0 + $0x148] sm:$0xff]  ;;  %v66_v0 = vld [vmem:[%s9212_s0 + $0xf0] sm:$0xff] }
  0x26   :  { %v5755_v61 = vpack.c.bf16 %v64_v59, %v61_v58  ;;  %v69_v1 = vld [vmem:[%s9212_s0 + $0x108] sm:$0xff]  ;;  %v5773_v2 = vpack.c.bf16 %v77_v63, %v74_v62  ;;  %v67_v3 = vld [vmem:[%s9212_s0 + $0xf8] sm:$0xff]  ;;  %v70_v4 = vld [vmem:[%s9212_s0 + $0x110] sm:$0xff] }
  0x27   :  { %v4945_v5 = vld [vmem:[%s9213_s1 + $0x74] sm:$0xf]  ;;  %v4487_v6 = vld [vmem:[%s9213_s1 + $0x78] sm:$0xf0]  ;;  %v5787_v7 = vpack.c.bf16 %v69_v1, %v66_v0  ;;  %v5789_v9 = vpack.c.bf16 %v70_v4, %v67_v3  ;;  %v4943_v11 = vld [vmem:[%s9213_s1 + $0x64] sm:$0xf] }
  0x28   :  { %919 = vmatpush.bf16.msrb.mxu0 %v4570_v50  ;;  %v4490_v8 = vor.u32 %v4945_v5, %v4487_v6  ;;  %v4479_v12 = vld [vmem:[%s9213_s1 + $0x68] sm:$0xf0]  ;;  %v4941_v16 = vld [vmem:[%s9213_s1 + $0x54] sm:$0xf]  ;;  %v4471_v17 = vld [vmem:[%s9213_s1 + $0x58] sm:$0xf0] }
  0x29   :  { %v4482_v14 = vor.u32 %v4943_v11, %v4479_v12  ;;  %v4474_v18 = vor.u32 %v4941_v16, %v4471_v17  ;;  %v80_v19 = vld [vmem:[%s9212_s0 + $0x160] sm:$0xff]  ;;  %v83_v21 = vld [vmem:[%s9212_s0 + $0x178] sm:$0xff]  ;;  %v4463_v25 = vld [vmem:[%s9213_s1 + $0x48] sm:$0xf0] }
  0x2a   :  { %735 = vmatpush.bf16.msra.mxu3 %v4490_v8  ;;  %v4939_v22 = vld [vmem:[%s9213_s1 + $0x44] sm:$0xf]  ;;  %v75_v28 = vld [vmem:[%s9212_s0 + $0x138] sm:$0xff]  ;;  %v4953_v29 = vld [vmem:[%s9213_s1 + $0xb4] sm:$0xf]  ;;  %v5831_v31 = vpack.c.bf16 %v83_v21, %v80_v19 }
  0x2b   :  { %v72_v26 = vld [vmem:[%s9212_s0 + $0x120] sm:$0xff]  ;;  %v4466_v27 = vor.u32 %v4939_v22, %v4463_v25  ;;  %v4519_v30 = vld [vmem:[%s9213_s1 + $0xb8] sm:$0xf0]  ;;  %v73_v33 = vld [vmem:[%s9212_s0 + $0x128] sm:$0xff] }
  0x2c   :  { %v76_v34 = vld [vmem:[%s9212_s0 + $0x140] sm:$0xff]  ;;  %v4522_v37 = vor.u32 %v4953_v29, %v4519_v30  ;;  %v4937_v39 = vld [vmem:[%s9213_s1 + $0x34] sm:$0xf]  ;;  %v5842_v40 = vpack.c.bf16 %v75_v28, %v72_v26  ;;  %v4455_v41 = vld [vmem:[%s9213_s1 + $0x38] sm:$0xf0] }
  0x2d   :  { %v5847_v43 = vpack.c.bf16 %v76_v34, %v73_v33  ;;  %v4458_v44 = vor.u32 %v4937_v39, %v4455_v41  ;;  %v4935_v47 = vld [vmem:[%s9213_s1 + $0x24] sm:$0xf]  ;;  %v4447_v48 = vld [vmem:[%s9213_s1 + $0x28] sm:$0xf0]  ;;  %v4933_v50 = vld [vmem:[%s9213_s1 + $0x14] sm:$0xf] }
  0x2e   :  { %736 = vmatpush.bf16.msra.mxu3 %v4482_v14  ;;  %828 = vmatpush.bf16.msrb.mxu2 %v4522_v37  ;;  %v4450_v49 = vor.u32 %v4935_v47, %v4447_v48  ;;  %v4439_v51 = vld [vmem:[%s9213_s1 + $0x18] sm:$0xf0]  ;;  %v86_v53 = vld [vmem:[%s9212_s0 + $0x190] sm:$0xff]  ;;  %v89_v54 = vld [vmem:[%s9212_s0 + $0x1a8] sm:$0xff] }
  0x2f   :  { %v4442_v52 = vor.u32 %v4933_v50, %v4439_v51  ;;  %v4931_v55 = vld [vmem:[%s9213_s1 + $0x4] sm:$0xf]  ;;  %v4431_v56 = vld [vmem:[%s9213_s1 + $0x8] sm:$0xf0]  ;;  %v78_v59 = vld [vmem:[%s9212_s0 + $0x150] sm:$0xff]  ;;  %v5883_v63 = vpack.c.bf16 %v89_v54, %v86_v53 }
  0x30   :  { %v4434_v58 = vor.u32 %v4931_v55, %v4431_v56  ;;  %v81_v62 = vld [vmem:[%s9212_s0 + $0x168] sm:$0xff]  ;;  %v79_v0 = vld [vmem:[%s9212_s0 + $0x158] sm:$0xff]  ;;  %v82_v1 = vld [vmem:[%s9212_s0 + $0x170] sm:$0xff] }
  0x31   :  { %4581 = vmatmul.msk.bf16.gmra.mxu2 %vm412_vm1, %v5643_v20  ;;  %v5891_v3 = vpack.c.bf16 %v81_v62, %v78_v59  ;;  %v5893_v4 = vpack.c.bf16 %v82_v1, %v79_v0  ;;  %v5903_v6 = vld [vmem:[%s9214_s2] sm:$0x3]  ;;  %v95_v11 = vld [vmem:[%s9212_s0 + $0x1d8] sm:$0xff]  ;;  %v4951_v22 = vld [vmem:[%s9213_s1 + $0xa4] sm:$0xf]  ;;  %s4411_s2 = sshll.u32 %s9221_s9, 4  ;;  %s4412_s2 = int_to_ptr.hbm [resolvable:$true] %s4411_s2 }
  0x32   :  { %737 = vmatpush.bf16.msra.mxu3 %v4474_v18  ;;  %v92_v8 = vld [vmem:[%s9212_s0 + $0x1c0] sm:$0xff]  ;;  %v87_v14 = vld [vmem:[%s9212_s0 + $0x198] sm:$0xff]  ;;  %v5918_v16 = vperm.slane %v5903_v6, 0  ;;  %v85_v18 = vld [vmem:[%s9212_s0 + $0x188] sm:$0xff]  ;;  %s5402_s9 = smov 256  }
  0x33   :  { %481 = vmatmul.bf16.gmra.mxu0 %v5651_v23  ;;  %v5920_v17 = vpack.c.bf16 %v95_v11, %v92_v8  ;;  %v88_v19 = vld [vmem:[%s9212_s0 + $0x1a0] sm:$0xff]  ;;  %v4511_v25 = vld [vmem:[%s9213_s1 + $0xa8] sm:$0xf0]  ;;  %v98_v47 = vld [vmem:[%s9212_s0 + $0x1f0] sm:$0xff] }
  0x34   :  { %570 = vmatmul.bf16.gmra.mxu1 %v5653_v24  ;;  %v4514_v28 = vor.u32 %v4951_v22, %v4511_v25  ;;  %v90_v50 = vld [vmem:[%s9212_s0 + $0x1b0] sm:$0xff]  ;;  %v93_v51 = vld [vmem:[%s9212_s0 + $0x1c8] sm:$0xff]  ;;  %v91_v54 = vld [vmem:[%s9212_s0 + $0x1b8] sm:$0xff] }
  0x35   :  { %v94_v55 = vld [vmem:[%s9212_s0 + $0x1d0] sm:$0xff]  ;;  %v5965_v59 = vpack.c.bf16 %v93_v51, %v90_v50  ;;  %v4963_v62 = vld [vmem:[%s9213_s1 + $0x104] sm:$0xf]  ;;  %v4559_v0 = vld [vmem:[%s9213_s1 + $0x108] sm:$0xf0] }
  0x36   :  { %738 = vmatpush.bf16.msra.mxu3 %v4466_v27  ;;  %v5936_v27 = vpack.c.bf16 %v88_v19, %v85_v18  ;;  %829 = vmatpush.bf16.msrb.mxu2 %v4514_v28  ;;  %v4562_v8 = vor.u32 %v4963_v62, %v4559_v0  ;;  %v104_v28 = vld [vmem:[%s9212_s0 + $0x220] sm:$0xff]  ;;  %v4949_v50 = vld [vmem:[%s9213_s1 + $0x94] sm:$0xf] }
  0x38   :  { %920 = vmatpush.bf16.msrb.mxu0 %v4562_v8 }
  0x3a   :  { %739 = vmatpush.bf16.msra.mxu3 %v4458_v44 }
  0x3e   :  { %740 = vmatpush.bf16.msra.mxu3 %v4450_v49 }
  0x41   :  { %4582 = vmatmul.msk.bf16.gmra.mxu2 %vm412_vm1, %v5677_v32 }
  0x42   :  { %741 = vmatpush.bf16.msra.mxu3 %v4442_v52 }
  0x43   :  { %486 = vmatmul.bf16.gmra.mxu0 %v5685_v35 }
  0x44   :  { %575 = vmatmul.bf16.gmra.mxu1 %v5687_v36 }
  0x46   :  { %742 = vmatpush.bf16.msra.mxu3 %v4434_v58 }
  0x49   :  { %743 = vmatmul.bf16.vlgmr.msra.gmra.mxu3 %v5622_v13  ;;  %v84_v13 = vld [vmem:[%s9212_s0 + $0x180] sm:$0xff] }
  0x4a   :  { %v5928_v21 = vpack.c.bf16 %v87_v14, %v84_v13 }
  0x51   :  { %4583 = vmatmul.msk.bf16.gmra.mxu2 %vm412_vm1, %v5705_v42 }
  0x53   :  { %491 = vmatmul.bf16.gmra.mxu0 %v5713_v45 }
  0x54   :  { %580 = vmatmul.bf16.gmra.mxu1 %v5715_v46 }
  0x59   :  { %748 = vmatmul.bf16.gmra.mxu3 %v5651_v23  ;;  %v101_v23 = vld [vmem:[%s9212_s0 + $0x208] sm:$0xff] }
  0x5a   :  { %v5957_v53 = vpack.c.bf16 %v101_v23, %v98_v47 }
  0x61   :  { %4584 = vmatmul.msk.bf16.gmra.mxu2 %vm412_vm1, %v5745_v57 }
  0x63   :  { %496 = vmatmul.bf16.gmra.mxu0 %v5753_v60 }
  0x64   :  { %585 = vmatmul.bf16.gmra.mxu1 %v5755_v61 }
  0x69   :  { %753 = vmatmul.bf16.gmra.mxu3 %v5685_v35  ;;  %v107_v35 = vld [vmem:[%s9212_s0 + $0x238] sm:$0xff] }
  0x71   :  { %4585 = vmatmul.msk.bf16.gmra.mxu2 %vm412_vm1, %v5773_v2 }
  0x73   :  { %501 = vmatmul.bf16.gmra.mxu0 %v5787_v7 }
  0x74   :  { %590 = vmatmul.bf16.gmra.mxu1 %v5789_v9 }
  0x79   :  { %758 = vmatmul.bf16.gmra.mxu3 %v5713_v45  ;;  %v113_v45 = vld [vmem:[%s9212_s0 + $0x268] sm:$0xff] }
  0x81   :  { %4586 = vmatmul.msk.bf16.gmra.mxu2 %vm412_vm1, %v5831_v31 }
  0x83   :  { %506 = vmatmul.bf16.gmra.mxu0 %v5842_v40 }
  0x84   :  { %595 = vmatmul.bf16.gmra.mxu1 %v5847_v43 }
  0x89   :  { %763 = vmatmul.bf16.gmra.mxu3 %v5753_v60  ;;  %v119_v60 = vld [vmem:[%s9212_s0 + $0x298] sm:$0xff] }
  0x91   :  { %4587 = vmatmul.msk.bf16.gmra.mxu2 %vm412_vm1, %v5883_v63 }
  0x93   :  { %511 = vmatmul.bf16.gmra.mxu0 %v5891_v3 }
  0x94   :  { %600 = vmatmul.bf16.gmra.mxu1 %v5893_v4  ;;  %v655_v5 = vpop.f32.mrf.mxu2 }
  0x99   :  { %768 = vmatmul.bf16.gmra.mxu3 %v5787_v7  ;;  %v4661_v7 = vld [vmem:[%s9215_s3 + $0x60] sm:$0xf] }
  0x9c   :  { %v657_v12 = vpop.f32.mrf.mxu2 }
  0xa0   :  { %v477_v26 = vpop.f32.mrf.mxu0 }
  0xa1   :  { %v478_v29 = vadd.f32 %v477_v26, %v5918_v16  ;;  %v566_v30 = vpop.f32.mrf.mxu1  ;;  %4588 = vmatmul.msk.bf16.gmra.mxu2 %vm412_vm1, %v5920_v17 }
  0xa3   :  { %v567_v33 = vadd.f32 %v566_v30, %v478_v29  ;;  %516 = vmatmul.bf16.gmra.mxu0 %v5928_v21 }
  0xa4   :  { %605 = vmatmul.bf16.gmra.mxu1 %v5936_v27  ;;  %v660_v34 = vpop.f32.mrf.mxu2 }
  0xa5   :  { %v656_v37 = vadd.f32 %v655_v5, %v567_v33  ;;  %v5973_v5 = vpack.c.bf16 %v94_v55, %v91_v54  ;;  %v96_v33 = vld [vmem:[%s9212_s0 + $0x1e0] sm:$0xff] }
  0xa7   :  { %v1002_v56 = vmax.f32 %v656_v37, 0.0 }
  0xa8   :  { %v479_v39 = vpop.f32.mrf.mxu0 }
  0xa9   :  { %v480_v41 = vadd.f32 %v479_v39, %v5918_v16  ;;  %v568_v44 = vpop.f32.mrf.mxu1  ;;  %v5996_v39 = vpack.c.bf16 %v107_v35, %v104_v28  ;;  %v103_v35 = vld [vmem:[%s9212_s0 + $0x218] sm:$0xff]  ;;  %773 = vmatmul.bf16.gmra.mxu3 %v5842_v40  ;;  %v4629_v40 = vld [vmem:[%s9215_s3 + $0x20] sm:$0xf] }
  0xab   :  { %v569_v48 = vadd.f32 %v568_v44, %v480_v41  ;;  %v97_v41 = vld [vmem:[%s9212_s0 + $0x1e8] sm:$0xff]  ;;  %v100_v44 = vld [vmem:[%s9212_s0 + $0x200] sm:$0xff] }
  0xac   :  { %v662_v49 = vpop.f32.mrf.mxu2 }
  0xad   :  { %v658_v52 = vadd.f32 %v657_v12, %v569_v48 }
  0xaf   :  { %v1004_v58 = vmax.f32 %v658_v52, 0.0  ;;  %v6012_v52 = vpack.c.bf16 %v100_v44, %v97_v41 }
  0xb0   :  { %v482_v1 = vpop.f32.mrf.mxu0 }
  0xb1   :  { %v5975_v11 = vpack.c.bf16 %v1004_v58, %v1002_v56  ;;  %v483_v12 = vadd.f32 %v482_v1, %v5918_v16  ;;  %v571_v13 = vpop.f32.mrf.mxu1  ;;  %4589 = vmatmul.msk.bf16.gmra.mxu2 %vm412_vm1, %v5957_v53 }
  0xb3   :  { %9239 = vst [vmem:[#allocation5_spill] sm:$0xff] %v5975_v11  ;;  %v572_v14 = vadd.f32 %v571_v13, %v483_v12  ;;  %521 = vmatmul.bf16.gmra.mxu0 %v5965_v59 }
  0xb4   :  { %610 = vmatmul.bf16.gmra.mxu1 %v5973_v5  ;;  %v665_v18 = vpop.f32.mrf.mxu2 }
  0xb5   :  { %v661_v19 = vadd.f32 %v660_v34, %v572_v14  ;;  %v99_v34 = vld [vmem:[%s9212_s0 + $0x1f8] sm:$0xff]  ;;  %v110_v14 = vld [vmem:[%s9212_s0 + $0x250] sm:$0xff] }
  0xb6   :  { %v6004_v48 = vpack.c.bf16 %v99_v34, %v96_v33  ;;  %v6035_v28 = vpack.c.bf16 %v113_v45, %v110_v14  ;;  %v109_v45 = vld [vmem:[%s9212_s0 + $0x248] sm:$0xff] }
  0xb7   :  { %v1006_v47 = vmax.f32 %v661_v19, 0.0 }
  0xb8   :  { %v484_v22 = vpop.f32.mrf.mxu0 }
  0xb9   :  { %v485_v25 = vadd.f32 %v484_v22, %v5918_v16  ;;  %v573_v26 = vpop.f32.mrf.mxu1  ;;  %778 = vmatmul.bf16.gmra.mxu3 %v5891_v3  ;;  %v4735_v3 = vld [vmem:[%s9215_s3 + $0xf8] sm:$0xf0] }
  0xbb   :  { %v574_v29 = vadd.f32 %v573_v26, %v485_v25  ;;  %v102_v25 = vld [vmem:[%s9212_s0 + $0x210] sm:$0xff] }
  0xbc   :  { %v667_v30 = vpop.f32.mrf.mxu2 }
  0xbd   :  { %v663_v37 = vadd.f32 %v662_v49, %v574_v29  ;;  %v4503_v49 = vld [vmem:[%s9213_s1 + $0x98] sm:$0xf0]  ;;  %v106_v29 = vld [vmem:[%s9212_s0 + $0x230] sm:$0xff] }
  0xbe   :  { %v4506_v54 = vor.u32 %v4949_v50, %v4503_v49  ;;  %v6045_v44 = vpack.c.bf16 %v106_v29, %v103_v35  ;;  %v4947_v35 = vld [vmem:[%s9213_s1 + $0x84] sm:$0xf] }
  0xbf   :  { %v1008_v23 = vmax.f32 %v663_v37, 0.0 }
  0xc0   :  { %v487_v51 = vpop.f32.mrf.mxu0  ;;  %830 = vmatpush.bf16.msrb.mxu2 %v4506_v54 }
  0xc1   :  { %v488_v55 = vadd.f32 %v487_v51, %v5918_v16  ;;  %v576_v56 = vpop.f32.mrf.mxu1  ;;  %4590 = vmatmul.msk.bf16.gmra.mxu2 %vm412_vm1, %v5996_v39  ;;  %v6018_v58 = vpack.c.bf16 %v1008_v23, %v1006_v47 }
  0xc3   :  { %v577_v62 = vadd.f32 %v576_v56, %v488_v55  ;;  %526 = vmatmul.bf16.gmra.mxu0 %v6004_v48 }
  0xc4   :  { %615 = vmatmul.bf16.gmra.mxu1 %v6012_v52  ;;  %v670_v0 = vpop.f32.mrf.mxu2 }
  0xc5   :  { %v666_v1 = vadd.f32 %v665_v18, %v577_v62  ;;  %v105_v18 = vld [vmem:[%s9212_s0 + $0x228] sm:$0xff]  ;;  %v116_v62 = vld [vmem:[%s9212_s0 + $0x280] sm:$0xff] }
  0xc6   :  { %v6043_v37 = vpack.c.bf16 %v105_v18, %v102_v25  ;;  %v6068_v14 = vpack.c.bf16 %v119_v60, %v116_v62  ;;  %v4982_v60 = vld [vmem:[%s9215_s3 + $0x64] sm:$0xf0] }
  0xc7   :  { %v1010_v33 = vmax.f32 %v666_v1, 0.0 }
  0xc8   :  { %v489_v8 = vpop.f32.mrf.mxu0 }
  0xc9   :  { %v490_v12 = vadd.f32 %v489_v8, %v5918_v16  ;;  %v578_v13 = vpop.f32.mrf.mxu1  ;;  %783 = vmatmul.bf16.gmra.mxu3 %v5928_v21 }
  0xcb   :  { %v579_v19 = vadd.f32 %v578_v13, %v490_v12  ;;  %v108_v12 = vld [vmem:[%s9212_s0 + $0x240] sm:$0xff] }
  0xcc   :  { %v672_v22 = vpop.f32.mrf.mxu2 }
  0xcd   :  { %v668_v26 = vadd.f32 %v667_v30, %v579_v19  ;;  %v112_v19 = vld [vmem:[%s9212_s0 + $0x260] sm:$0xff] }
  0xcf   :  { %v1012_v34 = vmax.f32 %v668_v26, 0.0 }
  0xd0   :  { %v492_v41 = vpop.f32.mrf.mxu0 }
  0xd1   :  { %v493_v47 = vadd.f32 %v492_v41, %v5918_v16  ;;  %v581_v30 = vpop.f32.mrf.mxu1  ;;  %4591 = vmatmul.msk.bf16.gmra.mxu2 %vm412_vm1, %v6035_v28  ;;  %v6051_v23 = vpack.c.bf16 %v1012_v34, %v1010_v33  ;;  %v6084_v33 = vpack.c.bf16 %v112_v19, %v109_v45  ;;  %v122_v45 = vld [vmem:[%s9212_s0 + $0x2b0] sm:$0xff] }
  0xd2   :  { %v4653_v19 = vld [vmem:[%s9215_s3 + $0x50] sm:$0xf] }
  0xd3   :  { %v582_v50 = vadd.f32 %v581_v30, %v493_v47  ;;  %531 = vmatmul.bf16.gmra.mxu0 %v6043_v37 }
  0xd4   :  { %620 = vmatmul.bf16.gmra.mxu1 %v6045_v44  ;;  %v675_v49 = vpop.f32.mrf.mxu2 }
  0xd5   :  { %v671_v51 = vadd.f32 %v670_v0, %v582_v50  ;;  %v111_v0 = vld [vmem:[%s9212_s0 + $0x258] sm:$0xff]  ;;  %v4669_v50 = vld [vmem:[%s9215_s3 + $0x70] sm:$0xf] }
  0xd6   :  { %v6076_v26 = vpack.c.bf16 %v111_v0, %v108_v12 }
  0xd7   :  { %v1014_v25 = vmax.f32 %v671_v51, 0.0  ;;  %v4984_v51 = vld [vmem:[%s9215_s3 + $0x74] sm:$0xf0] }
  0xd8   :  { %v494_v54 = vpop.f32.mrf.mxu0 }
  0xd9   :  { %v495_v55 = vadd.f32 %v494_v54, %v5918_v16  ;;  %v583_v56 = vpop.f32.mrf.mxu1  ;;  %788 = vmatmul.bf16.gmra.mxu3 %v5965_v59  ;;  %v4727_v59 = vld [vmem:[%s9215_s3 + $0xe8] sm:$0xf0] }
  0xdb   :  { %v584_v1 = vadd.f32 %v583_v56, %v495_v55  ;;  %v4670_v55 = vor.u32 %v4984_v51, %v4669_v50  ;;  %v115_v50 = vld [vmem:[%s9212_s0 + $0x278] sm:$0xff]  ;;  %v118_v51 = vld [vmem:[%s9212_s0 + $0x290] sm:$0xff] }
  0xdc   :  { %v677_v8 = vpop.f32.mrf.mxu2 }
  0xdd   :  { %v673_v13 = vadd.f32 %v672_v22, %v584_v1  ;;  %v4495_v22 = vld [vmem:[%s9213_s1 + $0x88] sm:$0xf0]  ;;  %1296 = vmatpush.bf16.msrb.mxu1 %v4670_v55  ;;  %v4662_v1 = vor.u32 %v4982_v60, %v4661_v7  ;;  %v4978_v55 = vld [vmem:[%s9215_s3 + $0x44] sm:$0xf0] }
  0xde   :  { %v4498_v34 = vor.u32 %v4947_v35, %v4495_v22 }
  0xdf   :  { %v1016_v18 = vmax.f32 %v673_v13, 0.0 }
  0xe0   :  { %v497_v29 = vpop.f32.mrf.mxu0  ;;  %831 = vmatpush.bf16.msrb.mxu2 %v4498_v34  ;;  %v117_v34 = vld [vmem:[%s9212_s0 + $0x288] sm:$0xff] }
  0xe1   :  { %v498_v41 = vadd.f32 %v497_v29, %v5918_v16  ;;  %v586_v47 = vpop.f32.mrf.mxu1  ;;  %4592 = vmatmul.msk.bf16.gmra.mxu2 %vm412_vm1, %v6068_v14  ;;  %v6090_v30 = vpack.c.bf16 %v1016_v18, %v1014_v25  ;;  %1297 = vmatpush.bf16.msrb.mxu1 %v4662_v1  ;;  %v4980_v25 = vld [vmem:[%s9215_s3 + $0x54] sm:$0xf0]  ;;  %v114_v29 = vld [vmem:[%s9212_s0 + $0x270] sm:$0xff] }
  0xe2   :  { %v4654_v35 = vor.u32 %v4980_v25, %v4653_v19  ;;  %v6139_v60 = vpack.c.bf16 %v117_v34, %v114_v29  ;;  %v4976_v19 = vld [vmem:[%s9215_s3 + $0x34] sm:$0xf0]  ;;  %v4974_v34 = vld [vmem:[%s9215_s3 + $0x24] sm:$0xf0] }
  0xe3   :  { %v587_v54 = vadd.f32 %v586_v47, %v498_v41  ;;  %536 = vmatmul.bf16.gmra.mxu0 %v6076_v26 }
  0xe4   :  { %625 = vmatmul.bf16.gmra.mxu1 %v6084_v33  ;;  %v680_v56 = vpop.f32.mrf.mxu2 }
  0xe5   :  { %v676_v62 = vadd.f32 %v675_v49, %v587_v54  ;;  %v125_v49 = vld [vmem:[%s9212_s0 + $0x2c8] sm:$0xff]  ;;  %1298 = vmatpush.bf16.msrb.mxu1 %v4654_v35  ;;  %v4645_v54 = vld [vmem:[%s9215_s3 + $0x40] sm:$0xf] }
  0xe6   :  { %v6125_v47 = vpack.c.bf16 %v125_v49, %v122_v45  ;;  %v4646_v1 = vor.u32 %v4978_v55, %v4645_v54  ;;  %v128_v55 = vld [vmem:[%s9212_s0 + $0x2e0] sm:$0xff] }
  0xe8   :  { %v499_v12 = vpop.f32.mrf.mxu0 }
  0xe9   :  { %v500_v0 = vadd.f32 %v499_v12, %v5918_v16  ;;  %v588_v13 = vpop.f32.mrf.mxu1  ;;  %1299 = vmatpush.bf16.msrb.mxu1 %v4646_v1  ;;  %793 = vmatmul.bf16.gmra.mxu3 %v6004_v48 }
  0xeb   :  { %v589_v18 = vadd.f32 %v588_v13, %v500_v0  ;;  %v6141_v0 = vpack.c.bf16 %v118_v51, %v115_v50 }
  0xec   :  { %v682_v22 = vpop.f32.mrf.mxu2 }
  0xed   :  { %v678_v41 = vadd.f32 %v677_v8, %v589_v18  ;;  %v1018_v8 = vmax.f32 %v676_v62, 0.0  ;;  %v4637_v62 = vld [vmem:[%s9215_s3 + $0x30] sm:$0xf] }
  0xee   :  { %v4638_v18 = vor.u32 %v4976_v19, %v4637_v62  ;;  %v123_v62 = vld [vmem:[%s9212_s0 + $0x2b8] sm:$0xff] }
  0xef   :  { %v1020_v7 = vmax.f32 %v678_v41, 0.0  ;;  %v4630_v41 = vor.u32 %v4974_v34, %v4629_v40  ;;  %v124_v40 = vld [vmem:[%s9212_s0 + $0x2c0] sm:$0xff] }
  0xf0   :  { %v502_v12 = vpop.f32.mrf.mxu0  ;;  %1300 = vmatpush.bf16.msrb.mxu1 %v4638_v18  ;;  %v121_v18 = vld [vmem:[%s9212_s0 + $0x2a8] sm:$0xff]  ;;  %v4613_v34 = vld [vmem:[%s9215_s3] sm:$0xf] }
  0xf1   :  { %v503_v13 = vadd.f32 %v502_v12, %v5918_v16  ;;  %v591_v45 = vpop.f32.mrf.mxu1  ;;  %4593 = vmatmul.msk.bf16.gmra.mxu2 %vm412_vm1, %v6125_v47  ;;  %v6147_v49 = vpack.c.bf16 %v1020_v7, %v1018_v8  ;;  %v4621_v8 = vld [vmem:[%s9215_s3 + $0x10] sm:$0xf]  ;;  %v4972_v7 = vld [vmem:[%s9215_s3 + $0x14] sm:$0xf0] }
  0xf2   :  { %v4622_v12 = vor.u32 %v4972_v7, %v4621_v8  ;;  %v6204_v7 = vpack.c.bf16 %v124_v40, %v121_v18 }
  0xf3   :  { %v592_v25 = vadd.f32 %v591_v45, %v503_v13  ;;  %541 = vmatmul.bf16.gmra.mxu0 %v6139_v60  ;;  %v120_v45 = vld [vmem:[%s9212_s0 + $0x2a0] sm:$0xff] }
  0xf4   :  { %630 = vmatmul.bf16.gmra.mxu1 %v6141_v0  ;;  %v685_v35 = vpop.f32.mrf.mxu2 }
  0xf5   :  { %v681_v29 = vadd.f32 %v680_v56, %v592_v25  ;;  %v131_v56 = vld [vmem:[%s9212_s0 + $0x2f8] sm:$0xff]  ;;  %1301 = vmatpush.bf16.msrb.mxu1 %v4630_v41  ;;  %v4970_v41 = vld [vmem:[%s9215_s3 + $0x4] sm:$0xf0] }
  0xf6   :  { %v6182_v25 = vpack.c.bf16 %v131_v56, %v128_v55  ;;  %v4671_v55 = vld [vmem:[%s9215_s3 + $0x78] sm:$0xf0]  ;;  %v4614_v56 = vor.u32 %v4970_v41, %v4613_v34 }
  0xf8   :  { %v504_v50 = vpop.f32.mrf.mxu0  ;;  %9240 = vst [vmem:[#allocation6_spill] sm:$0xff] %v6182_v25 }
  0xf9   :  { %v505_v51 = vadd.f32 %v504_v50, %v5918_v16  ;;  %v593_v54 = vpop.f32.mrf.mxu1  ;;  %1302 = vmatpush.bf16.msrb.mxu1 %v4622_v12  ;;  %v5000_v12 = vld [vmem:[%s9215_s3 + $0xf4] sm:$0xf0]  ;;  %798 = vmatmul.bf16.gmra.mxu3 %v6043_v37  ;;  %v4719_v37 = vld [vmem:[%s9215_s3 + $0xd8] sm:$0xf0] }
  0xfb   :  { %v594_v1 = vadd.f32 %v593_v54, %v505_v51  ;;  %v6196_v51 = vpack.c.bf16 %v123_v62, %v120_v45  ;;  %v4983_v54 = vld [vmem:[%s9215_s3 + $0x74] sm:$0xf] }
  0xfc   :  { %v687_v13 = vpop.f32.mrf.mxu2 }
  0xfd   :  { %v683_v19 = vadd.f32 %v682_v22, %v594_v1  ;;  %v1022_v22 = vmax.f32 %v681_v29, 0.0  ;;  %v4674_v1 = vor.u32 %v4983_v54, %v4671_v55  ;;  %v4733_v29 = vld [vmem:[%s9215_s3 + $0xf0] sm:$0xf]  ;;  %1303 = vmatpush.bf16.msrb.mxu1 %v4614_v56  ;;  %v4999_v54 = vld [vmem:[%s9215_s3 + $0xf4] sm:$0xf] }
  0xff   :  { %v1024_v50 = vmax.f32 %v683_v19, 0.0  ;;  %v4734_v19 = vor.u32 %v5000_v12, %v4733_v29  ;;  %1474 = vmatpush.bf16.msra.mxu2 %v4674_v1  ;;  %v129_v29 = vld [vmem:[%s9212_s0 + $0x2e8] sm:$0xff] }
 0x100   :  { %v507_v8 = vpop.f32.mrf.mxu0 }
 0x101   :  { %v508_v45 = vadd.f32 %v507_v8, %v5918_v16  ;;  %v596_v62 = vpop.f32.mrf.mxu1  ;;  %4594 = vmatmul.msk.bf16.gmra.mxu2 %vm412_vm1, %v6182_v25  ;;  %v6216_v18 = vpack.c.bf16 %v1024_v50, %v1022_v22  ;;  %1385 = vmatpush.bf16.msrb.mxu3 %v4734_v19  ;;  %v4738_v50 = vor.u32 %v4999_v54, %v4735_v3 }
 0x103   :  { %v597_v40 = vadd.f32 %v596_v62, %v508_v45  ;;  %546 = vmatmul.bf16.gmra.mxu0 %v6196_v51  ;;  %v127_v45 = vld [vmem:[%s9212_s0 + $0x2d8] sm:$0xff]  ;;  %v130_v62 = vld [vmem:[%s9212_s0 + $0x2f0] sm:$0xff] }
 0x104   :  { %635 = vmatmul.bf16.gmra.mxu1 %v6204_v7  ;;  %v690_v34 = vpop.f32.mrf.mxu2  ;;  %1563 = vmatpush.bf16.msra.mxu0 %v4738_v50 }
 0x105   :  { %v686_v41 = vadd.f32 %v685_v35, %v597_v40  ;;  %v126_v35 = vld [vmem:[%s9212_s0 + $0x2d0] sm:$0xff] }
 0x106   :  { %v6239_v54 = vpack.c.bf16 %v129_v29, %v126_v35 }
 0x107   :  { %v1026_v19 = vmax.f32 %v686_v41, 0.0 }
 0x108   :  { %v509_v22 = vpop.f32.mrf.mxu0 }
 0x109   :  { %v510_v55 = vadd.f32 %v509_v22, %v5918_v16  ;;  %v598_v56 = vpop.f32.mrf.mxu1  ;;  %v6241_v22 = vpack.c.bf16 %v130_v62, %v127_v45 }
 0x10b   :  { %v599_v8 = vadd.f32 %v598_v56, %v510_v55 }
 0x10c   :  { %v692_v1 = vpop.f32.mrf.mxu2 }
 0x10d   :  { %v688_v12 = vadd.f32 %v687_v13, %v599_v8  ;;  %v6250_v8 = vpop.f32.mrf.mxu3 }
 0x10f   :  { %v1028_v40 = vmax.f32 %v688_v12, 0.0 }
 0x110   :  { %v512_v3 = vpop.f32.mrf.mxu0 }
 0x111   :  { %v513_v50 = vadd.f32 %v512_v3, %v5918_v16  ;;  %v601_v55 = vpop.f32.mrf.mxu1  ;;  %832 = vmatmul.bf16.vlgmr.msrb.gmra.mxu2 %v5625_v15  ;;  %v6246_v13 = vpack.c.bf16 %v1028_v40, %v1026_v19 }
 0x113   :  { %9241 = vst [vmem:[#allocation7_spill] sm:$0xff] %v6246_v13  ;;  %v602_v56 = vadd.f32 %v601_v55, %v513_v50  ;;  %551 = vmatmul.bf16.gmra.mxu0 %v6239_v54  ;;  %v4981_v50 = vld [vmem:[%s9215_s3 + $0x64] sm:$0xf]  ;;  %v4663_v55 = vld [vmem:[%s9215_s3 + $0x68] sm:$0xf0] }
 0x114   :  { %640 = vmatmul.bf16.gmra.mxu1 %v6241_v22  ;;  %v695_v41 = vpop.f32.mrf.mxu2 }
 0x115   :  { %v691_v35 = vadd.f32 %v690_v34, %v602_v56  ;;  %v6253_v15 = vpop.f32.mrf.mxu3  ;;  %v4666_v56 = vor.u32 %v4981_v50, %v4663_v55  ;;  %803 = vmatmul.bf16.gmra.mxu3 %v6076_v26 }
 0x117   :  { %v1030_v19 = vmax.f32 %v691_v35, 0.0  ;;  %1475 = vmatpush.bf16.msra.mxu2 %v4666_v56 }
 0x118   :  { %v514_v29 = vpop.f32.mrf.mxu0 }
 0x119   :  { %v515_v12 = vadd.f32 %v514_v29, %v5918_v16  ;;  %v603_v45 = vpop.f32.mrf.mxu1  ;;  %v4725_v29 = vld [vmem:[%s9215_s3 + $0xe0] sm:$0xf] }
 0x11b   :  { %v604_v62 = vadd.f32 %v603_v45, %v515_v12 }
 0x11c   :  { %v697_v3 = vpop.f32.mrf.mxu2 }
 0x11d   :  { %v693_v21 = vadd.f32 %v692_v1, %v604_v62  ;;  %v4998_v1 = vld [vmem:[%s9215_s3 + $0xe4] sm:$0xf0]  ;;  %v6275_v55 = vpop.f32.mrf.mxu3 }
 0x11e   :  { %v4726_v45 = vor.u32 %v4998_v1, %v4725_v29 }
 0x11f   :  { %v1032_v40 = vmax.f32 %v693_v21, 0.0 }
 0x120   :  { %v517_v34 = vpop.f32.mrf.mxu0  ;;  %1386 = vmatpush.bf16.msrb.mxu3 %v4726_v45 }
 0x121   :  { %v518_v35 = vadd.f32 %v517_v34, %v5918_v16  ;;  %v606_v12 = vpop.f32.mrf.mxu1  ;;  %837 = vmatmul.bf16.gmra.mxu2 %v5653_v24  ;;  %v6270_v62 = vpack.c.bf16 %v1032_v40, %v1030_v19  ;;  %v4997_v24 = vld [vmem:[%s9215_s3 + $0xe4] sm:$0xf] }
 0x122   :  { %v4730_v40 = vor.u32 %v4997_v24, %v4727_v59 }
 0x123   :  { %v607_v21 = vadd.f32 %v606_v12, %v518_v35  ;;  %4595 = vmatmul.msk.bf16.vlgmr.msrb.gmra.mxu0 %vm412_vm1, %v5538_v38 }
 0x124   :  { %v700_v50 = vpop.f32.mrf.mxu2  ;;  %1304 = vmatmul.bf16.vlgmr.msrb.gmra.mxu1 %v5975_v11  ;;  %1564 = vmatpush.bf16.msra.mxu0 %v4730_v40 }
 0x125   :  { %v696_v34 = vadd.f32 %v695_v41, %v607_v21  ;;  %v6284_v35 = vpop.f32.mrf.mxu3  ;;  %808 = vmatmul.bf16.gmra.mxu3 %v6139_v60  ;;  %v4711_v60 = vld [vmem:[%s9215_s3 + $0xc8] sm:$0xf0] }
 0x127   :  { %v1034_v41 = vmax.f32 %v696_v34, 0.0 }
 0x128   :  { %v519_v19 = vpop.f32.mrf.mxu0 }
 0x129   :  { %v520_v56 = vadd.f32 %v519_v19, %v5918_v16  ;;  %v608_v38 = vpop.f32.mrf.mxu1 }
 0x12b   :  { %v609_v29 = vadd.f32 %v608_v38, %v520_v56 }
 0x12c   :  { %v702_v1 = vpop.f32.mrf.mxu2 }
 0x12d   :  { %v698_v12 = vadd.f32 %v697_v3, %v609_v29  ;;  %v6294_v3 = vpop.f32.mrf.mxu3 }
 0x12f   :  { %v1036_v45 = vmax.f32 %v698_v12, 0.0 }
 0x130   :  { %v522_v21 = vpop.f32.mrf.mxu0 }
 0x131   :  { %v523_v25 = vadd.f32 %v522_v21, %v5918_v16  ;;  %v611_v11 = vpop.f32.mrf.mxu1  ;;  %842 = vmatmul.bf16.gmra.mxu2 %v5687_v36  ;;  %v6289_v24 = vpack.c.bf16 %v1036_v45, %v1034_v41  ;;  %v4717_v21 = vld [vmem:[%s9215_s3 + $0xd0] sm:$0xf] }
 0x133   :  { %v612_v59 = vadd.f32 %v611_v11, %v523_v25  ;;  %4596 = vmatmul.msk.bf16.gmra.mxu0 %vm412_vm1, %v5614_v10  ;;  %v4979_v10 = vld [vmem:[%s9215_s3 + $0x54] sm:$0xf]  ;;  %v4655_v25 = vld [vmem:[%s9215_s3 + $0x58] sm:$0xf0] }
 0x134   :  { %v705_v19 = vpop.f32.mrf.mxu2  ;;  %1309 = vmatmul.bf16.gmra.mxu1 %v6018_v58  ;;  %v4658_v45 = vor.u32 %v4979_v10, %v4655_v25 }
 0x135   :  { %v701_v34 = vadd.f32 %v700_v50, %v612_v59  ;;  %v6297_v12 = vpop.f32.mrf.mxu3  ;;  %813 = vmatmul.bf16.gmra.mxu3 %v6196_v51 }
 0x136   :  { %1476 = vmatpush.bf16.msra.mxu2 %v4658_v45 }
 0x137   :  { %v1038_v41 = vmax.f32 %v701_v34, 0.0 }
 0x138   :  { %v524_v40 = vpop.f32.mrf.mxu0 }
 0x139   :  { %v525_v56 = vadd.f32 %v524_v40, %v5918_v16  ;;  %v613_v38 = vpop.f32.mrf.mxu1 }
 0x13b   :  { %v614_v29 = vadd.f32 %v613_v38, %v525_v56 }
 0x13c   :  { %v707_v36 = vpop.f32.mrf.mxu2 }
 0x13d   :  { %v703_v48 = vadd.f32 %v702_v1, %v614_v29  ;;  %v4996_v1 = vld [vmem:[%s9215_s3 + $0xd4] sm:$0xf0] }
 0x13e   :  { %v4718_v40 = vor.u32 %v4996_v1, %v4717_v21 }
 0x13f   :  { %v1040_v11 = vmax.f32 %v703_v48, 0.0  ;;  %v6319_v48 = vpop.f32.mrf.mxu3 }
 0x140   :  { %v527_v50 = vpop.f32.mrf.mxu0  ;;  %1387 = vmatpush.bf16.msrb.mxu3 %v4718_v40 }
 0x141   :  { %v528_v59 = vadd.f32 %v527_v50, %v5918_v16  ;;  %v616_v34 = vpop.f32.mrf.mxu1  ;;  %847 = vmatmul.bf16.gmra.mxu2 %v5715_v46  ;;  %v6314_v56 = vpack.c.bf16 %v1040_v11, %v1038_v41  ;;  %v4995_v46 = vld [vmem:[%s9215_s3 + $0xd4] sm:$0xf] }
 0x142   :  { %v4722_v11 = vor.u32 %v4995_v46, %v4719_v37 }
 0x143   :  { %v617_v38 = vadd.f32 %v616_v34, %v528_v59  ;;  %4597 = vmatmul.msk.bf16.gmra.mxu0 %vm412_vm1, %v5643_v20 }
 0x144   :  { %v710_v29 = vpop.f32.mrf.mxu2  ;;  %1314 = vmatmul.bf16.gmra.mxu1 %v6051_v23  ;;  %1565 = vmatpush.bf16.msra.mxu0 %v4722_v11 }
 0x145   :  { %v706_v10 = vadd.f32 %v705_v19, %v617_v38 }
 0x147   :  { %v6328_v21 = vpop.f32.mrf.mxu3  ;;  %v1042_v19 = vmax.f32 %v706_v10, 0.0  ;;  %818 = vmatmul.bf16.gmra.mxu3 %v6239_v54  ;;  %v4991_v54 = vld [vmem:[%s9215_s3 + $0xb4] sm:$0xf] }
 0x148   :  { %v529_v41 = vpop.f32.mrf.mxu0 }
 0x149   :  { %v530_v25 = vadd.f32 %v529_v41, %v5918_v16  ;;  %v618_v20 = vpop.f32.mrf.mxu1 }
 0x14b   :  { %v619_v50 = vadd.f32 %v618_v20, %v530_v25 }
 0x14c   :  { %v712_v45 = vpop.f32.mrf.mxu2 }
 0x14d   :  { %v708_v1 = vadd.f32 %v707_v36, %v619_v50 }
 0x14f   :  { %v1044_v59 = vmax.f32 %v708_v1, 0.0  ;;  %v6338_v36 = vpop.f32.mrf.mxu3 }
 0x150   :  { %v532_v34 = vpop.f32.mrf.mxu0 }
 0x151   :  { %v533_v40 = vadd.f32 %v532_v34, %v5918_v16  ;;  %v621_v38 = vpop.f32.mrf.mxu1  ;;  %852 = vmatmul.bf16.gmra.mxu2 %v5755_v61  ;;  %v6333_v46 = vpack.c.bf16 %v1044_v59, %v1042_v19  ;;  %v4647_v34 = vld [vmem:[%s9215_s3 + $0x48] sm:$0xf0] }
 0x153   :  { %9242 = vst [vmem:[#allocation8_spill] sm:$0xff] %v6333_v46  ;;  %v622_v37 = vadd.f32 %v621_v38, %v533_v40  ;;  %4598 = vmatmul.msk.bf16.gmra.mxu0 %vm412_vm1, %v5677_v32  ;;  %v4977_v32 = vld [vmem:[%s9215_s3 + $0x44] sm:$0xf]  ;;  %v4709_v38 = vld [vmem:[%s9215_s3 + $0xc0] sm:$0xf] }
 0x154   :  { %v715_v41 = vpop.f32.mrf.mxu2  ;;  %1319 = vmatmul.bf16.gmra.mxu1 %v6090_v30  ;;  %v4650_v40 = vor.u32 %v4977_v32, %v4647_v34 }
 0x155   :  { %v711_v10 = vadd.f32 %v710_v29, %v622_v37 }
 0x156   :  { %1477 = vmatpush.bf16.msra.mxu2 %v4650_v40 }
 0x157   :  { %v6341_v1 = vpop.f32.mrf.mxu3  ;;  %v1046_v19 = vmax.f32 %v711_v10, 0.0 }
 0x158   :  { %v534_v11 = vpop.f32.mrf.mxu0 }
 0x159   :  { %v535_v25 = vadd.f32 %v534_v11, %v5918_v16  ;;  %v623_v20 = vpop.f32.mrf.mxu1 }
 0x15b   :  { %v624_v50 = vadd.f32 %v623_v20, %v535_v25 }
 0x15c   :  { %v717_v61 = vpop.f32.mrf.mxu2 }
 0x15d   :  { %v713_v26 = vadd.f32 %v712_v45, %v624_v50  ;;  %v4994_v45 = vld [vmem:[%s9215_s3 + $0xc4] sm:$0xf0] }
 0x15e   :  { %v4710_v11 = vor.u32 %v4994_v45, %v4709_v38 }
 0x15f   :  { %v1048_v59 = vmax.f32 %v713_v26, 0.0  ;;  %v6363_v26 = vpop.f32.mrf.mxu3 }
 0x160   :  { %v537_v29 = vpop.f32.mrf.mxu0  ;;  %1388 = vmatpush.bf16.msrb.mxu3 %v4710_v11 }
 0x161   :  { %v538_v37 = vadd.f32 %v537_v29, %v5918_v16  ;;  %v626_v10 = vpop.f32.mrf.mxu1  ;;  %857 = vmatmul.bf16.gmra.mxu2 %v5789_v9  ;;  %v6358_v25 = vpack.c.bf16 %v1048_v59, %v1046_v19  ;;  %v4993_v9 = vld [vmem:[%s9215_s3 + $0xc4] sm:$0xf] }
 0x162   :  { %v4714_v59 = vor.u32 %v4993_v9, %v4711_v60 }
 0x163   :  { %9243 = vst [vmem:[#allocation9_spill] sm:$0xff] %v6358_v25  ;;  %v627_v20 = vadd.f32 %v626_v10, %v538_v37  ;;  %4599 = vmatmul.msk.bf16.gmra.mxu0 %vm412_vm1, %v5705_v42 }
 0x164   :  { %v720_v50 = vpop.f32.mrf.mxu2  ;;  %1324 = vmatmul.bf16.gmra.mxu1 %v6147_v49  ;;  %1566 = vmatpush.bf16.msra.mxu0 %v4714_v59 }
 0x165   :  { %v716_v32 = vadd.f32 %v715_v41, %v627_v20 }
 0x167   :  { %v6372_v38 = vpop.f32.mrf.mxu3  ;;  %v1050_v41 = vmax.f32 %v716_v32, 0.0 }
 0x168   :  { %v539_v19 = vpop.f32.mrf.mxu0 }
 0x169   :  { %v540_v34 = vadd.f32 %v539_v19, %v5918_v16  ;;  %v628_v42 = vpop.f32.mrf.mxu1 }
 0x16b   :  { %v629_v29 = vadd.f32 %v628_v42, %v540_v34 }
 0x16c   :  { %v722_v40 = vpop.f32.mrf.mxu2 }
 0x16d   :  { %v718_v45 = vadd.f32 %v717_v61, %v629_v29 }
 0x16f   :  { %v1052_v37 = vmax.f32 %v718_v45, 0.0  ;;  %v6382_v61 = vpop.f32.mrf.mxu3 }
 0x170   :  { %v542_v10 = vpop.f32.mrf.mxu0 }
 0x171   :  { %v543_v11 = vadd.f32 %v542_v10, %v5918_v16  ;;  %v631_v20 = vpop.f32.mrf.mxu1  ;;  %862 = vmatmul.bf16.gmra.mxu2 %v5847_v43  ;;  %v6377_v9 = vpack.c.bf16 %v1052_v37, %v1050_v41  ;;  %v4701_v41 = vld [vmem:[%s9215_s3 + $0xb0] sm:$0xf] }
 0x173   :  { %9244 = vst [vmem:[#allocation10_spill] sm:$0xff] %v6377_v9  ;;  %v632_v60 = vadd.f32 %v631_v20, %v543_v11  ;;  %4600 = vmatmul.msk.bf16.gmra.mxu0 %vm412_vm1, %v5745_v57  ;;  %v4992_v57 = vld [vmem:[%s9215_s3 + $0xb4] sm:$0xf0]  ;;  %v4639_v11 = vld [vmem:[%s9215_s3 + $0x38] sm:$0xf0] }
 0x174   :  { %v725_v19 = vpop.f32.mrf.mxu2  ;;  %1329 = vmatmul.bf16.gmra.mxu1 %v6216_v18  ;;  %v4702_v20 = vor.u32 %v4992_v57, %v4701_v41 }
 0x175   :  { %v721_v32 = vadd.f32 %v720_v50, %v632_v60  ;;  %v4975_v50 = vld [vmem:[%s9215_s3 + $0x34] sm:$0xf] }
 0x176   :  { %v4642_v60 = vor.u32 %v4975_v50, %v4639_v11  ;;  %1389 = vmatpush.bf16.msrb.mxu3 %v4702_v20  ;;  %v4988_v11 = vld [vmem:[%s9215_s3 + $0x94] sm:$0xf0] }
 0x177   :  { %v6385_v45 = vpop.f32.mrf.mxu3  ;;  %v1054_v37 = vmax.f32 %v721_v32, 0.0  ;;  %v4693_v32 = vld [vmem:[%s9215_s3 + $0xa0] sm:$0xf] }
 0x178   :  { %v544_v59 = vpop.f32.mrf.mxu0  ;;  %1478 = vmatpush.bf16.msra.mxu2 %v4642_v60 }
 0x179   :  { %v545_v34 = vadd.f32 %v544_v59, %v5918_v16  ;;  %v633_v42 = vpop.f32.mrf.mxu1 }
 0x17b   :  { %v634_v29 = vadd.f32 %v633_v42, %v545_v34 }
 0x17c   :  { %v727_v43 = vpop.f32.mrf.mxu2 }
 0x17d   :  { %v723_v51 = vadd.f32 %v722_v40, %v634_v29  ;;  %v4990_v29 = vld [vmem:[%s9215_s3 + $0xa4] sm:$0xf0] }
 0x17e   :  { %v4694_v41 = vor.u32 %v4990_v29, %v4693_v32 }
 0x17f   :  { %v1056_v10 = vmax.f32 %v723_v51, 0.0  ;;  %v6413_v57 = vpop.f32.mrf.mxu3 }
 0x180   :  { %v547_v40 = vpop.f32.mrf.mxu0  ;;  %1390 = vmatpush.bf16.msrb.mxu3 %v4694_v41 }
 0x181   :  { %v548_v59 = vadd.f32 %v547_v40, %v5918_v16  ;;  %v636_v34 = vpop.f32.mrf.mxu1  ;;  %867 = vmatmul.bf16.gmra.mxu2 %v5893_v4  ;;  %v6401_v42 = vpack.c.bf16 %v1056_v10, %v1054_v37  ;;  %v4703_v10 = vld [vmem:[%s9215_s3 + $0xb8] sm:$0xf0] }
 0x182   :  { %v4706_v50 = vor.u32 %v4991_v54, %v4703_v10 }
 0x183   :  { %9245 = vst [vmem:[#allocation11_spill] sm:$0xff] %v6401_v42  ;;  %v637_v51 = vadd.f32 %v636_v34, %v548_v59  ;;  %4601 = vmatmul.msk.bf16.gmra.mxu0 %vm412_vm1, %v5773_v2  ;;  %v4685_v2 = vld [vmem:[%s9215_s3 + $0x90] sm:$0xf]  ;;  %v4677_v59 = vld [vmem:[%s9215_s3 + $0x80] sm:$0xf] }
 0x184   :  { %v730_v4 = vpop.f32.mrf.mxu2  ;;  %1334 = vmatmul.bf16.gmra.mxu1 %v6246_v13  ;;  %v4686_v20 = vor.u32 %v4988_v11, %v4685_v2  ;;  %1567 = vmatpush.bf16.msra.mxu0 %v4706_v50  ;;  %v4986_v34 = vld [vmem:[%s9215_s3 + $0x84] sm:$0xf0] }
 0x185   :  { %v726_v37 = vadd.f32 %v725_v19, %v637_v51  ;;  %v4678_v29 = vor.u32 %v4986_v34, %v4677_v59 }
 0x186   :  { %1391 = vmatpush.bf16.msrb.mxu3 %v4686_v20 }
 0x187   :  { %v6434_v41 = vpop.f32.mrf.mxu3  ;;  %v1058_v10 = vmax.f32 %v726_v37, 0.0 }
 0x188   :  { %v549_v19 = vpop.f32.mrf.mxu0 }
 0x189   :  { %v550_v40 = vadd.f32 %v549_v19, %v5918_v16  ;;  %v638_v60 = vpop.f32.mrf.mxu1 }
 0x18a   :  { %1392 = vmatpush.bf16.msrb.mxu3 %v4678_v29 }
 0x18b   :  { %v639_v32 = vadd.f32 %v638_v60, %v550_v40 }
 0x18c   :  { %v732_v51 = vpop.f32.mrf.mxu2 }
 0x18d   :  { %v728_v54 = vadd.f32 %v727_v43, %v639_v32  ;;  %v6447_v32 = vperm.slane %v5903_v6, 1 }
 0x18f   :  { %v1060_v50 = vmax.f32 %v728_v54, 0.0  ;;  %v6443_v60 = vpop.f32.mrf.mxu3 }
 0x190   :  { %v552_v2 = vpop.f32.mrf.mxu0 }
 0x191   :  { %v553_v11 = vadd.f32 %v552_v2, %v5918_v16  ;;  %v641_v20 = vpop.f32.mrf.mxu1  ;;  %872 = vmatmul.bf16.gmra.mxu2 %v5936_v27  ;;  %v6438_v19 = vpack.c.bf16 %v1060_v50, %v1058_v10 }
 0x193   :  { %9246 = vst [vmem:[#allocation12_spill] sm:$0xff] %v6438_v19  ;;  %v642_v13 = vadd.f32 %v641_v20, %v553_v11  ;;  %4602 = vmatmul.msk.bf16.gmra.mxu0 %vm412_vm1, %v5831_v31  ;;  %v4973_v31 = vld [vmem:[%s9215_s3 + $0x24] sm:$0xf] }
 0x194   :  { %v833_v40 = vpop.f32.mrf.mxu2  ;;  %1339 = vmatmul.bf16.gmra.mxu1 %v6270_v62 }
 0x195   :  { %v731_v43 = vadd.f32 %v730_v4, %v642_v13  ;;  %v4631_v13 = vld [vmem:[%s9215_s3 + $0x28] sm:$0xf0] }
 0x196   :  { %v4634_v4 = vor.u32 %v4973_v31, %v4631_v13 }
 0x197   :  { %v6449_v54 = vpop.f32.mrf.mxu3  ;;  %v1062_v50 = vmax.f32 %v731_v43, 0.0 }
 0x198   :  { %v554_v37 = vpop.f32.mrf.mxu0  ;;  %1479 = vmatpush.bf16.msra.mxu2 %v4634_v4 }
 0x199   :  { %v555_v59 = vadd.f32 %v554_v37, %v5918_v16  ;;  %v643_v34 = vpop.f32.mrf.mxu1  ;;  %v745_v16 = vadd.f32 %v6250_v8, %v6447_v32  ;;  %v4989_v8 = vld [vmem:[%s9215_s3 + $0xa4] sm:$0xf] }
 0x19b   :  { %v644_v27 = vadd.f32 %v643_v34, %v555_v59  ;;  %v834_v20 = vadd.f32 %v833_v40, %v745_v16  ;;  %v750_v16 = vadd.f32 %v6275_v55, %v6447_v32 }
 0x19c   :  { %v835_v29 = vpop.f32.mrf.mxu2 }
 0x19d   :  { %v733_v10 = vadd.f32 %v732_v51, %v644_v27  ;;  %v747_v51 = vadd.f32 %v6253_v15, %v6447_v32 }
 0x19f   :  { %v1064_v6 = vmax.f32 %v733_v10, 0.0  ;;  %v6473_v43 = vpop.f32.mrf.mxu3  ;;  %v836_v34 = vadd.f32 %v835_v29, %v747_v51  ;;  %v752_v29 = vadd.f32 %v6284_v35, %v6447_v32  ;;  %v4623_v35 = vld [vmem:[%s9215_s3 + $0x18] sm:$0xf0] }
 0x1a0   :  { %v922_v2 = vpop.f32.mrf.mxu0 }
 0x1a1   :  { %877 = vmatmul.bf16.gmra.mxu2 %v5973_v5  ;;  %v6460_v11 = vpack.c.bf16 %v1064_v6, %v1062_v50  ;;  %v4695_v5 = vld [vmem:[%s9215_s3 + $0xa8] sm:$0xf0]  ;;  %v923_v15 = vadd.f32 %v922_v2, %v834_v20  ;;  %v6475_v13 = vpop.f32.mrf.mxu1 }
 0x1a2   :  { %v4698_v59 = vor.u32 %v4989_v8, %v4695_v5 }
 0x1a3   :  { %9247 = vst [vmem:[#allocation13_spill] sm:$0xff] %v6460_v11  ;;  %4603 = vmatmul.msk.bf16.gmra.mxu0 %vm412_vm1, %v5883_v63  ;;  %v1003_v63 = vmax.f32 %v923_v15, 0.0 }
 0x1a4   :  { %v838_v37 = vpop.f32.mrf.mxu2  ;;  %1344 = vmatmul.bf16.gmra.mxu1 %v6289_v24  ;;  %1568 = vmatpush.bf16.msra.mxu0 %v4698_v59 }
 0x1a5   :  { %v839_v2 = vadd.f32 %v838_v37, %v750_v16  ;;  %v757_v16 = vadd.f32 %v6297_v12, %v6447_v32 }
 0x1a7   :  { %v6482_v6 = vpop.f32.mrf.mxu3 }
 0x1a8   :  { %v924_v40 = vpop.f32.mrf.mxu0 }
 0x1a9   :  { %v925_v27 = vadd.f32 %v924_v40, %v836_v34  ;;  %v6490_v20 = vpop.f32.mrf.mxu1 }
 0x1ab   :  { %v1005_v10 = vmax.f32 %v925_v27, 0.0 }
 0x1ac   :  { %v840_v31 = vpop.f32.mrf.mxu2 }
 0x1ad   :  { %v6477_v4 = vpack.c.bf16 %v1005_v10, %v1003_v63  ;;  %v841_v55 = vadd.f32 %v840_v31, %v752_v29  ;;  %v755_v63 = vadd.f32 %v6294_v3, %v6447_v32  ;;  %v4987_v3 = vld [vmem:[%s9215_s3 + $0x94] sm:$0xf] }
 0x1af   :  { %1393 = vmatmul.bf16.vlgmr.msrb.gmra.mxu3 %v6477_v4  ;;  %v6492_v34 = vpop.f32.mrf.mxu3 }
 0x1b0   :  { %v927_v50 = vpop.f32.mrf.mxu0 }
 0x1b1   :  { %882 = vmatmul.bf16.gmra.mxu2 %v6012_v52  ;;  %v928_v8 = vadd.f32 %v927_v50, %v839_v2  ;;  %v6505_v31 = vpop.f32.mrf.mxu1 }
 0x1b3   :  { %4604 = vmatmul.msk.bf16.gmra.mxu0 %vm412_vm1, %v5920_v17  ;;  %v1007_v15 = vmax.f32 %v928_v8, 0.0  ;;  %v4971_v17 = vld [vmem:[%s9215_s3 + $0x14] sm:$0xf] }
 0x1b4   :  { %v843_v51 = vpop.f32.mrf.mxu2  ;;  %1349 = vmatmul.bf16.gmra.mxu1 %v6314_v56  ;;  %v4626_v37 = vor.u32 %v4971_v17, %v4623_v35 }
 0x1b5   :  { %v844_v50 = vadd.f32 %v843_v51, %v755_v63 }
 0x1b6   :  { %1480 = vmatpush.bf16.msra.mxu2 %v4626_v37  ;;  %v760_v37 = vadd.f32 %v6319_v48, %v6447_v32 }
 0x1b7   :  { %v6513_v2 = vpop.f32.mrf.mxu3 }
 0x1b8   :  { %v929_v5 = vpop.f32.mrf.mxu0 }
 0x1b9   :  { %v930_v59 = vadd.f32 %v929_v5, %v841_v55 }
 0x1bb   :  { %v1009_v52 = vmax.f32 %v930_v59, 0.0 }
 0x1bc   :  { %v845_v40 = vpop.f32.mrf.mxu2 }
 0x1bd   :  { %v6494_v27 = vpack.c.bf16 %v1009_v52, %v1007_v15  ;;  %v846_v8 = vadd.f32 %v845_v40, %v757_v16  ;;  %v762_v40 = vadd.f32 %v6328_v21, %v6447_v32  ;;  %v4615_v21 = vld [vmem:[%s9215_s3 + $0x8] sm:$0xf0] }
 0x1bf   :  { %1398 = vmatmul.bf16.gmra.mxu3 %v6494_v27  ;;  %v6525_v35 = vpop.f32.mrf.mxu3 }
 0x1c0   :  { %v932_v10 = vpop.f32.mrf.mxu0 }
 0x1c1   :  { %887 = vmatmul.bf16.gmra.mxu2 %v6045_v44  ;;  %v4687_v44 = vld [vmem:[%s9215_s3 + $0x98] sm:$0xf0]  ;;  %v933_v12 = vadd.f32 %v932_v10, %v844_v50 }
 0x1c2   :  { %v4690_v55 = vor.u32 %v4987_v3, %v4687_v44 }
 0x1c3   :  { %4605 = vmatmul.msk.bf16.gmra.mxu0 %vm412_vm1, %v5957_v53  ;;  %v6521_v53 = vpop.f32.mrf.mxu1  ;;  %v1011_v59 = vmax.f32 %v933_v12, 0.0 }
 0x1c4   :  { %v848_v29 = vpop.f32.mrf.mxu2  ;;  %1354 = vmatmul.bf16.gmra.mxu1 %v6333_v46  ;;  %1569 = vmatpush.bf16.msra.mxu0 %v4690_v55 }
 0x1c5   :  { %v849_v10 = vadd.f32 %v848_v29, %v760_v37 }
 0x1c7   :  { %v6538_v55 = vpop.f32.mrf.mxu3 }
 0x1c8   :  { %v934_v51 = vpop.f32.mrf.mxu0 }
 0x1c9   :  { %v935_v5 = vadd.f32 %v934_v51, %v846_v8 }
 0x1cb   :  { %v1013_v15 = vmax.f32 %v935_v5, 0.0  ;;  %v6536_v50 = vpop.f32.mrf.mxu1 }
 0x1cc   :  { %v850_v52 = vpop.f32.mrf.mxu2 }
 0x1cd   :  { %v6523_v17 = vpack.c.bf16 %v1013_v15, %v1011_v59  ;;  %v851_v3 = vadd.f32 %v850_v52, %v762_v40  ;;  %v765_v59 = vadd.f32 %v6338_v36, %v6447_v32  ;;  %v4985_v36 = vld [vmem:[%s9215_s3 + $0x84] sm:$0xf] }
 0x1cf   :  { %1403 = vmatmul.bf16.gmra.mxu3 %v6523_v17  ;;  %v6554_v37 = vpop.f32.mrf.mxu3 }
 0x1d0   :  { %v937_v63 = vpop.f32.mrf.mxu0 }
 0x1d1   :  { %892 = vmatmul.bf16.gmra.mxu2 %v6084_v33  ;;  %v938_v44 = vadd.f32 %v937_v63, %v849_v10  ;;  %v767_v63 = vadd.f32 %v6341_v1, %v6447_v32 }
 0x1d3   :  { %4606 = vmatmul.msk.bf16.gmra.mxu0 %vm412_vm1, %v5996_v39  ;;  %v1015_v12 = vmax.f32 %v938_v44, 0.0  ;;  %v4969_v39 = vld [vmem:[%s9215_s3 + $0x4] sm:$0xf]  ;;  %v6550_v15 = vpop.f32.mrf.mxu1 }
 0x1d4   :  { %v853_v16 = vpop.f32.mrf.mxu2  ;;  %1359 = vmatmul.bf16.gmra.mxu1 %v6358_v25  ;;  %v4618_v29 = vor.u32 %v4969_v39, %v4615_v21 }
 0x1d5   :  { %v854_v40 = vadd.f32 %v853_v16, %v765_v59 }
 0x1d6   :  { %1481 = vmatpush.bf16.msra.mxu2 %v4618_v29  ;;  %v770_v29 = vadd.f32 %v6363_v26, %v6447_v32 }
 0x1d7   :  { %v6569_v39 = vpop.f32.mrf.mxu3 }
 0x1d8   :  { %v939_v48 = vpop.f32.mrf.mxu0 }
 0x1d9   :  { %v940_v8 = vadd.f32 %v939_v48, %v851_v3 }
 0x1db   :  { %v1017_v33 = vmax.f32 %v940_v8, 0.0  ;;  %v6567_v1 = vpop.f32.mrf.mxu1 }
 0x1dc   :  { %v855_v51 = vpop.f32.mrf.mxu2 }
 0x1dd   :  { %v6540_v5 = vpack.c.bf16 %v1017_v33, %v1015_v12  ;;  %v856_v44 = vadd.f32 %v855_v51, %v767_v63  ;;  %v772_v51 = vadd.f32 %v6372_v38, %v6447_v32 }
 0x1df   :  { %1408 = vmatmul.bf16.gmra.mxu3 %v6540_v5 }
 0x1e0   :  { %v942_v52 = vpop.f32.mrf.mxu0 }
 0x1e1   :  { %897 = vmatmul.bf16.gmra.mxu2 %v6141_v0  ;;  %v4679_v0 = vld [vmem:[%s9215_s3 + $0x88] sm:$0xf0]  ;;  %v943_v48 = vadd.f32 %v942_v52, %v854_v40 }
 0x1e2   :  { %v4682_v3 = vor.u32 %v4985_v36, %v4679_v0  ;;  %v6584_v36 = vpop.f32.mrf.mxu3 }
 0x1e3   :  { %4607 = vmatmul.msk.bf16.gmra.mxu0 %vm412_vm1, %v6035_v28  ;;  %v1019_v28 = vmax.f32 %v943_v48, 0.0  ;;  %v6579_v52 = vpop.f32.mrf.mxu1 }
 0x1e4   :  { %v858_v10 = vpop.f32.mrf.mxu2  ;;  %1364 = vmatmul.bf16.gmra.mxu1 %v6377_v9  ;;  %1570 = vmatpush.bf16.msra.mxu0 %v4682_v3 }
 0x1e5   :  { %v859_v63 = vadd.f32 %v858_v10, %v770_v29  ;;  %v4799_v10 = vld [vmem:[%s9217_s5 + $0x78] sm:$0xf0]  ;;  %v775_v29 = vadd.f32 %v6382_v61, %v6447_v32  ;;  %v777_v61 = vadd.f32 %v6385_v45, %v6447_v32  ;;  %v5031_v45 = vld [vmem:[%s9217_s5 + $0xf4] sm:$0xf] }
 0x1e8   :  { %v944_v8 = vpop.f32.mrf.mxu0 }
 0x1e9   :  { %v945_v16 = vadd.f32 %v944_v8, %v856_v44 }
 0x1eb   :  { %v1021_v12 = vmax.f32 %v945_v16, 0.0  ;;  %v6586_v16 = vpop.f32.mrf.mxu1 }
 0x1ec   :  { %v860_v33 = vpop.f32.mrf.mxu2 }
 0x1ed   :  { %v6571_v21 = vpack.c.bf16 %v1021_v12, %v1019_v28  ;;  %v861_v26 = vadd.f32 %v860_v33, %v772_v51  ;;  %v4861_v28 = vld [vmem:[%s9217_s5 + $0xf0] sm:$0xf]  ;;  %v5032_v33 = vld [vmem:[%s9217_s5 + $0xf4] sm:$0xf0] }
 0x1ef   :  { %1413 = vmatmul.bf16.gmra.mxu3 %v6571_v21 }
 0x1f0   :  { %v947_v59 = vpop.f32.mrf.mxu0 }
 0x1f1   :  { %902 = vmatmul.bf16.gmra.mxu2 %v6204_v7  ;;  %v948_v0 = vadd.f32 %v947_v59, %v859_v63  ;;  %v4862_v59 = vor.u32 %v5032_v33, %v4861_v28  ;;  %v6605_v63 = vpop.f32.mrf.mxu3 }
 0x1f3   :  { %4608 = vmatmul.msk.bf16.gmra.mxu0 %vm412_vm1, %v6068_v14  ;;  %v1023_v48 = vmax.f32 %v948_v0, 0.0  ;;  %v5015_v14 = vld [vmem:[%s9217_s5 + $0x74] sm:$0xf]  ;;  %v5016_v0 = vld [vmem:[%s9217_s5 + $0x74] sm:$0xf0]  ;;  %2035 = vmatpush.bf16.msra.mxu3 %v4862_v59 }
 0x1f4   :  { %v863_v40 = vpop.f32.mrf.mxu2  ;;  %1369 = vmatmul.bf16.gmra.mxu1 %v6401_v42  ;;  %v4802_v12 = vor.u32 %v5015_v14, %v4799_v10  ;;  %v6631_v10 = vpop.f32.mrf.mxu1  ;;  %v5012_v59 = vld [vmem:[%s9217_s5 + $0x54] sm:$0xf0] }
 0x1f6   :  { %2124 = vmatpush.bf16.msrb.mxu2 %v4802_v12 }
 0x1f8   :  { %v949_v3 = vpop.f32.mrf.mxu0 }
 0x1f9   :  { %v950_v44 = vadd.f32 %v949_v3, %v861_v26  ;;  %v4797_v26 = vld [vmem:[%s9217_s5 + $0x70] sm:$0xf] }
 0x1fa   :  { %v4798_v3 = vor.u32 %v5016_v0, %v4797_v26 }
 0x1fb   :  { %v1025_v7 = vmax.f32 %v950_v44, 0.0  ;;  %v864_v44 = vadd.f32 %v863_v40, %v775_v29  ;;  %v4781_v29 = vld [vmem:[%s9217_s5 + $0x50] sm:$0xf] }
 0x1fc   :  { %v865_v8 = vpop.f32.mrf.mxu2  ;;  %1946 = vmatpush.bf16.msra.mxu1 %v4798_v3  ;;  %v4782_v0 = vor.u32 %v5012_v59, %v4781_v29  ;;  %v6639_v3 = vpop.f32.mrf.mxu3 }
 0x1fd   :  { %v6588_v38 = vpack.c.bf16 %v1025_v7, %v1023_v48  ;;  %v4789_v7 = vld [vmem:[%s9217_s5 + $0x60] sm:$0xf]  ;;  %v866_v28 = vadd.f32 %v865_v8, %v777_v61  ;;  %v5010_v61 = vld [vmem:[%s9217_s5 + $0x44] sm:$0xf0] }
 0x1ff   :  { %1418 = vmatmul.bf16.gmra.mxu3 %v6588_v38 }
 0x200   :  { %v952_v51 = vpop.f32.mrf.mxu0 }
 0x201   :  { %907 = vmatmul.bf16.gmra.mxu2 %v6241_v22  ;;  %v5014_v22 = vld [vmem:[%s9217_s5 + $0x64] sm:$0xf0]  ;;  %v953_v12 = vadd.f32 %v952_v51, %v864_v44  ;;  %v4773_v51 = vld [vmem:[%s9217_s5 + $0x40] sm:$0xf] }
 0x202   :  { %v4790_v40 = vor.u32 %v5014_v22, %v4789_v7 }
 0x203   :  { %4609 = vmatmul.msk.bf16.gmra.mxu0 %vm412_vm1, %v6125_v47  ;;  %v4863_v47 = vld [vmem:[%s9217_s5 + $0xf8] sm:$0xf0]  ;;  %v1027_v7 = vmax.f32 %v953_v12, 0.0  ;;  %v6658_v12 = vpop.f32.mrf.mxu1 }
 0x204   :  { %v868_v48 = vpop.f32.mrf.mxu2  ;;  %1374 = vmatmul.bf16.gmra.mxu1 %v6438_v19  ;;  %v4866_v14 = vor.u32 %v5031_v45, %v4863_v47  ;;  %v4774_v45 = vor.u32 %v5010_v61, %v4773_v51  ;;  %v780_v47 = vadd.f32 %v6413_v57, %v6447_v32  ;;  %v782_v57 = vadd.f32 %v6434_v41, %v6447_v32  ;;  %v5006_v51 = vld [vmem:[%s9217_s5 + $0x24] sm:$0xf0] }
 0x205   :  { %1947 = vmatpush.bf16.msra.mxu1 %v4790_v40 }
 0x206   :  { %2213 = vmatpush.bf16.msrb.mxu0 %v4866_v14  ;;  %v4765_v14 = vld [vmem:[%s9217_s5 + $0x30] sm:$0xf]  ;;  %v869_v59 = vadd.f32 %v868_v48, %v780_v47 }
 0x207   :  { %v4749_v47 = vld [vmem:[%s9217_s5 + $0x10] sm:$0xf] }
 0x208   :  { %v954_v33 = vpop.f32.mrf.mxu0 }
 0x209   :  { %v955_v26 = vadd.f32 %v954_v33, %v866_v28  ;;  %1948 = vmatpush.bf16.msra.mxu1 %v4782_v0  ;;  %v5008_v28 = vld [vmem:[%s9217_s5 + $0x34] sm:$0xf0]  ;;  %v9248_v33 = vld [vmem:[#allocation5_spill] sm:$0xff] }
 0x20a   :  { %v4766_v29 = vor.u32 %v5008_v28, %v4765_v14  ;;  %v5004_v14 = vld [vmem:[%s9217_s5 + $0x14] sm:$0xf0] }
 0x20b   :  { %v1029_v22 = vmax.f32 %v955_v26, 0.0  ;;  %v9249_v26 = vld [vmem:[#allocation6_spill] sm:$0xff] }
 0x20c   :  { %v870_v8 = vpop.f32.mrf.mxu2 }
 0x20d   :  { %v6647_v44 = vpack.c.bf16 %v1029_v22, %v1027_v7  ;;  %1949 = vmatpush.bf16.msra.mxu1 %v4774_v45  ;;  %v6666_v7 = vpop.f32.mrf.mxu3  ;;  %v4757_v22 = vld [vmem:[%s9217_s5 + $0x20] sm:$0xf]  ;;  %v871_v41 = vadd.f32 %v870_v8, %v782_v57 }
 0x20e   :  { %v4758_v61 = vor.u32 %v5006_v51, %v4757_v22  ;;  %v4741_v8 = vld [vmem:[%s9217_s5] sm:$0xf] }
 0x20f   :  { %1423 = vmatmul.bf16.gmra.mxu3 %v6647_v44 }
 0x210   :  { %v957_v40 = vpop.f32.mrf.mxu0 }
 0x211   :  { %1482 = vmatmul.bf16.vlgmr.msra.gmra.mxu2 %v9248_v33  ;;  %1950 = vmatpush.bf16.msra.mxu1 %v4766_v29  ;;  %v958_v48 = vadd.f32 %v957_v40, %v869_v59  ;;  %v4750_v33 = vor.u32 %v5004_v14, %v4749_v47  ;;  %v6680_v29 = vpop.f32.mrf.mxu1  ;;  %v5002_v40 = vld [vmem:[%s9217_s5 + $0x4] sm:$0xf0] }
 0x212   :  { %v4742_v59 = vor.u32 %v5002_v40, %v4741_v8  ;;  %v5029_v40 = vld [vmem:[%s9217_s5 + $0xe4] sm:$0xf] }
 0x213   :  { %4610 = vmatmul.msk.bf16.gmra.mxu0 %vm412_vm1, %v9249_v26  ;;  %v1031_v26 = vmax.f32 %v958_v48, 0.0  ;;  %v4791_v48 = vld [vmem:[%s9217_s5 + $0x68] sm:$0xf0] }
 0x214   :  { %v873_v0 = vpop.f32.mrf.mxu2  ;;  %1379 = vmatmul.bf16.gmra.mxu1 %v6460_v11 }
 0x215   :  { %1951 = vmatpush.bf16.msra.mxu1 %v4758_v61  ;;  %v6690_v51 = vpop.f32.mrf.mxu3  ;;  %v785_v61 = vadd.f32 %v6443_v60, %v6447_v32  ;;  %v5030_v60 = vld [vmem:[%s9217_s5 + $0xe4] sm:$0xf0] }
 0x218   :  { %v959_v45 = vpop.f32.mrf.mxu0 }
 0x219   :  { %v960_v28 = vadd.f32 %v959_v45, %v871_v41  ;;  %1952 = vmatpush.bf16.msra.mxu1 %v4750_v33  ;;  %v5013_v41 = vld [vmem:[%s9217_s5 + $0x64] sm:$0xf]  ;;  %v874_v33 = vadd.f32 %v873_v0, %v785_v61  ;;  %v6711_v8 = vpop.f32.mrf.mxu1 }
 0x21a   :  { %v4794_v47 = vor.u32 %v5013_v41, %v4791_v48 }
 0x21b   :  { %v1033_v11 = vmax.f32 %v960_v28, 0.0  ;;  %v787_v28 = vadd.f32 %v6449_v54, %v6447_v32 }
 0x21c   :  { %v875_v22 = vpop.f32.mrf.mxu2  ;;  %2125 = vmatpush.bf16.msrb.mxu2 %v4794_v47 }
 0x21d   :  { %v6688_v57 = vpack.c.bf16 %v1033_v11, %v1031_v26  ;;  %v4853_v11 = vld [vmem:[%s9217_s5 + $0xe0] sm:$0xf]  ;;  %1953 = vmatpush.bf16.msra.mxu1 %v4742_v59  ;;  %v876_v41 = vadd.f32 %v875_v22, %v787_v28  ;;  %v6719_v54 = vpop.f32.mrf.mxu3 }
 0x21e   :  { %v4854_v14 = vor.u32 %v5030_v60, %v4853_v11  ;;  %v6731_v22 = vld [vmem:[%s9216_s4] sm:$0x3] }
 0x21f   :  { %1428 = vmatmul.bf16.gmra.mxu3 %v6688_v57 }
 0x220   :  { %v962_v45 = vpop.f32.mrf.mxu0  ;;  %2036 = vmatpush.bf16.msra.mxu3 %v4854_v14  ;;  %v790_v14 = vadd.f32 %v6473_v43, %v6447_v32 }
 0x221   :  { %1487 = vmatmul.bf16.gmra.mxu2 %v6018_v58  ;;  %v4855_v58 = vld [vmem:[%s9217_s5 + $0xe8] sm:$0xf0]  ;;  %v963_v48 = vadd.f32 %v962_v45, %v874_v33  ;;  %v6725_v19 = vpop.f32.mrf.mxu1  ;;  %v6735_v33 = vperm.slane %v6731_v22, 0 }
 0x222   :  { %v4858_v59 = vor.u32 %v5029_v40, %v4855_v58  ;;  %v792_v40 = vadd.f32 %v6482_v6, %v6447_v32 }
 0x223   :  { %1571 = vmatmul.bf16.vlgmr.msra.gmra.mxu0 %v6477_v4  ;;  %v1035_v0 = vmax.f32 %v963_v48, 0.0 }
 0x224   :  { %v878_v26 = vpop.f32.mrf.mxu2  ;;  %2214 = vmatpush.bf16.msrb.mxu0 %v4858_v59  ;;  %v1306_v59 = vadd.f32 %v6475_v13, %v6735_v33  ;;  %v5011_v13 = vld [vmem:[%s9217_s5 + $0x54] sm:$0xf] }
 0x225   :  { %v879_v43 = vadd.f32 %v878_v26, %v790_v14 }
 0x228   :  { %v964_v11 = vpop.f32.mrf.mxu0 }
 0x229   :  { %v965_v4 = vadd.f32 %v964_v11, %v876_v41 }
 0x22b   :  { %v1037_v61 = vmax.f32 %v965_v4, 0.0  ;;  %v6744_v4 = vpop.f32.mrf.mxu1 }
 0x22c   :  { %v880_v47 = vpop.f32.mrf.mxu2 }
 0x22d   :  { %v6721_v60 = vpack.c.bf16 %v1037_v61, %v1035_v0  ;;  %v881_v41 = vadd.f32 %v880_v47, %v792_v40 }
 0x22f   :  { %1433 = vmatmul.bf16.gmra.mxu3 %v6721_v60 }
 0x230   :  { %v967_v45 = vpop.f32.mrf.mxu0 }
 0x231   :  { %1492 = vmatmul.bf16.gmra.mxu2 %v6051_v23  ;;  %v968_v48 = vadd.f32 %v967_v45, %v879_v43  ;;  %v1308_v23 = vadd.f32 %v6490_v20, %v6735_v33  ;;  %v4783_v20 = vld [vmem:[%s9217_s5 + $0x58] sm:$0xf0]  ;;  %v4845_v45 = vld [vmem:[%s9217_s5 + $0xd0] sm:$0xf] }
 0x232   :  { %v1394_v28 = vpop.f32.mrf.mxu3  ;;  %v4786_v47 = vor.u32 %v5011_v13, %v4783_v20 }
 0x233   :  { %1576 = vmatmul.bf16.gmra.mxu0 %v6494_v27  ;;  %v1395_v0 = vadd.f32 %v1394_v28, %v1306_v59  ;;  %v1039_v9 = vmax.f32 %v968_v48, 0.0  ;;  %v6769_v48 = vpop.f32.mrf.mxu1 }
 0x234   :  { %v883_v58 = vpop.f32.mrf.mxu2  ;;  %2126 = vmatpush.bf16.msrb.mxu2 %v4786_v47 }
 0x235   :  { %v1652_v27 = vmax.f32 %v1395_v0, 0.0  ;;  %v1311_v0 = vadd.f32 %v6505_v31, %v6735_v33  ;;  %v800_v31 = vadd.f32 %v6525_v35, %v6447_v32  ;;  %v1316_v35 = vadd.f32 %v6536_v50, %v6735_v33  ;;  %v5009_v50 = vld [vmem:[%s9217_s5 + $0x44] sm:$0xf] }
 0x238   :  { %v969_v11 = vpop.f32.mrf.mxu0 }
 0x239   :  { %v970_v61 = vadd.f32 %v969_v11, %v881_v41  ;;  %v797_v41 = vadd.f32 %v6513_v2, %v6447_v32 }
 0x23a   :  { %v1396_v42 = vpop.f32.mrf.mxu3 }
 0x23b   :  { %v1041_v6 = vmax.f32 %v970_v61, 0.0  ;;  %v1397_v26 = vadd.f32 %v1396_v42, %v1308_v23  ;;  %v5028_v42 = vld [vmem:[%s9217_s5 + $0xd4] sm:$0xf0] }
 0x23c   :  { %v885_v14 = vpop.f32.mrf.mxu2  ;;  %v4846_v40 = vor.u32 %v5028_v42, %v4845_v45  ;;  %v6782_v42 = vpop.f32.mrf.mxu1 }
 0x23d   :  { %v1654_v25 = vmax.f32 %v1397_v26, 0.0  ;;  %v6746_v46 = vpack.c.bf16 %v1041_v6, %v1039_v9  ;;  %v795_v9 = vadd.f32 %v6492_v34, %v6447_v32  ;;  %v5027_v34 = vld [vmem:[%s9217_s5 + $0xd4] sm:$0xf]  ;;  %v886_v61 = vadd.f32 %v885_v14, %v797_v41 }
 0x23e   :  { %2037 = vmatpush.bf16.msra.mxu3 %v4846_v40 }
 0x23f   :  { %v6762_v28 = vpack.c.bf16 %v1654_v25, %v1652_v27  ;;  %1438 = vmatmul.bf16.gmra.mxu3 %v6746_v46  ;;  %v884_v11 = vadd.f32 %v883_v58, %v795_v9 }
 0x240   :  { %v972_v43 = vpop.f32.mrf.mxu0 }
 0x241   :  { %1497 = vmatmul.bf16.gmra.mxu2 %v6090_v30  ;;  %1954 = vmatmul.bf16.vlgmr.msra.gmra.mxu1 %v6762_v28  ;;  %v4847_v30 = vld [vmem:[%s9217_s5 + $0xd8] sm:$0xf0]  ;;  %v973_v2 = vadd.f32 %v972_v43, %v884_v11 }
 0x242   :  { %v1399_v59 = vpop.f32.mrf.mxu3  ;;  %v4850_v23 = vor.u32 %v5027_v34, %v4847_v30 }
 0x243   :  { %1581 = vmatmul.bf16.gmra.mxu0 %v6523_v17  ;;  %v1313_v17 = vadd.f32 %v6521_v53, %v6735_v33  ;;  %v1400_v58 = vadd.f32 %v1399_v59, %v1311_v0  ;;  %v1043_v13 = vmax.f32 %v973_v2, 0.0  ;;  %v802_v59 = vadd.f32 %v6538_v55, %v6447_v32 }
 0x244   :  { %v888_v25 = vpop.f32.mrf.mxu2  ;;  %2215 = vmatpush.bf16.msrb.mxu0 %v4850_v23  ;;  %v6798_v30 = vpop.f32.mrf.mxu1 }
 0x245   :  { %v1656_v9 = vmax.f32 %v1400_v58, 0.0  ;;  %v889_v41 = vadd.f32 %v888_v25, %v800_v31 }
 0x248   :  { %v974_v6 = vpop.f32.mrf.mxu0 }
 0x249   :  { %v975_v26 = vadd.f32 %v974_v6, %v886_v61 }
 0x24a   :  { %v1401_v27 = vpop.f32.mrf.mxu3 }
 0x24b   :  { %v1045_v20 = vmax.f32 %v975_v26, 0.0  ;;  %v1402_v47 = vadd.f32 %v1401_v27, %v1313_v17 }
 0x24c   :  { %v890_v45 = vpop.f32.mrf.mxu2 }
 0x24d   :  { %v1658_v40 = vmax.f32 %v1402_v47, 0.0  ;;  %v6784_v34 = vpack.c.bf16 %v1045_v20, %v1043_v13  ;;  %v891_v23 = vadd.f32 %v890_v45, %v802_v59  ;;  %v4775_v20 = vld [vmem:[%s9217_s5 + $0x48] sm:$0xf0]  ;;  %v4837_v47 = vld [vmem:[%s9217_s5 + $0xc0] sm:$0xf] }
 0x24e   :  { %v5026_v45 = vld [vmem:[%s9217_s5 + $0xc4] sm:$0xf0] }
 0x24f   :  { %1443 = vmatmul.bf16.gmra.mxu3 %v6784_v34  ;;  %v6789_v14 = vpack.c.bf16 %v1658_v40, %v1656_v9  ;;  %v805_v9 = vadd.f32 %v6554_v37, %v6447_v32  ;;  %v4838_v31 = vor.u32 %v5026_v45, %v4837_v47  ;;  %v9250_v47 = vld [vmem:[#allocation7_spill] sm:$0xff] }
 0x250   :  { %v977_v53 = vpop.f32.mrf.mxu0 }
 0x251   :  { %1502 = vmatmul.bf16.gmra.mxu2 %v6147_v49  ;;  %1959 = vmatmul.bf16.gmra.mxu1 %v6789_v14  ;;  %v978_v0 = vadd.f32 %v977_v53, %v889_v41  ;;  %v1318_v49 = vadd.f32 %v6550_v15, %v6735_v33  ;;  %v4778_v15 = vor.u32 %v5009_v50, %v4775_v20 }
 0x252   :  { %v1404_v43 = vpop.f32.mrf.mxu3  ;;  %2038 = vmatpush.bf16.msra.mxu3 %v4838_v31  ;;  %v807_v41 = vadd.f32 %v6569_v39, %v6447_v32  ;;  %v1323_v39 = vadd.f32 %v6579_v52, %v6735_v33 }
 0x253   :  { %1586 = vmatmul.bf16.gmra.mxu0 %v6540_v5  ;;  %v1405_v2 = vadd.f32 %v1404_v43, %v1316_v35  ;;  %v1047_v58 = vmax.f32 %v978_v0, 0.0  ;;  %2127 = vmatpush.bf16.msrb.mxu2 %v4778_v15  ;;  %v6821_v43 = vpop.f32.mrf.mxu1  ;;  %v4839_v0 = vld [vmem:[%s9217_s5 + $0xc8] sm:$0xf0] }
 0x254   :  { %v893_v11 = vpop.f32.mrf.mxu2 }
 0x255   :  { %v1660_v5 = vmax.f32 %v1405_v2, 0.0  ;;  %v894_v35 = vadd.f32 %v893_v11, %v805_v9  ;;  %v812_v9 = vadd.f32 %v6605_v63, %v6447_v32 }
 0x258   :  { %v979_v61 = vpop.f32.mrf.mxu0 }
 0x259   :  { %v980_v6 = vadd.f32 %v979_v61, %v891_v23  ;;  %v5025_v23 = vld [vmem:[%s9217_s5 + $0xc4] sm:$0xf]  ;;  %v1321_v61 = vadd.f32 %v6567_v1, %v6735_v33  ;;  %v810_v1 = vadd.f32 %v6584_v36, %v6447_v32  ;;  %v1326_v36 = vadd.f32 %v6586_v16, %v6735_v33  ;;  %v5007_v16 = vld [vmem:[%s9217_s5 + $0x34] sm:$0xf] }
 0x25a   :  { %v1406_v17 = vpop.f32.mrf.mxu3 }
 0x25b   :  { %v1049_v55 = vmax.f32 %v980_v6, 0.0  ;;  %v1407_v25 = vadd.f32 %v1406_v17, %v1318_v49 }
 0x25c   :  { %v895_v26 = vpop.f32.mrf.mxu2 }
 0x25d   :  { %v1662_v27 = vmax.f32 %v1407_v25, 0.0  ;;  %v6802_v13 = vpack.c.bf16 %v1049_v55, %v1047_v58  ;;  %v896_v49 = vadd.f32 %v895_v26, %v807_v41  ;;  %v6838_v58 = vpop.f32.mrf.mxu1 }
 0x25f   :  { %1448 = vmatmul.bf16.gmra.mxu3 %v6802_v13  ;;  %v6819_v40 = vpack.c.bf16 %v1662_v27, %v1660_v5 }
 0x260   :  { %v982_v53 = vpop.f32.mrf.mxu0 }
 0x261   :  { %1507 = vmatmul.bf16.gmra.mxu2 %v6216_v18  ;;  %1964 = vmatmul.bf16.gmra.mxu1 %v6819_v40  ;;  %v4842_v18 = vor.u32 %v5025_v23, %v4839_v0  ;;  %v983_v2 = vadd.f32 %v982_v53, %v894_v35  ;;  %v1328_v0 = vadd.f32 %v6631_v10, %v6735_v33 }
 0x262   :  { %v1409_v59 = vpop.f32.mrf.mxu3 }
 0x263   :  { %1591 = vmatmul.bf16.gmra.mxu0 %v6571_v21  ;;  %v1410_v21 = vadd.f32 %v1409_v59, %v1321_v61  ;;  %v1051_v55 = vmax.f32 %v983_v2, 0.0 }
 0x264   :  { %v898_v37 = vpop.f32.mrf.mxu2  ;;  %2216 = vmatpush.bf16.msrb.mxu0 %v4842_v18 }
 0x265   :  { %v1664_v50 = vmax.f32 %v1410_v21, 0.0  ;;  %v899_v31 = vadd.f32 %v898_v37, %v810_v1  ;;  %v6852_v59 = vpop.f32.mrf.mxu1 }
 0x268   :  { %v984_v6 = vpop.f32.mrf.mxu0 }
 0x269   :  { %v985_v11 = vadd.f32 %v984_v6, %v896_v49 }
 0x26a   :  { %v1411_v17 = vpop.f32.mrf.mxu3 }
 0x26b   :  { %v1053_v25 = vmax.f32 %v985_v11, 0.0  ;;  %v1412_v5 = vadd.f32 %v1411_v17, %v1323_v39  ;;  %v4767_v11 = vld [vmem:[%s9217_s5 + $0x38] sm:$0xf0]  ;;  %v4829_v17 = vld [vmem:[%s9217_s5 + $0xb0] sm:$0xf] }
 0x26c   :  { %v900_v27 = vpop.f32.mrf.mxu2  ;;  %v4770_v10 = vor.u32 %v5007_v16, %v4767_v11 }
 0x26d   :  { %v1666_v20 = vmax.f32 %v1412_v5, 0.0  ;;  %v6840_v15 = vpack.c.bf16 %v1053_v25, %v1051_v55  ;;  %v901_v41 = vadd.f32 %v900_v27, %v812_v9  ;;  %v5024_v55 = vld [vmem:[%s9217_s5 + $0xb4] sm:$0xf0]  ;;  %v815_v25 = vadd.f32 %v6639_v3, %v6447_v32  ;;  %v6874_v5 = vpop.f32.mrf.mxu1  ;;  %v5022_v3 = vld [vmem:[%s9217_s5 + $0xa4] sm:$0xf0] }
 0x26e   :  { %2128 = vmatpush.bf16.msrb.mxu2 %v4770_v10 }
 0x26f   :  { %1453 = vmatmul.bf16.gmra.mxu3 %v6840_v15  ;;  %v6845_v26 = vpack.c.bf16 %v1666_v20, %v1664_v50  ;;  %v4830_v50 = vor.u32 %v5024_v55, %v4829_v17 }
 0x270   :  { %v987_v52 = vpop.f32.mrf.mxu0 }
 0x271   :  { %1512 = vmatmul.bf16.gmra.mxu2 %v9250_v47  ;;  %1969 = vmatmul.bf16.gmra.mxu1 %v6845_v26  ;;  %v988_v35 = vadd.f32 %v987_v52, %v899_v31  ;;  %v4821_v52 = vld [vmem:[%s9217_s5 + $0xa0] sm:$0xf]  ;;  %v817_v47 = vadd.f32 %v6666_v7, %v6447_v32  ;;  %v5023_v31 = vld [vmem:[%s9217_s5 + $0xb4] sm:$0xf]  ;;  %v1331_v7 = vadd.f32 %v6658_v12, %v6735_v33  ;;  %v5018_v12 = vld [vmem:[%s9217_s5 + $0x84] sm:$0xf0] }
 0x272   :  { %v1414_v45 = vpop.f32.mrf.mxu3  ;;  %2039 = vmatpush.bf16.msra.mxu3 %v4830_v50  ;;  %v4822_v9 = vor.u32 %v5022_v3, %v4821_v52  ;;  %v822_v52 = vadd.f32 %v6719_v54, %v6447_v32 }
 0x273   :  { %1596 = vmatmul.bf16.gmra.mxu0 %v6588_v38  ;;  %v1415_v18 = vadd.f32 %v1414_v45, %v1326_v36  ;;  %v1055_v2 = vmax.f32 %v988_v35, 0.0  ;;  %v4831_v36 = vld [vmem:[%s9217_s5 + $0xb8] sm:$0xf0]  ;;  %v4813_v35 = vld [vmem:[%s9217_s5 + $0x90] sm:$0xf] }
 0x274   :  { %v903_v53 = vpop.f32.mrf.mxu2 }
 0x275   :  { %v1668_v38 = vmax.f32 %v1415_v18, 0.0  ;;  %v904_v45 = vadd.f32 %v903_v53, %v815_v25  ;;  %v820_v25 = vadd.f32 %v6690_v51, %v6447_v32  ;;  %v1336_v51 = vadd.f32 %v6711_v8, %v6735_v33  ;;  %v5005_v8 = vld [vmem:[%s9217_s5 + $0x24] sm:$0xf] }
 0x276   :  { %2040 = vmatpush.bf16.msra.mxu3 %v4822_v9 }
 0x278   :  { %v989_v23 = vpop.f32.mrf.mxu0 }
 0x279   :  { %v990_v61 = vadd.f32 %v989_v23, %v901_v41  ;;  %v4834_v41 = vor.u32 %v5023_v31, %v4831_v36 }
 0x27a   :  { %v1416_v49 = vpop.f32.mrf.mxu3 }
 0x27b   :  { %v1057_v63 = vmax.f32 %v990_v61, 0.0  ;;  %v1417_v37 = vadd.f32 %v1416_v49, %v1328_v0  ;;  %2217 = vmatpush.bf16.msrb.mxu0 %v4834_v41  ;;  %v1333_v61 = vadd.f32 %v6680_v29, %v6735_v33  ;;  %v6906_v49 = vpop.f32.mrf.mxu1 }
 0x27c   :  { %v905_v6 = vpop.f32.mrf.mxu2 }
 0x27d   :  { %v1670_v39 = vmax.f32 %v1417_v37, 0.0  ;;  %v6858_v21 = vpack.c.bf16 %v1057_v63, %v1055_v2  ;;  %v906_v53 = vadd.f32 %v905_v6, %v817_v47 }
 0x27f   :  { %1458 = vmatmul.bf16.gmra.mxu3 %v6858_v21  ;;  %v6877_v27 = vpack.c.bf16 %v1670_v39, %v1668_v38  ;;  %v4805_v38 = vld [vmem:[%s9217_s5 + $0x80] sm:$0xf] }
 0x280   :  { %v992_v20 = vpop.f32.mrf.mxu0  ;;  %v4806_v11 = vor.u32 %v5018_v12, %v4805_v38 }
 0x281   :  { %1517 = vmatmul.bf16.gmra.mxu2 %v6270_v62  ;;  %1974 = vmatmul.bf16.gmra.mxu1 %v6877_v27  ;;  %v993_v23 = vadd.f32 %v992_v20, %v904_v45 }
 0x282   :  { %v1419_v1 = vpop.f32.mrf.mxu3 }
 0x283   :  { %1601 = vmatmul.bf16.gmra.mxu0 %v6647_v44  ;;  %v5020_v44 = vld [vmem:[%s9217_s5 + $0x94] sm:$0xf0]  ;;  %v1420_v2 = vadd.f32 %v1419_v1, %v1331_v7  ;;  %v1059_v6 = vmax.f32 %v993_v23, 0.0  ;;  %v6925_v3 = vpop.f32.mrf.mxu1 }
 0x284   :  { %v908_v62 = vpop.f32.mrf.mxu2  ;;  %v4814_v0 = vor.u32 %v5020_v44, %v4813_v35 }
 0x285   :  { %v1672_v29 = vmax.f32 %v1420_v2, 0.0  ;;  %v909_v47 = vadd.f32 %v908_v62, %v820_v25 }
 0x286   :  { %2041 = vmatpush.bf16.msra.mxu3 %v4814_v0 }
 0x288   :  { %v994_v18 = vpop.f32.mrf.mxu0 }
 0x289   :  { %v995_v63 = vadd.f32 %v994_v18, %v906_v53 }
 0x28a   :  { %v1421_v37 = vpop.f32.mrf.mxu3  ;;  %2042 = vmatpush.bf16.msra.mxu3 %v4806_v11 }
 0x28b   :  { %v1061_v39 = vmax.f32 %v995_v63, 0.0  ;;  %v1422_v16 = vadd.f32 %v1421_v37, %v1333_v61  ;;  %v6932_v62 = vpop.f32.mrf.mxu1  ;;  %v6946_v63 = vperm.slane %v6731_v22, 1 }
 0x28c   :  { %v910_v10 = vpop.f32.mrf.mxu2 }
 0x28d   :  { %v1674_v17 = vmax.f32 %v1422_v16, 0.0  ;;  %v6914_v55 = vpack.c.bf16 %v1061_v39, %v1059_v6  ;;  %v911_v9 = vadd.f32 %v910_v10, %v822_v52  ;;  %v5021_v6 = vld [vmem:[%s9217_s5 + $0xa4] sm:$0xf]  ;;  %v4823_v39 = vld [vmem:[%s9217_s5 + $0xa8] sm:$0xf0] }
 0x28e   :  { %v4826_v22 = vor.u32 %v5021_v6, %v4823_v39 }
 0x28f   :  { %1463 = vmatmul.bf16.gmra.mxu3 %v6914_v55  ;;  %v6919_v50 = vpack.c.bf16 %v1674_v17, %v1672_v29  ;;  %v1343_v29 = vadd.f32 %v6769_v48, %v6735_v33 }
 0x290   :  { %v997_v20 = vpop.f32.mrf.mxu0  ;;  %2218 = vmatpush.bf16.msrb.mxu0 %v4826_v22 }
 0x291   :  { %1522 = vmatmul.bf16.gmra.mxu2 %v6289_v24  ;;  %1979 = vmatmul.bf16.gmra.mxu1 %v6919_v50  ;;  %v998_v31 = vadd.f32 %v997_v20, %v909_v47  ;;  %v1338_v24 = vadd.f32 %v6725_v19, %v6735_v33  ;;  %v4759_v19 = vld [vmem:[%s9217_s5 + $0x28] sm:$0xf0] }
 0x292   :  { %v1424_v1 = vpop.f32.mrf.mxu3  ;;  %v4762_v18 = vor.u32 %v5005_v8, %v4759_v19 }
 0x293   :  { %1606 = vmatmul.bf16.gmra.mxu0 %v6688_v57  ;;  %v1425_v41 = vadd.f32 %v1424_v1, %v1336_v51  ;;  %v1063_v7 = vmax.f32 %v998_v31, 0.0  ;;  %v6960_v16 = vpop.f32.mrf.mxu1 }
 0x294   :  { %v1483_v45 = vpop.f32.mrf.mxu2  ;;  %2129 = vmatpush.bf16.msrb.mxu2 %v4762_v18 }
 0x295   :  { %v1676_v57 = vmax.f32 %v1425_v41, 0.0  ;;  %v1484_v12 = vadd.f32 %v1483_v45, %v6946_v63  ;;  %v9251_v41 = vld [vmem:[#allocation8_spill] sm:$0xff] }
 0x298   :  { %v999_v36 = vpop.f32.mrf.mxu0 }
 0x299   :  { %v1000_v35 = vadd.f32 %v999_v36, %v911_v9 }
 0x29a   :  { %v1426_v44 = vpop.f32.mrf.mxu3 }
 0x29b   :  { %v1065_v32 = vmax.f32 %v1000_v35, 0.0  ;;  %v1427_v54 = vadd.f32 %v1426_v44, %v1338_v24  ;;  %v6970_v24 = vpop.f32.mrf.mxu1 }
 0x29c   :  { %v1485_v53 = vpop.f32.mrf.mxu2 }
 0x29d   :  { %v1678_v23 = vmax.f32 %v1427_v54, 0.0  ;;  %v6934_v0 = vpack.c.bf16 %v1065_v32, %v1063_v7  ;;  %v1486_v11 = vadd.f32 %v1485_v53, %v6946_v63  ;;  %v1346_v7 = vadd.f32 %v6782_v42, %v6735_v33  ;;  %v5003_v42 = vld [vmem:[%s9217_s5 + $0x14] sm:$0xf] }
 0x29f   :  { %1468 = vmatmul.bf16.gmra.mxu3 %v6934_v0  ;;  %v6943_v61 = vpack.c.bf16 %v1678_v23, %v1676_v57  ;;  %v1348_v57 = vadd.f32 %v6798_v30, %v6735_v33  ;;  %v4751_v30 = vld [vmem:[%s9217_s5 + $0x18] sm:$0xf0] }
 0x2a0   :  { %v1572_v2 = vpop.f32.mrf.mxu0  ;;  %v4754_v22 = vor.u32 %v5003_v42, %v4751_v30  ;;  %v1358_v42 = vadd.f32 %v6874_v5, %v6735_v33  ;;  %v4743_v5 = vld [vmem:[%s9217_s5 + $0x8] sm:$0xf0] }
 0x2a1   :  { %1527 = vmatmul.bf16.gmra.mxu2 %v6314_v56  ;;  %1984 = vmatmul.bf16.gmra.mxu1 %v6943_v61  ;;  %v1341_v56 = vadd.f32 %v6744_v4, %v6735_v33 }
 0x2a2   :  { %v1429_v37 = vpop.f32.mrf.mxu3  ;;  %2130 = vmatpush.bf16.msrb.mxu2 %v4754_v22 }
 0x2a3   :  { %1611 = vmatmul.bf16.gmra.mxu0 %v6721_v60  ;;  %v1573_v60 = vadd.f32 %v1572_v2, %v1484_v12  ;;  %v1430_v17 = vadd.f32 %v1429_v37, %v1341_v56  ;;  %v6981_v18 = vpop.f32.mrf.mxu1 }
 0x2a4   :  { %v1488_v38 = vpop.f32.mrf.mxu2 }
 0x2a5   :  { %v1653_v1 = vmax.f32 %v1573_v60, 0.0  ;;  %v1680_v51 = vmax.f32 %v1430_v17, 0.0  ;;  %v1489_v44 = vadd.f32 %v1488_v38, %v6946_v63  ;;  %v9252_v60 = vld [vmem:[#allocation9_spill] sm:$0xff] }
 0x2a8   :  { %v1574_v10 = vpop.f32.mrf.mxu0 }
 0x2a9   :  { %v1575_v25 = vadd.f32 %v1574_v10, %v1486_v11 }
 0x2aa   :  { %v1431_v20 = vpop.f32.mrf.mxu3 }
 0x2ab   :  { %v1655_v52 = vmax.f32 %v1575_v25, 0.0  ;;  %v1432_v47 = vadd.f32 %v1431_v20, %v1343_v29  ;;  %v6997_v17 = vpop.f32.mrf.mxu1  ;;  %v5019_v20 = vld [vmem:[%s9217_s5 + $0x94] sm:$0xf] }
 0x2ac   :  { %v1490_v45 = vpop.f32.mrf.mxu2 }
 0x2ad   :  { %v6965_v9 = vpack.c.bf16 %v1655_v52, %v1653_v1  ;;  %v1682_v4 = vmax.f32 %v1432_v47, 0.0  ;;  %v1491_v32 = vadd.f32 %v1490_v45, %v6946_v63  ;;  %v4815_v1 = vld [vmem:[%s9217_s5 + $0x98] sm:$0xf0]  ;;  %v1351_v47 = vadd.f32 %v6821_v43, %v6735_v33 }
 0x2ae   :  { %v4818_v52 = vor.u32 %v5019_v20, %v4815_v1 }
 0x2af   :  { %2043 = vmatmul.bf16.vlgmr.msra.gmra.mxu3 %v6965_v9  ;;  %v6968_v31 = vpack.c.bf16 %v1682_v4, %v1680_v51  ;;  %v1353_v4 = vadd.f32 %v6838_v58, %v6735_v33 }
 0x2b0   :  { %v1577_v36 = vpop.f32.mrf.mxu0  ;;  %2219 = vmatpush.bf16.msrb.mxu0 %v4818_v52 }
 0x2b1   :  { %1532 = vmatmul.bf16.gmra.mxu2 %v9251_v41  ;;  %1989 = vmatmul.bf16.gmra.mxu1 %v6968_v31  ;;  %v1578_v54 = vadd.f32 %v1577_v36, %v1489_v44 }
 0x2b2   :  { %v1434_v48 = vpop.f32.mrf.mxu3 }
 0x2b3   :  { %1616 = vmatmul.bf16.gmra.mxu0 %v6746_v46  ;;  %v1435_v23 = vadd.f32 %v1434_v48, %v1346_v7  ;;  %v1657_v2 = vmax.f32 %v1578_v54, 0.0  ;;  %v7013_v43 = vpop.f32.mrf.mxu1 }
 0x2b4   :  { %v1493_v35 = vpop.f32.mrf.mxu2 }
 0x2b5   :  { %v1684_v38 = vmax.f32 %v1435_v23, 0.0  ;;  %v1494_v25 = vadd.f32 %v1493_v35, %v6946_v63 }
 0x2b8   :  { %v1579_v53 = vpop.f32.mrf.mxu0 }
 0x2b9   :  { %v1580_v8 = vadd.f32 %v1579_v53, %v1491_v32 }
 0x2ba   :  { %v1436_v19 = vpop.f32.mrf.mxu3 }
 0x2bb   :  { %v1659_v46 = vmax.f32 %v1580_v8, 0.0  ;;  %v1437_v37 = vadd.f32 %v1436_v19, %v1348_v57  ;;  %v9253_v19 = vld [vmem:[#allocation10_spill] sm:$0xff]  ;;  %v7027_v30 = vpop.f32.mrf.mxu1 }
 0x2bc   :  { %v1495_v12 = vpop.f32.mrf.mxu2 }
 0x2bd   :  { %v1686_v6 = vmax.f32 %v1437_v37, 0.0  ;;  %v6983_v39 = vpack.c.bf16 %v1659_v46, %v1657_v2  ;;  %v1496_v45 = vadd.f32 %v1495_v12, %v6946_v63  ;;  %v1356_v37 = vadd.f32 %v6852_v59, %v6735_v33  ;;  %v5001_v59 = vld [vmem:[%s9217_s5 + $0x4] sm:$0xf] }
 0x2bf   :  { %2048 = vmatmul.bf16.gmra.mxu3 %v6983_v39  ;;  %v6992_v56 = vpack.c.bf16 %v1686_v6, %v1684_v38 }
 0x2c0   :  { %v1582_v11 = vpop.f32.mrf.mxu0 }
 0x2c1   :  { %1537 = vmatmul.bf16.gmra.mxu2 %v9252_v60  ;;  %1994 = vmatmul.bf16.gmra.mxu1 %v6992_v56 }
 0x2c2   :  { %v1439_v10 = vpop.f32.mrf.mxu3 }
 0x2c3   :  { %1621 = vmatmul.bf16.gmra.mxu0 %v6784_v34  ;;  %v1583_v34 = vadd.f32 %v1582_v11, %v1494_v25  ;;  %v1440_v36 = vadd.f32 %v1439_v10, %v1351_v47  ;;  %v4746_v47 = vor.u32 %v5001_v59, %v4743_v5 }
 0x2c4   :  { %v1498_v29 = vpop.f32.mrf.mxu2 }
 0x2c5   :  { %v1661_v35 = vmax.f32 %v1583_v34, 0.0  ;;  %v1688_v54 = vmax.f32 %v1440_v36, 0.0  ;;  %v1499_v46 = vadd.f32 %v1498_v29, %v6946_v63  ;;  %2131 = vmatpush.bf16.msrb.mxu2 %v4746_v47  ;;  %v7042_v36 = vpop.f32.mrf.mxu1  ;;  %v1368_v47 = vadd.f32 %v6960_v16, %v6735_v33 }
 0x2c8   :  { %v1584_v51 = vpop.f32.mrf.mxu0 }
 0x2c9   :  { %v1585_v41 = vadd.f32 %v1584_v51, %v1496_v45  ;;  %v9254_v51 = vld [vmem:[#allocation11_spill] sm:$0xff] }
 0x2ca   :  { %v1441_v48 = vpop.f32.mrf.mxu3 }
 0x2cb   :  { %v1663_v44 = vmax.f32 %v1585_v41, 0.0  ;;  %v1442_v7 = vadd.f32 %v1441_v48, %v1353_v4 }
 0x2cc   :  { %v1500_v32 = vpop.f32.mrf.mxu2 }
 0x2cd   :  { %v1690_v53 = vmax.f32 %v1442_v7, 0.0  ;;  %v7011_v57 = vpack.c.bf16 %v1663_v44, %v1661_v35  ;;  %v1501_v12 = vadd.f32 %v1500_v32, %v6946_v63  ;;  %v5017_v35 = vld [vmem:[%s9217_s5 + $0x84] sm:$0xf]  ;;  %v4807_v44 = vld [vmem:[%s9217_s5 + $0x88] sm:$0xf0]  ;;  %v1361_v32 = vadd.f32 %v6906_v49, %v6735_v33 }
 0x2ce   :  { %v4810_v7 = vor.u32 %v5017_v35, %v4807_v44 }
 0x2cf   :  { %2053 = vmatmul.bf16.gmra.mxu3 %v7011_v57  ;;  %v7016_v23 = vpack.c.bf16 %v1690_v53, %v1688_v54 }
 0x2d0   :  { %v1587_v8 = vpop.f32.mrf.mxu0  ;;  %2220 = vmatpush.bf16.msrb.mxu0 %v4810_v7 }
 0x2d1   :  { %1542 = vmatmul.bf16.gmra.mxu2 %v9253_v19  ;;  %1999 = vmatmul.bf16.gmra.mxu1 %v7016_v23  ;;  %v1588_v38 = vadd.f32 %v1587_v8, %v1499_v46  ;;  %v7057_v46 = vpop.f32.mrf.mxu1 }
 0x2d2   :  { %v1444_v58 = vpop.f32.mrf.mxu3 }
 0x2d3   :  { %1626 = vmatmul.bf16.gmra.mxu0 %v6802_v13  ;;  %v1445_v22 = vadd.f32 %v1444_v58, %v1356_v37  ;;  %v1665_v10 = vmax.f32 %v1588_v38, 0.0 }
 0x2d4   :  { %v1503_v2 = vpop.f32.mrf.mxu2 }
 0x2d5   :  { %v1692_v29 = vmax.f32 %v1445_v22, 0.0  ;;  %v1504_v48 = vadd.f32 %v1503_v2, %v6946_v63 }
 0x2d8   :  { %v1589_v6 = vpop.f32.mrf.mxu0 }
 0x2d9   :  { %v1590_v11 = vadd.f32 %v1589_v6, %v1501_v12 }
 0x2da   :  { %v1446_v60 = vpop.f32.mrf.mxu3 }
 0x2db   :  { %v1667_v13 = vmax.f32 %v1590_v11, 0.0  ;;  %v1447_v25 = vadd.f32 %v1446_v60, %v1358_v42 }
 0x2dc   :  { %v1505_v20 = vpop.f32.mrf.mxu2 }
 0x2dd   :  { %v1694_v1 = vmax.f32 %v1447_v25, 0.0  ;;  %v7029_v52 = vpack.c.bf16 %v1667_v13, %v1665_v10  ;;  %v1506_v54 = vadd.f32 %v1505_v20, %v6946_v63  ;;  %v9255_v10 = vld [vmem:[#allocation12_spill] sm:$0xff]  ;;  %v7067_v25 = vpop.f32.mrf.mxu1 }
 0x2df   :  { %2058 = vmatmul.bf16.gmra.mxu3 %v7029_v52  ;;  %v7038_v45 = vpack.c.bf16 %v1694_v1, %v1692_v29  ;;  %v1366_v29 = vadd.f32 %v6932_v62, %v6735_v33 }
 0x2e0   :  { %v1592_v34 = vpop.f32.mrf.mxu0 }
 0x2e1   :  { %1547 = vmatmul.bf16.gmra.mxu2 %v9254_v51  ;;  %2004 = vmatmul.bf16.gmra.mxu1 %v7038_v45  ;;  %v1593_v53 = vadd.f32 %v1592_v34, %v1504_v48 }
 0x2e2   :  { %v1449_v4 = vpop.f32.mrf.mxu3 }
 0x2e3   :  { %1631 = vmatmul.bf16.gmra.mxu0 %v6840_v15  ;;  %v1363_v15 = vadd.f32 %v6925_v3, %v6735_v33  ;;  %v1450_v19 = vadd.f32 %v1449_v4, %v1361_v32  ;;  %v1669_v37 = vmax.f32 %v1593_v53, 0.0 }
 0x2e4   :  { %v1508_v41 = vpop.f32.mrf.mxu2 }
 0x2e5   :  { %v1696_v42 = vmax.f32 %v1450_v19, 0.0  ;;  %v1509_v20 = vadd.f32 %v1508_v41, %v6946_v63 }
 0x2e8   :  { %v1594_v8 = vpop.f32.mrf.mxu0 }
 0x2e9   :  { %v1595_v58 = vadd.f32 %v1594_v8, %v1506_v54  ;;  %v7077_v54 = vpop.f32.mrf.mxu1  ;;  %v9256_v8 = vld [vmem:[#allocation13_spill] sm:$0xff] }
 0x2ea   :  { %v1451_v2 = vpop.f32.mrf.mxu3 }
 0x2eb   :  { %v1671_v12 = vmax.f32 %v1595_v58, 0.0  ;;  %v1452_v38 = vadd.f32 %v1451_v2, %v1363_v15  ;;  %v1371_v58 = vadd.f32 %v6970_v24, %v6735_v33 }
 0x2ec   :  { %v1510_v6 = vpop.f32.mrf.mxu2 }
 0x2ed   :  { %v1698_v22 = vmax.f32 %v1452_v38, 0.0  ;;  %v7059_v49 = vpack.c.bf16 %v1671_v12, %v1669_v37  ;;  %v1511_v1 = vadd.f32 %v1510_v6, %v6946_v63  ;;  %v1373_v38 = vadd.f32 %v6981_v18, %v6735_v33 }
 0x2ef   :  { %2063 = vmatmul.bf16.gmra.mxu3 %v7059_v49  ;;  %v7062_v11 = vpack.c.bf16 %v1698_v22, %v1696_v42 }
 0x2f0   :  { %v1597_v60 = vpop.f32.mrf.mxu0 }
 0x2f1   :  { %1552 = vmatmul.bf16.gmra.mxu2 %v9255_v10  ;;  %2009 = vmatmul.bf16.gmra.mxu1 %v7062_v11  ;;  %v1598_v59 = vadd.f32 %v1597_v60, %v1509_v20  ;;  %v7091_v6 = vpop.f32.mrf.mxu1 }
 0x2f2   :  { %v1454_v3 = vpop.f32.mrf.mxu3 }
 0x2f3   :  { %1636 = vmatmul.bf16.gmra.mxu0 %v6858_v21  ;;  %v1455_v34 = vadd.f32 %v1454_v3, %v1366_v29  ;;  %v1673_v48 = vmax.f32 %v1598_v59, 0.0 }
 0x2f4   :  { %v1513_v13 = vpop.f32.mrf.mxu2 }
 0x2f5   :  { %v1700_v7 = vmax.f32 %v1455_v34, 0.0  ;;  %v1514_v19 = vadd.f32 %v1513_v13, %v6946_v63 }
 0x2f8   :  { %v1599_v5 = vpop.f32.mrf.mxu0 }
 0x2f9   :  { %v1600_v51 = vadd.f32 %v1599_v5, %v1511_v1  ;;  %v7100_v5 = vpop.f32.mrf.mxu1 }
 0x2fa   :  { %v1456_v4 = vpop.f32.mrf.mxu3 }
 0x2fb   :  { %v1675_v21 = vmax.f32 %v1600_v51, 0.0  ;;  %v1457_v35 = vadd.f32 %v1456_v4, %v1368_v47  ;;  %v1376_v51 = vadd.f32 %v6997_v17, %v6735_v33 }
 0x2fc   :  { %v1515_v44 = vpop.f32.mrf.mxu2 }
 0x2fd   :  { %v1702_v32 = vmax.f32 %v1457_v35, 0.0  ;;  %v7075_v41 = vpack.c.bf16 %v1675_v21, %v1673_v48  ;;  %v1516_v2 = vadd.f32 %v1515_v44, %v6946_v63 }
 0x2ff   :  { %2068 = vmatmul.bf16.gmra.mxu3 %v7075_v41  ;;  %v7080_v62 = vpack.c.bf16 %v1702_v32, %v1700_v7 }
 0x300   :  { %v1602_v53 = vpop.f32.mrf.mxu0 }
 0x301   :  { %1557 = vmatmul.bf16.gmra.mxu2 %v9256_v8  ;;  %2014 = vmatmul.bf16.gmra.mxu1 %v7080_v62  ;;  %v1603_v37 = vadd.f32 %v1602_v53, %v1514_v19 }
 0x302   :  { %v1459_v16 = vpop.f32.mrf.mxu3 }
 0x303   :  { %1641 = vmatmul.bf16.gmra.mxu0 %v6914_v55  ;;  %v1460_v42 = vadd.f32 %v1459_v16, %v1371_v58  ;;  %v1677_v10 = vmax.f32 %v1603_v37, 0.0  ;;  %v7109_v16 = vpop.f32.mrf.mxu1 }
 0x304   :  { %v1518_v15 = vpop.f32.mrf.mxu2 }
 0x305   :  { %v1704_v13 = vmax.f32 %v1460_v42, 0.0  ;;  %v1519_v34 = vadd.f32 %v1518_v15, %v6946_v63 }
 0x308   :  { %v1604_v12 = vpop.f32.mrf.mxu0 }
 0x309   :  { %v1605_v22 = vadd.f32 %v1604_v12, %v1516_v2 }
 0x30a   :  { %v1461_v60 = vpop.f32.mrf.mxu3 }
 0x30b   :  { %v1679_v55 = vmax.f32 %v1605_v22, 0.0  ;;  %v1462_v3 = vadd.f32 %v1461_v60, %v1373_v38  ;;  %v1381_v38 = vadd.f32 %v7027_v30, %v6735_v33  ;;  %v7122_v42 = vpop.f32.mrf.mxu1 }
 0x30c   :  { %v1520_v20 = vpop.f32.mrf.mxu2 }
 0x30d   :  { %v1706_v29 = vmax.f32 %v1462_v3, 0.0  ;;  %v7093_v1 = vpack.c.bf16 %v1679_v55, %v1677_v10  ;;  %v1521_v4 = vadd.f32 %v1520_v20, %v6946_v63 }
 0x30f   :  { %2073 = vmatmul.bf16.gmra.mxu3 %v7093_v1  ;;  %v7096_v24 = vpack.c.bf16 %v1706_v29, %v1704_v13 }
 0x310   :  { %v1607_v59 = vpop.f32.mrf.mxu0 }
 0x311   :  { %2132 = vmatmul.bf16.vlgmr.msrb.gmra.mxu2 %v6762_v28  ;;  %2019 = vmatmul.bf16.gmra.mxu1 %v7096_v24  ;;  %v1608_v48 = vadd.f32 %v1607_v59, %v1519_v34  ;;  %v1378_v28 = vadd.f32 %v7013_v43, %v6735_v33 }
 0x312   :  { %v1464_v18 = vpop.f32.mrf.mxu3 }
 0x313   :  { %1646 = vmatmul.bf16.gmra.mxu0 %v6934_v0  ;;  %v1465_v35 = vadd.f32 %v1464_v18, %v1376_v51  ;;  %v1681_v32 = vmax.f32 %v1608_v48, 0.0 }
 0x314   :  { %v1523_v47 = vpop.f32.mrf.mxu2 }
 0x315   :  { %v1708_v15 = vmax.f32 %v1465_v35, 0.0  ;;  %v1524_v12 = vadd.f32 %v1523_v47, %v6946_v63 }
 0x318   :  { %v1609_v21 = vpop.f32.mrf.mxu0 }
 0x319   :  { %v1610_v44 = vadd.f32 %v1609_v21, %v1521_v4  ;;  %v7132_v4 = vpop.f32.mrf.mxu1 }
 0x31a   :  { %v1466_v7 = vpop.f32.mrf.mxu3 }
 0x31b   :  { %v1683_v53 = vmax.f32 %v1610_v44, 0.0  ;;  %v1467_v8 = vadd.f32 %v1466_v7, %v1378_v28 }
 0x31c   :  { %v1525_v0 = vpop.f32.mrf.mxu2 }
 0x31d   :  { %v1710_v19 = vmax.f32 %v1467_v8, 0.0  ;;  %v7111_v58 = vpack.c.bf16 %v1683_v53, %v1681_v32  ;;  %v1526_v22 = vadd.f32 %v1525_v0, %v6946_v63 }
 0x31f   :  { %2078 = vmatmul.bf16.gmra.mxu3 %v7111_v58  ;;  %v7114_v17 = vpack.c.bf16 %v1710_v19, %v1708_v15 }
 0x320   :  { %v1612_v2 = vpop.f32.mrf.mxu0 }
 0x321   :  { %2137 = vmatmul.bf16.gmra.mxu2 %v6789_v14  ;;  %2024 = vmatmul.bf16.gmra.mxu1 %v7114_v17  ;;  %v1613_v60 = vadd.f32 %v1612_v2, %v1524_v12  ;;  %v1383_v14 = vadd.f32 %v7042_v36, %v6735_v33 }
 0x322   :  { %v1469_v43 = vpop.f32.mrf.mxu3 }
 0x323   :  { %2221 = vmatmul.bf16.vlgmr.msrb.gmra.mxu0 %v6965_v9  ;;  %v1470_v55 = vadd.f32 %v1469_v43, %v1381_v38  ;;  %v1685_v13 = vmax.f32 %v1613_v60, 0.0 }
 0x324   :  { %v1528_v37 = vpop.f32.mrf.mxu2 }
 0x325   :  { %v1712_v18 = vmax.f32 %v1470_v55, 0.0  ;;  %v1529_v36 = vadd.f32 %v1528_v37, %v6946_v63 }
 0x328   :  { %v1614_v10 = vpop.f32.mrf.mxu0 }
 0x329   :  { %v1615_v3 = vadd.f32 %v1614_v10, %v1526_v22 }
 0x32a   :  { %v1471_v20 = vpop.f32.mrf.mxu3 }
 0x32b   :  { %v1687_v9 = vmax.f32 %v1615_v3, 0.0  ;;  %v1472_v29 = vadd.f32 %v1471_v20, %v1383_v14 }
 0x32c   :  { %v1530_v59 = vpop.f32.mrf.mxu2 }
 0x32d   :  { %v1714_v47 = vmax.f32 %v1472_v29, 0.0  ;;  %v7127_v34 = vpack.c.bf16 %v1687_v9, %v1685_v13  ;;  %v1531_v48 = vadd.f32 %v1530_v59, %v6946_v63 }
 0x32f   :  { %2083 = vmatmul.bf16.gmra.mxu3 %v7127_v34  ;;  %v7130_v30 = vpack.c.bf16 %v1714_v47, %v1712_v18 }
 0x330   :  { %v1617_v51 = vpop.f32.mrf.mxu0 }
 0x331   :  { %2142 = vmatmul.bf16.gmra.mxu2 %v6819_v40  ;;  %2029 = vmatmul.bf16.gmra.mxu1 %v7130_v30  ;;  %v1618_v21 = vadd.f32 %v1617_v51, %v1529_v36 }
 0x332   :  { %v7153_v55 = vpop.f32.mrf.mxu3 }
 0x333   :  { %2226 = vmatmul.bf16.gmra.mxu0 %v6983_v39  ;;  %v1689_v44 = vmax.f32 %v1618_v21, 0.0 }
 0x334   :  { %v1533_v33 = vpop.f32.mrf.mxu2 }
 0x335   :  { %v1534_v8 = vadd.f32 %v1533_v33, %v6946_v63 }
 0x338   :  { %v1619_v28 = vpop.f32.mrf.mxu0 }
 0x339   :  { %v1620_v35 = vadd.f32 %v1619_v28, %v1531_v48 }
 0x33b   :  { %v1691_v7 = vmax.f32 %v1620_v35, 0.0 }
 0x33c   :  { %v1535_v32 = vpop.f32.mrf.mxu2 }
 0x33d   :  { %v7139_v53 = vpack.c.bf16 %v1691_v7, %v1689_v44  ;;  %v1536_v0 = vadd.f32 %v1535_v32, %v6946_v63 }
 0x33f   :  { %2088 = vmatmul.bf16.gmra.mxu3 %v7139_v53 }
 0x340   :  { %v1622_v40 = vpop.f32.mrf.mxu0 }
 0x341   :  { %2147 = vmatmul.bf16.gmra.mxu2 %v6845_v26  ;;  %v1623_v15 = vadd.f32 %v1622_v40, %v1534_v8 }
 0x343   :  { %2231 = vmatmul.bf16.gmra.mxu0 %v7011_v57  ;;  %v1693_v43 = vmax.f32 %v1623_v15, 0.0 }
 0x344   :  { %v1538_v39 = vpop.f32.mrf.mxu2 }
 0x345   :  { %v1539_v57 = vadd.f32 %v1538_v39, %v6946_v63 }
 0x348   :  { %v1624_v19 = vpop.f32.mrf.mxu0 }
 0x349   :  { %v1625_v2 = vadd.f32 %v1624_v19, %v1536_v0 }
 0x34b   :  { %v1695_v37 = vmax.f32 %v1625_v2, 0.0 }
 0x34c   :  { %v1540_v12 = vpop.f32.mrf.mxu2 }
 0x34d   :  { %v7146_v38 = vpack.c.bf16 %v1695_v37, %v1693_v43  ;;  %v1541_v60 = vadd.f32 %v1540_v12, %v6946_v63 }
 0x34f   :  { %2093 = vmatmul.bf16.gmra.mxu3 %v7146_v38 }
 0x350   :  { %v1627_v22 = vpop.f32.mrf.mxu0 }
 0x351   :  { %2152 = vmatmul.bf16.gmra.mxu2 %v6877_v27  ;;  %v1628_v10 = vadd.f32 %v1627_v22, %v1539_v57 }
 0x353   :  { %2236 = vmatmul.bf16.gmra.mxu0 %v7029_v52  ;;  %v1697_v20 = vmax.f32 %v1628_v10, 0.0  ;;  %v7159_v52 = vpop.f32.mrf.mxu3 }
 0x354   :  { %v1543_v26 = vpop.f32.mrf.mxu2 }
 0x355   :  { %v1544_v18 = vadd.f32 %v1543_v26, %v6946_v63 }
 0x358   :  { %v1629_v14 = vpop.f32.mrf.mxu0 }
 0x359   :  { %v1630_v3 = vadd.f32 %v1629_v14, %v1541_v60 }
 0x35b   :  { %v1699_v13 = vmax.f32 %v1630_v3, 0.0  ;;  %v7164_v35 = vpop.f32.mrf.mxu3 }
 0x35c   :  { %v1545_v9 = vpop.f32.mrf.mxu2 }
 0x35d   :  { %v7155_v29 = vpack.c.bf16 %v1699_v13, %v1697_v20  ;;  %v1546_v47 = vadd.f32 %v1545_v9, %v6946_v63 }
 0x35f   :  { %2098 = vmatmul.bf16.gmra.mxu3 %v7155_v29 }
 0x360   :  { %v1632_v27 = vpop.f32.mrf.mxu0 }
 0x361   :  { %2157 = vmatmul.bf16.gmra.mxu2 %v6919_v50  ;;  %v1633_v51 = vadd.f32 %v1632_v27, %v1544_v18 }
 0x363   :  { %2241 = vmatmul.bf16.gmra.mxu0 %v7059_v49  ;;  %v1701_v48 = vmax.f32 %v1633_v51, 0.0  ;;  %v7172_v32 = vpop.f32.mrf.mxu3 }
 0x364   :  { %v1548_v59 = vpop.f32.mrf.mxu2 }
 0x365   :  { %v1549_v7 = vadd.f32 %v1548_v59, %v6946_v63 }
 0x368   :  { %v1634_v33 = vpop.f32.mrf.mxu0 }
 0x369   :  { %v1635_v36 = vadd.f32 %v1634_v33, %v1546_v47  ;;  %v1780_v47 = vld [vmem:[%s9218_s6] sm:$0x3] }
 0x36b   :  { %v1703_v21 = vmax.f32 %v1635_v36, 0.0  ;;  %v7178_v37 = vpop.f32.mrf.mxu3  ;;  %v7198_v36 = vperm.slane %v1780_v47, 0 }
 0x36c   :  { %v1550_v28 = vpop.f32.mrf.mxu2 }
 0x36d   :  { %v7166_v44 = vpack.c.bf16 %v1703_v21, %v1701_v48  ;;  %v1551_v40 = vadd.f32 %v1550_v28, %v6946_v63 }
 0x36f   :  { %2103 = vmatmul.bf16.gmra.mxu3 %v7166_v44 }
 0x370   :  { %v1637_v50 = vpop.f32.mrf.mxu0 }
 0x371   :  { %2162 = vmatmul.bf16.gmra.mxu2 %v6943_v61  ;;  %v1638_v39 = vadd.f32 %v1637_v50, %v1549_v7  ;;  %v1956_v50 = vadd.f32 %v7057_v46, %v7198_v36 }
 0x373   :  { %2246 = vmatmul.bf16.gmra.mxu0 %v7075_v41  ;;  %v1705_v15 = vmax.f32 %v1638_v39, 0.0  ;;  %v7184_v10 = vpop.f32.mrf.mxu3 }
 0x374   :  { %v1553_v49 = vpop.f32.mrf.mxu2 }
 0x375   :  { %v1554_v12 = vadd.f32 %v1553_v49, %v6946_v63 }
 0x378   :  { %v1639_v8 = vpop.f32.mrf.mxu0 }
 0x379   :  { %v1640_v0 = vadd.f32 %v1639_v8, %v1551_v40  ;;  %v7211_v40 = vadd.f32 %v7153_v55, %v1956_v50 }
 0x37b   :  { %v1707_v19 = vmax.f32 %v1640_v0, 0.0  ;;  %v7191_v9 = vpop.f32.mrf.mxu3  ;;  %v1958_v0 = vadd.f32 %v7067_v25, %v7198_v36 }
 0x37c   :  { %v1555_v2 = vpop.f32.mrf.mxu2 }
 0x37d   :  { %v7175_v43 = vpack.c.bf16 %v1707_v19, %v1705_v15  ;;  %v1556_v22 = vadd.f32 %v1555_v2, %v6946_v63  ;;  %v7223_v55 = vadd.f32 %v7159_v52, %v1958_v0 }
 0x37f   :  { %2108 = vmatmul.bf16.gmra.mxu3 %v7175_v43 }
 0x380   :  { %v1642_v61 = vpop.f32.mrf.mxu0 }
 0x381   :  { %2167 = vmatmul.bf16.gmra.mxu2 %v6968_v31  ;;  %v1643_v26 = vadd.f32 %v1642_v61, %v1554_v12  ;;  %v1961_v61 = vadd.f32 %v7077_v54, %v7198_v36  ;;  %v1963_v54 = vadd.f32 %v7091_v6, %v7198_v36 }
 0x383   :  { %2251 = vmatmul.bf16.gmra.mxu0 %v7093_v1  ;;  %v1709_v14 = vmax.f32 %v1643_v26, 0.0  ;;  %v7233_v25 = vadd.f32 %v7164_v35, %v1961_v61  ;;  %v7245_v35 = vadd.f32 %v7172_v32, %v1963_v54 }
 0x384   :  { %v1558_v41 = vpop.f32.mrf.mxu2 }
 0x385   :  { %v1559_v27 = vadd.f32 %v1558_v41, %v6946_v63 }
 0x388   :  { %v1644_v57 = vpop.f32.mrf.mxu0 }
 0x389   :  { %v1645_v60 = vadd.f32 %v1644_v57, %v1556_v22 }
 0x38b   :  { %v1711_v3 = vmax.f32 %v1645_v60, 0.0 }
 0x38c   :  { %v1560_v20 = vpop.f32.mrf.mxu2 }
 0x38d   :  { %v7186_v13 = vpack.c.bf16 %v1711_v3, %v1709_v14  ;;  %v1561_v59 = vadd.f32 %v1560_v20, %v6946_v63  ;;  %v7206_v63 = vpop.f32.mrf.mxu3  ;;  %v1966_v3 = vadd.f32 %v7100_v5, %v7198_v36 }
 0x38f   :  { %2113 = vmatmul.bf16.gmra.mxu3 %v7186_v13  ;;  %v7255_v6 = vadd.f32 %v7178_v37, %v1966_v3 }
 0x390   :  { %v1647_v31 = vpop.f32.mrf.mxu0 }
 0x391   :  { %2172 = vmatmul.bf16.gmra.mxu2 %v6992_v56  ;;  %v1648_v18 = vadd.f32 %v1647_v31, %v1559_v27  ;;  %v7200_v56 = vperm.slane %v1780_v47, 1  ;;  %v1968_v27 = vadd.f32 %v7109_v16, %v7198_v36 }
 0x393   :  { %2256 = vmatmul.bf16.gmra.mxu0 %v7111_v58  ;;  %v1713_v48 = vmax.f32 %v1648_v18, 0.0  ;;  %v7267_v37 = vadd.f32 %v7184_v10, %v1968_v27 }
 0x394   :  { %v2133_v1 = vpop.f32.mrf.mxu2 }
 0x395   :  { %v2134_v49 = vadd.f32 %v2133_v1, %v7200_v56 }
 0x398   :  { %v1649_v51 = vpop.f32.mrf.mxu0 }
 0x399   :  { %v1650_v33 = vadd.f32 %v1649_v51, %v1561_v59 }
 0x39b   :  { %v1715_v58 = vmax.f32 %v1650_v33, 0.0 }
 0x39c   :  { %v2135_v21 = vpop.f32.mrf.mxu2 }
 0x39d   :  { %v7202_v28 = vpack.c.bf16 %v1715_v58, %v1713_v48  ;;  %v2136_v15 = vadd.f32 %v2135_v21, %v7200_v56 }
 0x39f   :  { %2118 = vmatmul.bf16.gmra.mxu3 %v7202_v28 }
 0x3a0   :  { %v2222_v7 = vpop.f32.mrf.mxu0 }
 0x3a1   :  { %2177 = vmatmul.bf16.gmra.mxu2 %v7016_v23  ;;  %v7214_v39 = vadd.f32 %v2222_v7, %v2134_v49  ;;  %v1975_v7 = vpop.f32.mrf.mxu1 }
 0x3a3   :  { %2261 = vmatmul.bf16.gmra.mxu0 %v7127_v34  ;;  %v2302_v8 = vmax.f32 %v7211_v40, %v7214_v39 }
 0x3a4   :  { %v2138_v46 = vpop.f32.mrf.mxu2 }
 0x3a5   :  { %2303 = vmax.xlane.f32.xlu0 %v2302_v8  ;;  %v2139_v41 = vadd.f32 %v2138_v46, %v7200_v56  ;;  %v2064_v8 = vpop.f32.mrf.mxu3  ;;  %v1976_v46 = vadd.f32 %v1975_v7, %v7198_v36 }
 0x3a8   :  { %v2224_v19 = vpop.f32.mrf.mxu0 }
 0x3a9   :  { %v7225_v2 = vadd.f32 %v2224_v19, %v2136_v15  ;;  %v7297_v15 = vadd.f32 %v2064_v8, %v1976_v46 }
 0x3ab   :  { %v2305_v23 = vmax.f32 %v7223_v55, %v7225_v2 }
 0x3ac   :  { %v2140_v34 = vpop.f32.mrf.mxu2 }
 0x3ad   :  { %2306 = vmax.xlane.f32.xlu0 %v2305_v23  ;;  %v2141_v57 = vadd.f32 %v2140_v34, %v7200_v56  ;;  %v1977_v34 = vpop.f32.mrf.mxu1  ;;  %v2066_v61 = vpop.f32.mrf.mxu3 }
 0x3b0   :  { %v2227_v12 = vpop.f32.mrf.mxu0 }
 0x3b1   :  { %2182 = vmatmul.bf16.gmra.mxu2 %v7038_v45  ;;  %v7236_v52 = vadd.f32 %v2227_v12, %v2139_v41 }
 0x3b3   :  { %2266 = vmatmul.bf16.gmra.mxu0 %v7139_v53  ;;  %v2308_v22 = vmax.f32 %v7233_v25, %v7236_v52 }
 0x3b4   :  { %v2143_v26 = vpop.f32.mrf.mxu2 }
 0x3b5   :  { %2309 = vmax.xlane.f32.xlu1 %v2308_v22  ;;  %v2144_v20 = vadd.f32 %v2143_v26, %v7200_v56  ;;  %v1980_v54 = vpop.f32.mrf.mxu1 }
 0x3b8   :  { %v2229_v60 = vpop.f32.mrf.mxu0 }
 0x3b9   :  { %v7247_v14 = vadd.f32 %v2229_v60, %v2141_v57 }
 0x3bb   :  { %v2311_v45 = vmax.f32 %v7245_v35, %v7247_v14 }
 0x3bc   :  { %v2145_v53 = vpop.f32.mrf.mxu2 }
 0x3bd   :  { %2312 = vmax.xlane.f32.xlu1 %v2311_v45  ;;  %v2146_v5 = vadd.f32 %v2145_v53, %v7200_v56 }
 0x3c0   :  { %v2232_v31 = vpop.f32.mrf.mxu0 }
 0x3c1   :  { %2187 = vmatmul.bf16.gmra.mxu2 %v7062_v11  ;;  %v7258_v32 = vadd.f32 %v2232_v31, %v2144_v20  ;;  %v1982_v20 = vpop.f32.mrf.mxu1 }
 0x3c3   :  { %2271 = vmatmul.bf16.gmra.mxu0 %v7146_v38  ;;  %v2314_v1 = vmax.f32 %v7255_v6, %v7258_v32  ;;  %v1971_v38 = vadd.f32 %v7122_v42, %v7198_v36  ;;  %v1973_v42 = vadd.f32 %v7132_v4, %v7198_v36 }
 0x3c4   :  { %v2148_v59 = vpop.f32.mrf.mxu2 }
 0x3c5   :  { %2315 = vmax.xlane.f32.xlu2 %v2314_v1  ;;  %v2149_v51 = vadd.f32 %v2148_v59, %v7200_v56  ;;  %v7277_v16 = vadd.f32 %v7191_v9, %v1971_v38  ;;  %v7289_v9 = vadd.f32 %v7206_v63, %v1973_v42 }
 0x3c8   :  { %v2234_v18 = vpop.f32.mrf.mxu0 }
 0x3c9   :  { %v7269_v47 = vadd.f32 %v2234_v18, %v2146_v5 }
 0x3cb   :  { %v2317_v11 = vmax.f32 %v7267_v37, %v7269_v47 }
 0x3cc   :  { %v2150_v10 = vpop.f32.mrf.mxu2 }
 0x3cd   :  { %2318 = vmax.xlane.f32.xlu2 %v2317_v11  ;;  %v2151_v21 = vadd.f32 %v2150_v10, %v7200_v56 }
 0x3d0   :  { %v2237_v33 = vpop.f32.mrf.mxu0 }
 0x3d1   :  { %2192 = vmatmul.bf16.gmra.mxu2 %v7080_v62  ;;  %v7280_v48 = vadd.f32 %v2237_v33, %v2149_v51 }
 0x3d3   :  { %2276 = vmatmul.bf16.gmra.mxu0 %v7155_v29  ;;  %v2320_v58 = vmax.f32 %v7277_v16, %v7280_v48 }
 0x3d4   :  { %v2153_v29 = vpop.f32.mrf.mxu2 }
 0x3d5   :  { %2321 = vmax.xlane.f32.xlu0 %v2320_v58  ;;  %v2154_v0 = vadd.f32 %v2153_v29, %v7200_v56 }
 0x3d8   :  { %v2239_v50 = vpop.f32.mrf.mxu0 }
 0x3d9   :  { %v7291_v49 = vadd.f32 %v2239_v50, %v2151_v21  ;;  %v1981_v50 = vadd.f32 %v1980_v54, %v7198_v36 }
 0x3db   :  { %v2323_v62 = vmax.f32 %v7289_v9, %v7291_v49 }
 0x3dc   :  { %v2155_v23 = vpop.f32.mrf.mxu2 }
 0x3dd   :  { %2324 = vmax.xlane.f32.xlu1 %v2323_v62  ;;  %v2156_v31 = vadd.f32 %v2155_v23, %v7200_v56  ;;  %v1985_v62 = vpop.f32.mrf.mxu1 }
 0x3e0   :  { %v2242_v4 = vpop.f32.mrf.mxu0 }
 0x3e1   :  { %2197 = vmatmul.bf16.gmra.mxu2 %v7096_v24  ;;  %v7300_v63 = vadd.f32 %v2242_v4, %v2154_v0 }
 0x3e3   :  { %2281 = vmatmul.bf16.gmra.mxu0 %v7166_v44  ;;  %v2326_v19 = vmax.f32 %v7297_v15, %v7300_v63 }
 0x3e5   :  { %2327 = vmax.xlane.f32.xlu1 %v2326_v19 }
 0x3e8   :  { %v2244_v24 = vpop.f32.mrf.mxu0 }
 0x3e9   :  { %v7322_v27 = vadd.f32 %v2244_v24, %v2156_v31 }
 0x3f1   :  { %2202 = vmatmul.bf16.gmra.mxu2 %v7114_v17  ;;  %v2158_v17 = vpop.f32.mrf.mxu2 }
 0x3f3   :  { %2286 = vmatmul.bf16.gmra.mxu0 %v7175_v43  ;;  %v2247_v43 = vpop.f32.mrf.mxu0 }
 0x3f9   :  { %v2160_v3 = vpop.f32.mrf.mxu2 }
 0x3fb   :  { %v2249_v1 = vpop.f32.mrf.mxu0 }
 0x401   :  { %2207 = vmatmul.bf16.gmra.mxu2 %v7130_v30  ;;  %v2069_v30 = vpop.f32.mrf.mxu3 }
 0x402   :  { %v7344_v4 = vadd.f32 %v2069_v30, %v1981_v50 }
 0x403   :  { %2291 = vmatmul.bf16.gmra.mxu0 %v7186_v13  ;;  %v2252_v46 = vpop.f32.mrf.mxu0 }
 0x409   :  { %v2071_v18 = vpop.f32.mrf.mxu3 }
 0x411   :  { %v2074_v24 = vpop.f32.mrf.mxu3 }
 0x413   :  { %2296 = vmatmul.bf16.gmra.mxu0 %v7202_v28 }
 0x418   :  { %v2304_v41 = vpop.xlane.xlu0 %2303 }
 0x419   :  { %v2398_v44 = vsub.f32 %v7211_v40, %v2304_v41  ;;  %v2399_v12 = vsub.f32 %v7214_v39, %v2304_v41 }
 0x41b   :  { %v2462_v22 = vmul.f32 1.442695, %v2398_v44  ;;  %v2464_v26 = vmul.f32 1.442695, %v2399_v12  ;;  %v1983_v44 = vadd.f32 %v1982_v20, %v7198_v36  ;;  %v1986_v20 = vadd.f32 %v1985_v62, %v7198_v36 }
 0x41d   :  { %5053 = vpow2.f32 %v2462_v22  ;;  %v7360_v30 = vadd.f32 %v2071_v18, %v1983_v44 }
 0x41e   :  { %5055 = vpow2.f32 %v2464_v26 }
 0x420   :  { %v2307_v13 = vpop.xlane.xlu0 %2306 }
 0x421   :  { %v2400_v57 = vsub.f32 %v7223_v55, %v2307_v13  ;;  %v2401_v28 = vsub.f32 %v7225_v2, %v2307_v13  ;;  %v1978_v2 = vadd.f32 %v1977_v34, %v7198_v36 }
 0x423   :  { %v7314_v60 = vpop.eup %5053  ;;  %v2466_v45 = vmul.f32 1.442695, %v2400_v57  ;;  %v2468_v53 = vmul.f32 1.442695, %v2401_v28  ;;  %v7328_v38 = vadd.f32 %v2066_v61, %v1978_v2 }
 0x424   :  { %v7316_v40 = vpop.eup %5055 }
 0x425   :  { %5057 = vpow2.f32 %v2466_v45  ;;  %v2590_v39 = vadd.f32 %v7316_v40, %v7314_v60  ;;  %v2329_v58 = vmax.f32 %v7328_v38, %v7322_v27  ;;  %v2254_v45 = vpop.f32.mrf.mxu0 }
 0x426   :  { %5059 = vpow2.f32 %v2468_v53 }
 0x427   :  { %2591 = vadd.xlane.f32.xlu2 %v2590_v39  ;;  %v2076_v39 = vpop.f32.mrf.mxu3 }
 0x428   :  { %v2310_v55 = vpop.xlane.xlu1 %2309 }
 0x429   :  { %v2402_v5 = vsub.f32 %v7233_v25, %v2310_v55  ;;  %v2403_v59 = vsub.f32 %v7236_v52, %v2310_v55  ;;  %v2159_v25 = vadd.f32 %v2158_v17, %v7200_v56  ;;  %v2163_v52 = vpop.f32.mrf.mxu2 }
 0x42b   :  { %v7326_v11 = vpop.eup %5057  ;;  %v2470_v51 = vmul.f32 1.442695, %v2402_v5  ;;  %v2472_v33 = vmul.f32 1.442695, %v2403_v59  ;;  %v7338_v7 = vadd.f32 %v2247_v43, %v2159_v25  ;;  %v1987_v43 = vpop.f32.mrf.mxu1  ;;  %v7376_v5 = vadd.f32 %v2074_v24, %v1986_v20 }
 0x42c   :  { %v7330_v10 = vpop.eup %5059  ;;  %v1988_v50 = vadd.f32 %v1987_v43, %v7198_v36 }
 0x42d   :  { %5061 = vpow2.f32 %v2470_v51  ;;  %v2593_v42 = vadd.f32 %v7330_v10, %v7326_v11  ;;  %v2332_v61 = vmax.f32 %v7344_v4, %v7338_v7 }
 0x42e   :  { %5063 = vpow2.f32 %v2472_v33 }
 0x42f   :  { %2330 = vmax.xlane.f32.xlu2 %v2329_v58  ;;  %2594 = vadd.xlane.f32.xlu0 %v2593_v42 }
 0x430   :  { %v2313_v21 = vpop.xlane.xlu1 %2312 }
 0x431   :  { %v2404_v29 = vsub.f32 %v7245_v35, %v2313_v21  ;;  %v2405_v8 = vsub.f32 %v7247_v14, %v2313_v21  ;;  %v2161_v35 = vadd.f32 %v2160_v3, %v7200_v56  ;;  %v2165_v17 = vpop.f32.mrf.mxu2 }
 0x433   :  { %v7342_v0 = vpop.eup %5061  ;;  %v2474_v19 = vmul.f32 1.442695, %v2404_v29  ;;  %v2476_v23 = vmul.f32 1.442695, %v2405_v8  ;;  %v7354_v12 = vadd.f32 %v2249_v1, %v2161_v35  ;;  %v1990_v58 = vpop.f32.mrf.mxu1 }
 0x434   :  { %v7346_v34 = vpop.eup %5063 }
 0x435   :  { %5065 = vpow2.f32 %v2474_v19  ;;  %v2596_v41 = vadd.f32 %v7346_v34, %v7342_v0  ;;  %v7392_v19 = vadd.f32 %v2076_v39, %v1988_v50 }
 0x436   :  { %5067 = vpow2.f32 %v2476_v23 }
 0x437   :  { %2333 = vmax.xlane.f32.xlu2 %v2332_v61  ;;  %2597 = vadd.xlane.f32.xlu0 %v2596_v41 }
 0x438   :  { %v2316_v14 = vpop.xlane.xlu2 %2315 }
 0x439   :  { %v2406_v22 = vsub.f32 %v7255_v6, %v2316_v14  ;;  %v2407_v26 = vsub.f32 %v7258_v32, %v2316_v14  ;;  %v2335_v6 = vmax.f32 %v7360_v30, %v7354_v12  ;;  %v2164_v32 = vadd.f32 %v2163_v52, %v7200_v56  ;;  %v2168_v33 = vpop.f32.mrf.mxu2  ;;  %v2079_v52 = vpop.f32.mrf.mxu3 }
 0x43b   :  { %v7358_v54 = vpop.eup %5065  ;;  %v2478_v13 = vmul.f32 1.442695, %v2406_v22  ;;  %v2480_v57 = vmul.f32 1.442695, %v2407_v26  ;;  %v7370_v31 = vadd.f32 %v2252_v46, %v2164_v32  ;;  %v1991_v26 = vadd.f32 %v1990_v58, %v7198_v36  ;;  %v5048_v58 = vld [vmem:[%s9219_s7 + $0x78] sm:$0xff] }
 0x43c   :  { %v7362_v28 = vpop.eup %5067  ;;  %3515 = vmatpush.bf16.msrb.mxu3 %v5048_v58 }
 0x43d   :  { %5069 = vpow2.f32 %v2478_v13  ;;  %v2599_v53 = vadd.f32 %v7362_v28, %v7358_v54  ;;  %v2338_v25 = vmax.f32 %v7376_v5, %v7370_v31 }
 0x43e   :  { %5071 = vpow2.f32 %v2480_v57 }
 0x43f   :  { %2600 = vadd.xlane.f32.xlu1 %v2599_v53  ;;  %2336 = vmax.xlane.f32.xlu0 %v2335_v6  ;;  %v7408_v53 = vadd.f32 %v2079_v52, %v1991_v26 }
 0x440   :  { %v2319_v3 = vpop.xlane.xlu2 %2318 }
 0x441   :  { %v2408_v1 = vsub.f32 %v7267_v37, %v2319_v3  ;;  %v2409_v55 = vsub.f32 %v7269_v47, %v2319_v3  ;;  %v2257_v37 = vpop.f32.mrf.mxu0  ;;  %v2166_v47 = vadd.f32 %v2165_v17, %v7200_v56  ;;  %v2170_v14 = vpop.f32.mrf.mxu2 }
 0x442   :  { %v2081_v57 = vpop.f32.mrf.mxu3 }
 0x443   :  { %v7374_v2 = vpop.eup %5069  ;;  %v2482_v59 = vmul.f32 1.442695, %v2408_v1  ;;  %v2484_v18 = vmul.f32 1.442695, %v2409_v55  ;;  %v7386_v62 = vadd.f32 %v2254_v45, %v2166_v47 }
 0x444   :  { %v7378_v51 = vpop.eup %5071 }
 0x445   :  { %5073 = vpow2.f32 %v2482_v59  ;;  %v2602_v42 = vadd.f32 %v7378_v51, %v7374_v2  ;;  %v2341_v41 = vmax.f32 %v7392_v19, %v7386_v62 }
 0x446   :  { %5075 = vpow2.f32 %v2484_v18 }
 0x447   :  { %2603 = vadd.xlane.f32.xlu1 %v2602_v42  ;;  %2339 = vmax.xlane.f32.xlu0 %v2338_v25 }
 0x448   :  { %v2322_v21 = vpop.xlane.xlu0 %2321 }
 0x449   :  { %v2410_v29 = vsub.f32 %v7277_v16, %v2322_v21  ;;  %v2411_v8 = vsub.f32 %v7280_v48, %v2322_v21  ;;  %v1992_v16 = vpop.f32.mrf.mxu1  ;;  %v2169_v48 = vadd.f32 %v2168_v33, %v7200_v56  ;;  %v2259_v44 = vpop.f32.mrf.mxu0 }
 0x44a   :  { %v1993_v55 = vadd.f32 %v1992_v16, %v7198_v36 }
 0x44b   :  { %v7390_v46 = vpop.eup %5073  ;;  %v2486_v23 = vmul.f32 1.442695, %v2410_v29  ;;  %v2488_v24 = vmul.f32 1.442695, %v2411_v8  ;;  %v7402_v17 = vadd.f32 %v2257_v37, %v2169_v48  ;;  %v2084_v29 = vpop.f32.mrf.mxu3  ;;  %v5040_v8 = vld [vmem:[%s9219_s7 + $0x38] sm:$0xff] }
 0x44c   :  { %v7394_v61 = vpop.eup %5075  ;;  %v7427_v47 = vadd.f32 %v2081_v57, %v1993_v55  ;;  %3426 = vmatpush.bf16.msrb.mxu1 %v5040_v8  ;;  %v5045_v8 = vld [vmem:[%s9219_s7 + $0x60] sm:$0xff] }
 0x44d   :  { %5077 = vpow2.f32 %v2486_v23  ;;  %v2605_v35 = vadd.f32 %v7394_v61, %v7390_v46  ;;  %v2344_v3 = vmax.f32 %v7408_v53, %v7402_v17 }
 0x44e   :  { %5079 = vpow2.f32 %v2488_v24 }
 0x44f   :  { %2342 = vmax.xlane.f32.xlu1 %v2341_v41  ;;  %2606 = vadd.xlane.f32.xlu2 %v2605_v35 }
 0x450   :  { %v2325_v22 = vpop.xlane.xlu1 %2324 }
 0x451   :  { %v2412_v43 = vsub.f32 %v7289_v9, %v2325_v22  ;;  %v2413_v13 = vsub.f32 %v7291_v49, %v2325_v22  ;;  %v2171_v9 = vadd.f32 %v2170_v14, %v7200_v56  ;;  %v2173_v49 = vpop.f32.mrf.mxu2  ;;  %v1995_v42 = vpop.f32.mrf.mxu1 }
 0x452   :  { %v2262_v25 = vpop.f32.mrf.mxu0  ;;  %v2174_v23 = vadd.f32 %v2173_v49, %v7200_v56  ;;  %v1996_v24 = vadd.f32 %v1995_v42, %v7198_v36 }
 0x453   :  { %v7406_v45 = vpop.eup %5077  ;;  %v2490_v6 = vmul.f32 1.442695, %v2412_v43  ;;  %v2492_v39 = vmul.f32 1.442695, %v2413_v13  ;;  %v7418_v59 = vadd.f32 %v2259_v44, %v2171_v9  ;;  %v2086_v13 = vpop.f32.mrf.mxu3 }
 0x454   :  { %v7410_v32 = vpop.eup %5079  ;;  %v7440_v41 = vadd.f32 %v2262_v25, %v2174_v23  ;;  %v7444_v16 = vadd.f32 %v2084_v29, %v1996_v24  ;;  %v5038_v29 = vld [vmem:[%s9219_s7 + $0x28] sm:$0xff]  ;;  %v5036_v23 = vld [vmem:[%s9219_s7 + $0x18] sm:$0xff] }
 0x455   :  { %5081 = vpow2.f32 %v2490_v6  ;;  %v2608_v20 = vadd.f32 %v7410_v32, %v7406_v45  ;;  %v5044_v24 = vld [vmem:[%s9219_s7 + $0x58] sm:$0xff] }
 0x456   :  { %5083 = vpow2.f32 %v2492_v39  ;;  %v2350_v43 = vmax.f32 %v7444_v16, %v7440_v41 }
 0x457   :  { %2345 = vmax.xlane.f32.xlu1 %v2344_v3  ;;  %2609 = vadd.xlane.f32.xlu2 %v2608_v20 }
 0x458   :  { %v2328_v1 = vpop.xlane.xlu1 %2327 }
 0x459   :  { %v2414_v18 = vsub.f32 %v7297_v15, %v2328_v1  ;;  %v2415_v33 = vsub.f32 %v7300_v63, %v2328_v1  ;;  %v2347_v63 = vmax.f32 %v7427_v47, %v7418_v59  ;;  %v2175_v35 = vpop.f32.mrf.mxu2  ;;  %v1997_v44 = vpop.f32.mrf.mxu1 }
 0x45a   :  { %v2264_v22 = vpop.f32.mrf.mxu0  ;;  %v2176_v57 = vadd.f32 %v2175_v35, %v7200_v56  ;;  %v1998_v6 = vadd.f32 %v1997_v44, %v7198_v36  ;;  %v5035_v35 = vld [vmem:[%s9219_s7 + $0x10] sm:$0xff] }
 0x45b   :  { %v7425_v37 = vpop.eup %5081  ;;  %v2494_v52 = vmul.f32 1.442695, %v2414_v18  ;;  %v2496_v21 = vmul.f32 1.442695, %v2415_v33  ;;  %v2089_v18 = vpop.f32.mrf.mxu3  ;;  %v5043_v44 = vld [vmem:[%s9219_s7 + $0x50] sm:$0xff] }
 0x45c   :  { %v7429_v50 = vpop.eup %5083  ;;  %v7454_v39 = vadd.f32 %v2264_v22, %v2176_v57  ;;  %v7456_v3 = vadd.f32 %v2086_v13, %v1998_v6  ;;  %v5034_v22 = vld [vmem:[%s9219_s7 + $0x8] sm:$0xff]  ;;  %v5041_v13 = vld [vmem:[%s9219_s7 + $0x40] sm:$0xff] }
 0x45d   :  { %5085 = vpow2.f32 %v2494_v52  ;;  %v2611_v15 = vadd.f32 %v7429_v50, %v7425_v37  ;;  %v5047_v52 = vld [vmem:[%s9219_s7 + $0x70] sm:$0xff] }
 0x45e   :  { %5087 = vpow2.f32 %v2496_v21  ;;  %v2353_v9 = vmax.f32 %v7456_v3, %v7454_v39  ;;  %v5039_v21 = vld [vmem:[%s9219_s7 + $0x30] sm:$0xff]  ;;  %3516 = vmatpush.bf16.msrb.mxu3 %v5047_v52 }
 0x45f   :  { %2612 = vadd.xlane.f32.xlu0 %v2611_v15  ;;  %2348 = vmax.xlane.f32.xlu2 %v2347_v63  ;;  %v5046_v15 = vld [vmem:[%s9219_s7 + $0x68] sm:$0xff]  ;;  %v5037_v63 = vld [vmem:[%s9219_s7 + $0x20] sm:$0xff] }
 0x460   :  { %3427 = vmatpush.bf16.msrb.mxu1 %v5039_v21 }
 0x461   :  { %v2178_v20 = vpop.f32.mrf.mxu2  ;;  %v2000_v49 = vpop.f32.mrf.mxu1 }
 0x462   :  { %v2267_v1 = vpop.f32.mrf.mxu0  ;;  %v2179_v55 = vadd.f32 %v2178_v20, %v7200_v56  ;;  %v2001_v33 = vadd.f32 %v2000_v49, %v7198_v36  ;;  %3517 = vmatpush.bf16.msrb.mxu3 %v5046_v15 }
 0x463   :  { %v7442_v14 = vpop.eup %5085 }
 0x464   :  { %v7446_v48 = vpop.eup %5087  ;;  %v7462_v58 = vadd.f32 %v2267_v1, %v2179_v55  ;;  %v7464_v42 = vadd.f32 %v2089_v18, %v2001_v33  ;;  %3428 = vmatpush.bf16.msrb.mxu1 %v5038_v29 }
 0x465   :  { %v2614_v26 = vadd.f32 %v7446_v48, %v7442_v14 }
 0x466   :  { %v2356_v25 = vmax.f32 %v7464_v42, %v7462_v58  ;;  %3518 = vmatpush.bf16.msrb.mxu3 %v5045_v8 }
 0x467   :  { %2615 = vadd.xlane.f32.xlu0 %v2614_v26  ;;  %2351 = vmax.xlane.f32.xlu2 %v2350_v43  ;;  %v5042_v26 = vld [vmem:[%s9219_s7 + $0x48] sm:$0xff]  ;;  %v5033_v43 = vld [vmem:[%s9219_s7] sm:$0xff] }
 0x468   :  { %3429 = vmatpush.bf16.msrb.mxu1 %v5037_v63 }
 0x469   :  { %v7510_v1 = vpop.f32.mrf.mxu2 }
 0x46a   :  { %3519 = vmatpush.bf16.msrb.mxu3 %v5044_v24  ;;  %v7516_v52 = vpop.f32.mrf.mxu0 }
 0x46c   :  { %3430 = vmatpush.bf16.msrb.mxu1 %v5036_v23  ;;  %v7518_v23 = vpop.f32.mrf.mxu3 }
 0x46e   :  { %3520 = vmatpush.bf16.msrb.mxu3 %v5043_v44 }
 0x46f   :  { %2354 = vmax.xlane.f32.xlu0 %v2353_v9 }
 0x470   :  { %3431 = vmatpush.bf16.msrb.mxu1 %v5035_v35 }
 0x472   :  { %3521 = vmatpush.bf16.msrb.mxu3 %v5042_v26 }
 0x474   :  { %3432 = vmatpush.bf16.msrb.mxu1 %v5034_v22 }
 0x476   :  { %3522 = vmatpush.bf16.msrb.mxu3 %v5041_v13 }
 0x477   :  { %2357 = vmax.xlane.f32.xlu0 %v2356_v25  ;;  %v7514_v25 = vpop.f32.mrf.mxu1 }
 0x478   :  { %3433 = vmatpush.bf16.msrb.mxu1 %v5033_v43 }
 0x49a   :  { %v2592_v57 = vpop.xlane.xlu2 %2591 }
 0x49b   :  { %5089 = vrcp.f32 %v2592_v57  ;;  %v2697_v21 = vand.u32 2147483648, %v2592_v57  ;;  %v2695_v8 = vand.u32 2147483647, %v2592_v57  ;;  %vm2691_vm3 = vweird.f32 %v2592_v57 }
 0x49d   :  { %vm2696_vm5 = vcmp.eq.f32.partialorder %v2695_v8, 8.507059e+37  ;;  %v7535_v8 = vpop.f32.mrf.mxu0 }
 0x4a1   :  { %v5090_v6 = vpop.eup %5089 }
 0x4a2   :  { %v2687_v20 = vmul.f32 %v5090_v6, %v2592_v57  ;;  %v2331_v9 = vpop.xlane.xlu2 %2330  ;;  %v2595_v49 = vpop.xlane.xlu0 %2594  ;;  %vm2692_vm2 = vweird.f32 %v5090_v6 }
 0x4a3   :  { %v2416_v55 = vsub.f32 %v7328_v38, %v2331_v9  ;;  %v2417_v18 = vsub.f32 %v7322_v27, %v2331_v9  ;;  %5091 = vrcp.f32 %v2595_v49  ;;  %vm2693_vm4 = vmor %vm2691_vm3, %vm2692_vm2  ;;  %v2698_v27 = vor.u32 1.1754944e-38, %v2697_v21 }
 0x4a4   :  { %v2688_v33 = vsub.f32 1.0, %v2687_v20  ;;  %vm2707_vm7 = vweird.f32 %v2595_v49 }
 0x4a5   :  { %v2498_v29 = vmul.f32 1.442695, %v2416_v55  ;;  %v2500_v15 = vmul.f32 1.442695, %v2417_v18 }
 0x4a6   :  { %v2689_v63 = vmul.f32 %v5090_v6, %v2688_v33  ;;  %v2713_v33 = vand.u32 2147483648, %v2595_v49 }
 0x4a7   :  { %5093 = vpow2.f32 %v2498_v29 }
 0x4a8   :  { %v2690_v24 = vadd.f32 %v5090_v6, %v2689_v63  ;;  %5095 = vpow2.f32 %v2500_v15  ;;  %v7533_v63 = vpop.f32.mrf.mxu1 }
 0x4a9   :  { %v5092_v38 = vpop.eup %5091 }
 0x4aa   :  { %v2694_v35 = vsel %vm2693_vm4, %v5090_v6, %v2690_v24  ;;  %v2703_v44 = vmul.f32 %v5092_v38, %v2595_v49  ;;  %v2334_v22 = vpop.xlane.xlu2 %2333  ;;  %v7520_v26 = vpop.xlane.xlu0 %2597  ;;  %vm2708_vm6 = vweird.f32 %v5092_v38 }
 0x4ab   :  { %v2699_v43 = vsel %vm2696_vm5, %v2698_v27, %v2694_v35  ;;  %v2418_v13 = vsub.f32 %v7344_v4, %v2334_v22  ;;  %v2419_v20 = vsub.f32 %v7338_v7, %v2334_v22  ;;  %5097 = vrcp.f32 %v7520_v26  ;;  %v7529_v6 = vpop.f32.mrf.mxu2  ;;  %v7539_v27 = vpop.f32.mrf.mxu3  ;;  %vm2709_vm8 = vmor %vm2707_vm7, %vm2708_vm6 }
 0x4ac   :  { %v2700_v9 = vmul.f32 %v7314_v60, %v2699_v43  ;;  %v2701_v57 = vmul.f32 %v7316_v40, %v2699_v43  ;;  %v2704_v55 = vsub.f32 1.0, %v2703_v44  ;;  %v2711_v7 = vand.u32 2147483647, %v2595_v49 }
 0x4ad   :  { %v7527_v18 = vpop.eup %5093  ;;  %v2502_v21 = vmul.f32 1.442695, %v2418_v13  ;;  %v2504_v29 = vmul.f32 1.442695, %v2419_v20  ;;  %v2714_v35 = vor.u32 1.1754944e-38, %v2713_v33  ;;  %vm2723_vm11 = vweird.f32 %v7520_v26 }
 0x4ae   :  { %v7531_v15 = vpop.eup %5095  ;;  %3198 = vst [vmem:[#allocation2] sm:$0xff] %v2700_v9  ;;  %v2705_v4 = vmul.f32 %v5092_v38, %v2704_v55  ;;  %vm2712_vm9 = vcmp.eq.f32.partialorder %v2711_v7, 8.507059e+37  ;;  %v2727_v33 = vand.u32 2147483647, %v7520_v26 }
 0x4af   :  { %9257 = vst [vmem:[#allocation5_spill] sm:$0xff] %v7531_v15  ;;  %5099 = vpow2.f32 %v2502_v21  ;;  %v2617_v60 = vadd.f32 %v7531_v15, %v7527_v18 }
 0x4b0   :  { %3199 = vst [vmem:[#allocation2 + $0x8] sm:$0xff] %v2701_v57  ;;  %v2706_v40 = vadd.f32 %v5092_v38, %v2705_v4  ;;  %5101 = vpow2.f32 %v2504_v29  ;;  %vm2728_vm13 = vcmp.eq.f32.partialorder %v2727_v33, 8.507059e+37 }
 0x4b1   :  { %v5098_v24 = vpop.eup %5097  ;;  %2618 = vadd.xlane.f32.xlu1 %v2617_v60 }
 0x4b2   :  { %v2710_v44 = vsel %vm2709_vm8, %v5092_v38, %v2706_v40  ;;  %v2719_v22 = vmul.f32 %v5098_v24, %v7520_v26  ;;  %v7542_v43 = vpop.xlane.xlu1 %2600  ;;  %v2337_v13 = vpop.xlane.xlu0 %2336  ;;  %v2729_v38 = vand.u32 2147483648, %v7520_v26  ;;  %vm2724_vm10 = vweird.f32 %v5098_v24 }
 0x4b3   :  { %v2715_v20 = vsel %vm2712_vm9, %v2714_v35, %v2710_v44  ;;  %5103 = vrcp.f32 %v7542_v43  ;;  %v2420_v4 = vsub.f32 %v7360_v30, %v2337_v13  ;;  %v2421_v7 = vsub.f32 %v7354_v12, %v2337_v13  ;;  %v7555_v44 = vpop.f32.mrf.mxu2  ;;  %v7562_v30 = vpop.f32.mrf.mxu1  ;;  %vm7569_vm12 = vmor %vm2723_vm11, %vm2724_vm10 }
 0x4b4   :  { %v2716_v55 = vmul.f32 %v7326_v11, %v2715_v20  ;;  %v2717_v49 = vmul.f32 %v7330_v10, %v2715_v20  ;;  %v2720_v21 = vsub.f32 1.0, %v2719_v22  ;;  %vm2739_vm15 = vweird.f32 %v7542_v43 }
 0x4b5   :  { %v7547_v29 = vpop.eup %5099  ;;  %v2506_v10 = vmul.f32 1.442695, %v2420_v4  ;;  %v2508_v22 = vmul.f32 1.442695, %v2421_v7  ;;  %v2003_v4 = vadd.f32 %v7514_v25, %v7198_v36  ;;  %v7581_v7 = vpop.f32.mrf.mxu3 }
 0x4b6   :  { %v7553_v60 = vpop.eup %5101  ;;  %3200 = vst [vmem:[#allocation2 + $0x10] sm:$0xff] %v2716_v55  ;;  %v2721_v40 = vmul.f32 %v5098_v24, %v2720_v21  ;;  %v3262_v35 = vpack.c.bf16 %v2716_v55, %v2700_v9  ;;  %v3263_v11 = vpack.c.bf16 %v2717_v49, %v2701_v57  ;;  %v2181_v9 = vadd.f32 %v7510_v1, %v7200_v56  ;;  %v7566_v57 = vpop.f32.mrf.mxu0 }
 0x4b7   :  { %3201 = vst [vmem:[#allocation2 + $0x18] sm:$0xff] %v2717_v49  ;;  %v2620_v20 = vadd.f32 %v7553_v60, %v7547_v29  ;;  %5105 = vpow2.f32 %v2506_v10  ;;  %v2730_v55 = vor.u32 1.1754944e-38, %v2729_v38 }
 0x4b8   :  { %v2722_v15 = vadd.f32 %v5098_v24, %v2721_v40  ;;  %3434 = vmatmul.bf16.vlgmr.msrb.gmra.mxu1 %v3262_v35  ;;  %3523 = vmatmul.bf16.vlgmr.msrb.gmra.mxu3 %v3263_v11  ;;  %5107 = vpow2.f32 %v2508_v22  ;;  %v7584_v40 = vadd.f32 %v7516_v52, %v2181_v9  ;;  %v7590_v22 = vadd.f32 %v7518_v23, %v2003_v4 }
 0x4b9   :  { %v7560_v12 = vpop.eup %5103  ;;  %2621 = vadd.xlane.f32.xlu1 %v2620_v20 }
 0x4ba   :  { %v2735_v26 = vmul.f32 %v7560_v12, %v7542_v43  ;;  %v7575_v49 = vpop.xlane.xlu1 %2603  ;;  %v2340_v21 = vpop.xlane.xlu0 %2339  ;;  %v2726_v1 = vsel %vm7569_vm12, %v5098_v24, %v2722_v15  ;;  %v2745_v15 = vand.u32 2147483648, %v7542_v43  ;;  %vm2740_vm14 = vweird.f32 %v7560_v12 }
 0x4bb   :  { %5109 = vrcp.f32 %v7575_v49  ;;  %v2422_v35 = vsub.f32 %v7376_v5, %v2340_v21  ;;  %v2423_v11 = vsub.f32 %v7370_v31, %v2340_v21  ;;  %v2731_v10 = vsel %vm2728_vm13, %v2730_v55, %v2726_v1  ;;  %vm7622_vm0 = vmor %vm2739_vm15, %vm2740_vm14 }
 0x4bc   :  { %v2736_v38 = vsub.f32 1.0, %v2735_v26  ;;  %v7594_v25 = vmul.f32 %v7342_v0, %v2731_v10  ;;  %v7597_v52 = vmul.f32 %v7346_v34, %v2731_v10  ;;  %v2743_v31 = vand.u32 2147483647, %v7542_v43  ;;  %v7618_v26 = vpop.f32.mrf.mxu2 }
 0x4bd   :  { %v2510_v33 = vmul.f32 1.442695, %v2422_v35  ;;  %v2512_v5 = vmul.f32 1.442695, %v2423_v11  ;;  %v7601_v20 = vpop.eup %5105  ;;  %v2359_v23 = vmax.f32 %v7590_v22, %v7584_v40  ;;  %v2184_v34 = vadd.f32 %v7529_v6, %v7200_v56  ;;  %v7638_v11 = vpop.f32.mrf.mxu1 }
 0x4be   :  { %v2737_v24 = vmul.f32 %v7560_v12, %v2736_v38  ;;  %3202 = vst [vmem:[#allocation2 + $0x20] sm:$0xff] %v7594_v25  ;;  %v7607_v0 = vpop.eup %5107  ;;  %v2006_v55 = vadd.f32 %v7533_v63, %v7198_v36  ;;  %v2746_v1 = vor.u32 1.1754944e-38, %v2745_v15  ;;  %vm2744_vm1 = vcmp.eq.f32.partialorder %v2743_v31, 8.507059e+37 }
 0x4bf   :  { %5111 = vpow2.f32 %v2510_v33  ;;  %3203 = vst [vmem:[#allocation2 + $0x28] sm:$0xff] %v7597_v52  ;;  %v2623_v6 = vadd.f32 %v7607_v0, %v7601_v20  ;;  %v7629_v43 = vadd.f32 %v7535_v8, %v2184_v34  ;;  %vm2755_vm3 = vweird.f32 %v7575_v49 }
 0x4c0   :  { %v2738_v9 = vadd.f32 %v7560_v12, %v2737_v24  ;;  %5113 = vpow2.f32 %v2512_v5  ;;  %v7644_v15 = vadd.f32 %v7539_v27, %v2006_v55  ;;  %v7646_v24 = vpop.f32.mrf.mxu0  ;;  %v2761_v27 = vand.u32 2147483648, %v7575_v49 }
 0x4c1   :  { %v7614_v13 = vpop.eup %5109  ;;  %2360 = vmax.xlane.f32.xlu1 %v2359_v23  ;;  %2624 = vadd.xlane.f32.xlu2 %v2623_v6  ;;  %v7648_v23 = vpop.f32.mrf.mxu3  ;;  %v2759_v6 = vand.u32 2147483647, %v7575_v49 }
 0x4c2   :  { %v2751_v63 = vmul.f32 %v7614_v13, %v7575_v49  ;;  %v2343_v4 = vpop.xlane.xlu1 %2342  ;;  %v7633_v38 = vpop.xlane.xlu2 %2606  ;;  %v2742_v35 = vsel %vm7622_vm0, %v7560_v12, %v2738_v9  ;;  %vm2756_vm2 = vweird.f32 %v7614_v13  ;;  %v2362_v55 = vmax.f32 %v7644_v15, %v7629_v43 }
 0x4c3   :  { %v2424_v10 = vsub.f32 %v7392_v19, %v2343_v4  ;;  %v2425_v8 = vsub.f32 %v7386_v62, %v2343_v4  ;;  %5115 = vrcp.f32 %v7633_v38  ;;  %v2747_v5 = vsel %vm2744_vm1, %v2746_v1, %v2742_v35  ;;  %vm7672_vm4 = vmor %vm2755_vm3, %vm2756_vm2 }
 0x4c4   :  { %v2752_v33 = vsub.f32 1.0, %v2751_v63  ;;  %v2748_v31 = vmul.f32 %v7358_v54, %v2747_v5  ;;  %v2749_v9 = vmul.f32 %v7362_v28, %v2747_v5  ;;  %vm2760_vm5 = vcmp.eq.f32.partialorder %v2759_v6, 8.507059e+37 }
 0x4c5   :  { %v2514_v12 = vmul.f32 1.442695, %v2424_v10  ;;  %v2516_v34 = vmul.f32 1.442695, %v2425_v8  ;;  %v7652_v19 = vpop.eup %5111  ;;  %vm2771_vm7 = vweird.f32 %v7633_v38 }
 0x4c6   :  { %v2753_v62 = vmul.f32 %v7614_v13, %v2752_v33  ;;  %v7659_v21 = vpop.eup %5113  ;;  %3204 = vst [vmem:[#allocation2 + $0x30] sm:$0xff] %v2748_v31  ;;  %v3264_v54 = vpack.c.bf16 %v2748_v31, %v7594_v25  ;;  %v3265_v28 = vpack.c.bf16 %v2749_v9, %v7597_v52  ;;  %v2186_v25 = vadd.f32 %v7555_v44, %v7200_v56  ;;  %v2190_v31 = vpop.f32.mrf.mxu2 }
 0x4c7   :  { %5117 = vpow2.f32 %v2514_v12  ;;  %3205 = vst [vmem:[#allocation2 + $0x38] sm:$0xff] %v2749_v9  ;;  %v2626_v63 = vadd.f32 %v7659_v21, %v7652_v19  ;;  %v2762_v52 = vor.u32 1.1754944e-38, %v2761_v27  ;;  %v2008_v44 = vadd.f32 %v7562_v30, %v7198_v36 }
 0x4c8   :  { %v2754_v1 = vadd.f32 %v7614_v13, %v2753_v62  ;;  %5119 = vpow2.f32 %v2516_v34  ;;  %3439 = vmatmul.bf16.gmra.mxu1 %v3264_v54  ;;  %3528 = vmatmul.bf16.gmra.mxu3 %v3265_v28  ;;  %v7691_v34 = vadd.f32 %v7566_v57, %v2186_v25  ;;  %v7705_v30 = vpop.f32.mrf.mxu0  ;;  %v2777_v28 = vand.u32 2147483648, %v7633_v38 }
 0x4c9   :  { %v7668_v4 = vpop.eup %5115  ;;  %2363 = vmax.xlane.f32.xlu1 %v2362_v55  ;;  %2627 = vadd.xlane.f32.xlu2 %v2626_v63  ;;  %v7713_v63 = vpop.f32.mrf.mxu3 }
 0x4ca   :  { %v2767_v49 = vmul.f32 %v7668_v4, %v7633_v38  ;;  %v2346_v10 = vpop.xlane.xlu1 %2345  ;;  %v7680_v8 = vpop.xlane.xlu2 %2609  ;;  %v2758_v33 = vsel %vm7672_vm4, %v7614_v13, %v2754_v1  ;;  %vm2772_vm6 = vweird.f32 %v7668_v4  ;;  %v7711_v1 = vadd.f32 %v7581_v7, %v2008_v44 }
 0x4cb   :  { %v2426_v5 = vsub.f32 %v7408_v53, %v2346_v10  ;;  %v2427_v12 = vsub.f32 %v7402_v17, %v2346_v10  ;;  %5121 = vrcp.f32 %v7680_v8  ;;  %v2763_v62 = vsel %vm2760_vm5, %v2762_v52, %v2758_v33  ;;  %v7695_v13 = vpop.f32.mrf.mxu1  ;;  %vm7726_vm8 = vmor %vm2771_vm7, %vm2772_vm6 }
 0x4cc   :  { %v2768_v9 = vsub.f32 1.0, %v2767_v49  ;;  %v7698_v53 = vmul.f32 %v7374_v2, %v2763_v62  ;;  %v7701_v17 = vmul.f32 %v7378_v51, %v2763_v62  ;;  %v2775_v2 = vand.u32 2147483647, %v7633_v38 }
 0x4cd   :  { %v7693_v27 = vpop.eup %5117  ;;  %v2518_v55 = vmul.f32 1.442695, %v2426_v5  ;;  %v2520_v6 = vmul.f32 1.442695, %v2427_v12  ;;  %v2011_v7 = vadd.f32 %v7638_v11, %v7198_v36  ;;  %v2365_v49 = vmax.f32 %v7711_v1, %v7691_v34 }
 0x4ce   :  { %v7703_v54 = vpop.eup %5119  ;;  %v2769_v57 = vmul.f32 %v7668_v4, %v2768_v9  ;;  %3206 = vst [vmem:[#allocation2 + $0x40] sm:$0xff] %v7698_v53  ;;  %v2189_v10 = vadd.f32 %v7618_v26, %v7200_v56  ;;  %v2778_v38 = vor.u32 1.1754944e-38, %v2777_v28  ;;  %vm2776_vm9 = vcmp.eq.f32.partialorder %v2775_v2, 8.507059e+37 }
 0x4cf   :  { %5123 = vpow2.f32 %v2518_v55  ;;  %v2629_v51 = vadd.f32 %v7703_v54, %v7693_v27  ;;  %3207 = vst [vmem:[#allocation2 + $0x48] sm:$0xff] %v7701_v17  ;;  %v7745_v26 = vadd.f32 %v7648_v23, %v2011_v7  ;;  %v2793_v23 = vand.u32 2147483648, %v7680_v8 }
 0x4d0   :  { %v2770_v35 = vadd.f32 %v7668_v4, %v2769_v57  ;;  %5125 = vpow2.f32 %v2520_v6  ;;  %v7748_v62 = vadd.f32 %v7646_v24, %v2189_v10  ;;  %v2791_v24 = vand.u32 2147483647, %v7680_v8  ;;  %v2282_v10 = vpop.f32.mrf.mxu0 }
 0x4d1   :  { %v7722_v25 = vpop.eup %5121  ;;  %2630 = vadd.xlane.f32.xlu0 %v2629_v51  ;;  %2366 = vmax.xlane.f32.xlu2 %v2365_v49  ;;  %v2191_v49 = vadd.f32 %v2190_v31, %v7200_v56  ;;  %vm2787_vm11 = vweird.f32 %v7680_v8 }
 0x4d2   :  { %v2783_v33 = vmul.f32 %v7722_v25, %v7680_v8  ;;  %v2349_v5 = vpop.xlane.xlu2 %2348  ;;  %v7736_v12 = vpop.xlane.xlu0 %2612  ;;  %v2774_v11 = vsel %vm7726_vm8, %v7668_v4, %v2770_v35  ;;  %vm2788_vm10 = vweird.f32 %v7722_v25  ;;  %v2368_v31 = vmax.f32 %v7745_v26, %v7748_v62 }
 0x4d3   :  { %v2428_v44 = vsub.f32 %v7427_v47, %v2349_v5  ;;  %v2429_v9 = vsub.f32 %v7418_v59, %v2349_v5  ;;  %5127 = vrcp.f32 %v7736_v12  ;;  %v2779_v6 = vsel %vm2776_vm9, %v2778_v38, %v2774_v11  ;;  %v2193_v59 = vpop.f32.mrf.mxu2  ;;  %v2015_v7 = vpop.f32.mrf.mxu1  ;;  %vm7771_vm12 = vmor %vm2787_vm11, %vm2788_vm10 }
 0x4d4   :  { %v2784_v55 = vsub.f32 1.0, %v2783_v33  ;;  %v2780_v2 = vmul.f32 %v7390_v46, %v2779_v6  ;;  %v2781_v47 = vmul.f32 %v7394_v61, %v2779_v6  ;;  %v2013_v5 = vadd.f32 %v7695_v13, %v7198_v36  ;;  %v2104_v11 = vpop.f32.mrf.mxu3 }
 0x4d5   :  { %v7750_v57 = vpop.eup %5123  ;;  %v2522_v28 = vmul.f32 1.442695, %v2428_v44  ;;  %v2524_v4 = vmul.f32 1.442695, %v2429_v9  ;;  %v7778_v8 = vadd.f32 %v7705_v30, %v2191_v49  ;;  %vm2792_vm13 = vcmp.eq.f32.partialorder %v2791_v24, 8.507059e+37 }
 0x4d6   :  { %v7754_v51 = vpop.eup %5125  ;;  %v2785_v35 = vmul.f32 %v7722_v25, %v2784_v55  ;;  %3208 = vst [vmem:[#allocation2 + $0x50] sm:$0xff] %v2780_v2  ;;  %v3266_v46 = vpack.c.bf16 %v2780_v2, %v7698_v53  ;;  %v3267_v61 = vpack.c.bf16 %v2781_v47, %v7701_v17  ;;  %v2794_v17 = vor.u32 1.1754944e-38, %v2793_v23 }
 0x4d7   :  { %5129 = vpow2.f32 %v2522_v28  ;;  %v2632_v52 = vadd.f32 %v7754_v51, %v7750_v57  ;;  %3209 = vst [vmem:[#allocation2 + $0x58] sm:$0xff] %v2781_v47  ;;  %v7790_v30 = vadd.f32 %v7713_v63, %v2013_v5  ;;  %v2809_v2 = vand.u32 2147483648, %v7736_v12 }
 0x4d8   :  { %v2786_v38 = vadd.f32 %v7722_v25, %v2785_v35  ;;  %5131 = vpow2.f32 %v2524_v4  ;;  %3444 = vmatmul.bf16.gmra.mxu1 %v3266_v46  ;;  %3533 = vmatmul.bf16.gmra.mxu3 %v3267_v61  ;;  %v2807_v63 = vand.u32 2147483647, %v7736_v12  ;;  %vm2803_vm15 = vweird.f32 %v7736_v12 }
 0x4d9   :  { %v5128_v33 = vpop.eup %5127  ;;  %2633 = vadd.xlane.f32.xlu0 %v2632_v52  ;;  %2369 = vmax.xlane.f32.xlu2 %v2368_v31  ;;  %v2371_v46 = vmax.f32 %v7790_v30, %v7778_v8  ;;  %v2194_v5 = vadd.f32 %v2193_v59, %v7200_v56  ;;  %v2810_v53 = vor.u32 1.1754944e-38, %v2809_v2  ;;  %v2016_v31 = vadd.f32 %v2015_v7, %v7198_v36 }
 0x4da   :  { %v2799_v44 = vmul.f32 %v5128_v33, %v7736_v12  ;;  %v2352_v13 = vpop.xlane.xlu2 %2351  ;;  %v7781_v9 = vpop.xlane.xlu0 %2615  ;;  %v2790_v55 = vsel %vm7771_vm12, %v7722_v25, %v2786_v38  ;;  %vm2804_vm14 = vweird.f32 %v5128_v33  ;;  %vm2808_vm1 = vcmp.eq.f32.partialorder %v2807_v63, 8.507059e+37 }
 0x4db   :  { %v2430_v6 = vsub.f32 %v7444_v16, %v2352_v13  ;;  %v2431_v28 = vsub.f32 %v7440_v41, %v2352_v13  ;;  %5133 = vrcp.f32 %v7781_v9  ;;  %v2795_v47 = vsel %vm2792_vm13, %v2794_v17, %v2790_v55  ;;  %v2017_v38 = vpop.f32.mrf.mxu1  ;;  %vm2805_vm0 = vmor %vm2803_vm15, %vm2804_vm14  ;;  %v2284_v17 = vpop.f32.mrf.mxu0 }
 0x4dc   :  { %v2800_v4 = vsub.f32 1.0, %v2799_v44  ;;  %v7796_v25 = vmul.f32 %v7406_v45, %v2795_v47  ;;  %v7799_v16 = vmul.f32 %v7410_v32, %v2795_v47  ;;  %v2195_v45 = vpop.f32.mrf.mxu2  ;;  %v7814_v12 = vadd.f32 %v2282_v10, %v2194_v5  ;;  %v2106_v59 = vpop.f32.mrf.mxu3 }
 0x4dd   :  { %v7793_v35 = vpop.eup %5129  ;;  %v2526_v23 = vmul.f32 1.442695, %v2430_v6  ;;  %v2528_v52 = vmul.f32 1.442695, %v2431_v28  ;;  %v2823_v2 = vand.u32 2147483647, %v7781_v9  ;;  %vm2819_vm3 = vweird.f32 %v7781_v9 }
 0x4de   :  { %v7801_v41 = vpop.eup %5131  ;;  %v2801_v24 = vmul.f32 %v5128_v33, %v2800_v4  ;;  %3210 = vst [vmem:[#allocation2 + $0x60] sm:$0xff] %v7796_v25  ;;  %v2825_v10 = vand.u32 2147483648, %v7781_v9 }
 0x4df   :  { %5135 = vpow2.f32 %v2526_v23  ;;  %v2635_v61 = vadd.f32 %v7801_v41, %v7793_v35  ;;  %3211 = vst [vmem:[#allocation2 + $0x68] sm:$0xff] %v7799_v16  ;;  %vm2824_vm5 = vcmp.eq.f32.partialorder %v2823_v2, 8.507059e+37 }
 0x4e0   :  { %v2802_v49 = vadd.f32 %v5128_v33, %v2801_v24  ;;  %5137 = vpow2.f32 %v2528_v52  ;;  %v7823_v24 = vadd.f32 %v2104_v11, %v2016_v31  ;;  %v2826_v5 = vor.u32 1.1754944e-38, %v2825_v10 }
 0x4e1   :  { %v5134_v32 = vpop.eup %5133  ;;  %2372 = vmax.xlane.f32.xlu0 %v2371_v46  ;;  %2636 = vadd.xlane.f32.xlu1 %v2635_v61 }
 0x4e2   :  { %v2815_v44 = vmul.f32 %v5134_v32, %v7781_v9  ;;  %v2355_v13 = vpop.xlane.xlu0 %2354  ;;  %v2806_v55 = vsel %vm2805_vm0, %v5128_v33, %v2802_v49  ;;  %vm2820_vm2 = vweird.f32 %v5134_v32  ;;  %v2196_v49 = vadd.f32 %v2195_v45, %v7200_v56 }
 0x4e3   :  { %v2432_v6 = vsub.f32 %v7456_v3, %v2355_v13  ;;  %v2433_v28 = vsub.f32 %v7454_v39, %v2355_v13  ;;  %v2811_v4 = vsel %vm2808_vm1, %v2810_v53, %v2806_v55  ;;  %vm2821_vm4 = vmor %vm2819_vm3, %vm2820_vm2  ;;  %v2020_v45 = vpop.f32.mrf.mxu1 }
 0x4e4   :  { %v2816_v47 = vsub.f32 1.0, %v2815_v44  ;;  %v2812_v23 = vmul.f32 %v7425_v37, %v2811_v4  ;;  %v2813_v7 = vmul.f32 %v7429_v50, %v2811_v4  ;;  %v2374_v37 = vmax.f32 %v7823_v24, %v7814_v12 }
 0x4e5   :  { %v7821_v52 = vpop.eup %5135  ;;  %v2530_v33 = vmul.f32 1.442695, %v2432_v6  ;;  %v2532_v63 = vmul.f32 1.442695, %v2433_v28  ;;  %v7837_v44 = vadd.f32 %v2284_v17, %v2196_v49  ;;  %v2287_v6 = vpop.f32.mrf.mxu0 }
 0x4e6   :  { %v7826_v3 = vpop.eup %5137  ;;  %v2817_v39 = vmul.f32 %v5134_v32, %v2816_v47  ;;  %3212 = vst [vmem:[#allocation2 + $0x70] sm:$0xff] %v2812_v23  ;;  %v3268_v46 = vpack.c.bf16 %v2812_v23, %v7796_v25  ;;  %v3269_v61 = vpack.c.bf16 %v2813_v7, %v7799_v16  ;;  %v2018_v25 = vadd.f32 %v2017_v38, %v7198_v36  ;;  %v2198_v16 = vpop.f32.mrf.mxu2 }
 0x4e7   :  { %5139 = vpow2.f32 %v2530_v33  ;;  %v2638_v50 = vadd.f32 %v7826_v3, %v7821_v52  ;;  %3213 = vst [vmem:[#allocation2 + $0x78] sm:$0xff] %v2813_v7 }
 0x4e8   :  { %v2818_v11 = vadd.f32 %v5134_v32, %v2817_v39  ;;  %5141 = vpow2.f32 %v2532_v63  ;;  %3449 = vmatmul.bf16.gmra.mxu1 %v3268_v46  ;;  %3538 = vmatmul.bf16.gmra.mxu3 %v3269_v61  ;;  %v7849_v47 = vadd.f32 %v2106_v59, %v2018_v25  ;;  %v2021_v59 = vadd.f32 %v2020_v45, %v7198_v36 }
 0x4e9   :  { %2375 = vmax.xlane.f32.xlu0 %v2374_v37  ;;  %2639 = vadd.xlane.f32.xlu1 %v2638_v50 }
 0x4ea   :  { %v2358_v53 = vpop.xlane.xlu0 %2357  ;;  %v2822_v31 = vsel %vm2821_vm4, %v5134_v32, %v2818_v11 }
 0x4eb   :  { %v2434_v13 = vsub.f32 %v7464_v42, %v2358_v53  ;;  %v2435_v9 = vsub.f32 %v7462_v58, %v2358_v53  ;;  %v2827_v55 = vsel %vm2824_vm5, %v2826_v5, %v2822_v31  ;;  %v2109_v42 = vpop.f32.mrf.mxu3  ;;  %v2377_v58 = vmax.f32 %v7849_v47, %v7837_v44  ;;  %v2022_v39 = vpop.f32.mrf.mxu1 }
 0x4ec   :  { %v7842_v28 = vmul.f32 %v7442_v14, %v2827_v55  ;;  %v7845_v38 = vmul.f32 %v7446_v48, %v2827_v55  ;;  %v2199_v48 = vadd.f32 %v2198_v16, %v7200_v56  ;;  %v7865_v33 = vadd.f32 %v2109_v42, %v2021_v59 }
 0x4ed   :  { %v7847_v4 = vpop.eup %5139  ;;  %v2534_v32 = vmul.f32 1.442695, %v2434_v13  ;;  %v2536_v17 = vmul.f32 1.442695, %v2435_v9  ;;  %v2289_v46 = vpop.f32.mrf.mxu0  ;;  %v2023_v49 = vadd.f32 %v2022_v39, %v7198_v36 }
 0x4ee   :  { %v7851_v2 = vpop.eup %5141  ;;  %3214 = vst [vmem:[#allocation2 + $0x80] sm:$0xff] %v7842_v28  ;;  %v7861_v23 = vadd.f32 %v2287_v6, %v2199_v48  ;;  %v2200_v7 = vpop.f32.mrf.mxu2 }
 0x4ef   :  { %5143 = vpow2.f32 %v2534_v32  ;;  %v2641_v14 = vadd.f32 %v7851_v2, %v7847_v4  ;;  %3215 = vst [vmem:[#allocation2 + $0x88] sm:$0xff] %v7845_v38  ;;  %v2201_v11 = vadd.f32 %v2200_v7, %v7200_v56 }
 0x4f0   :  { %5145 = vpow2.f32 %v2536_v17  ;;  %v2380_v61 = vmax.f32 %v7865_v33, %v7861_v23 }
 0x4f1   :  { %2378 = vmax.xlane.f32.xlu1 %v2377_v58  ;;  %2642 = vadd.xlane.f32.xlu2 %v2641_v14  ;;  %v7875_v5 = vadd.f32 %v2289_v46, %v2201_v11 }
 0x4f3   :  { %v2111_v50 = vpop.f32.mrf.mxu3  ;;  %v2025_v31 = vpop.f32.mrf.mxu1 }
 0x4f4   :  { %v7877_v25 = vadd.f32 %v2111_v50, %v2023_v49  ;;  %v2026_v45 = vadd.f32 %v2025_v31, %v7198_v36 }
 0x4f5   :  { %v7863_v10 = vpop.eup %5143  ;;  %v2292_v13 = vpop.f32.mrf.mxu0 }
 0x4f6   :  { %9268 = vst [vmem:[#allocation6_spill] sm:$0xff] %v7863_v10  ;;  %v7867_v63 = vpop.eup %5145  ;;  %v2203_v16 = vpop.f32.mrf.mxu2  ;;  %v2383_v53 = vmax.f32 %v7877_v25, %v7875_v5 }
 0x4f7   :  { %9269 = vst [vmem:[#allocation7_spill] sm:$0xff] %v7867_v63  ;;  %v2644_v37 = vadd.f32 %v7867_v63, %v7863_v10  ;;  %v2204_v9 = vadd.f32 %v2203_v16, %v7200_v56 }
 0x4f9   :  { %2381 = vmax.xlane.f32.xlu1 %v2380_v61  ;;  %2645 = vadd.xlane.f32.xlu2 %v2644_v37  ;;  %v7883_v6 = vadd.f32 %v2292_v13, %v2204_v9 }
 0x4fb   :  { %v2114_v55 = vpop.f32.mrf.mxu3  ;;  %9270 = vst [vmem:[#allocation8_spill] sm:$0xff] %v7883_v6  ;;  %v7889_v42 = vpop.f32.mrf.mxu1 }
 0x4fc   :  { %v7885_v32 = vadd.f32 %v2114_v55, %v2026_v45 }
 0x4fe   :  { %9271 = vst [vmem:[#allocation9_spill] sm:$0xff] %v7885_v32  ;;  %v2386_v17 = vmax.f32 %v7885_v32, %v7883_v6 }
 0x501   :  { %2384 = vmax.xlane.f32.xlu2 %v2383_v53 }
 0x503   :  { %v7891_v58 = vpop.f32.mrf.mxu3  ;;  %v7893_v14 = vpop.f32.mrf.mxu1 }
 0x509   :  { %2387 = vmax.xlane.f32.xlu2 %v2386_v17 }
 0x50b   :  { %v7895_v59 = vpop.f32.mrf.mxu3  ;;  %v7897_v61 = vpop.f32.mrf.mxu1 }
 0x513   :  { %v7899_v31 = vpop.f32.mrf.mxu3 }
 0x524   :  { %v2619_v48 = vpop.xlane.xlu1 %2618 }
 0x525   :  { %5147 = vrcp.f32 %v2619_v48  ;;  %v2841_v50 = vand.u32 2147483648, %v2619_v48  ;;  %v2839_v49 = vand.u32 2147483647, %v2619_v48  ;;  %vm2835_vm7 = vweird.f32 %v2619_v48 }
 0x527   :  { %v2842_v13 = vor.u32 1.1754944e-38, %v2841_v50  ;;  %vm2840_vm9 = vcmp.eq.f32.partialorder %v2839_v49, 8.507059e+37 }
 0x52b   :  { %v5148_v7 = vpop.eup %5147 }
 0x52c   :  { %v2831_v39 = vmul.f32 %v5148_v7, %v2619_v48  ;;  %v2622_v46 = vpop.xlane.xlu1 %2621  ;;  %vm2836_vm6 = vweird.f32 %v5148_v7  ;;  %v7908_v48 = vld [vmem:[%s9220_s8] ss:$0 sm:$0xff] }
 0x52d   :  { %5149 = vrcp.f32 %v2622_v46  ;;  %vm2837_vm8 = vmor %vm2835_vm7, %vm2836_vm6  ;;  %v2857_v32 = vand.u32 2147483648, %v2622_v46  ;;  %vm2851_vm11 = vweird.f32 %v2622_v46 }
 0x52e   :  { %v2832_v37 = vsub.f32 1.0, %v2831_v39 }
 0x530   :  { %v2833_v11 = vmul.f32 %v5148_v7, %v2832_v37 }
 0x532   :  { %v2834_v16 = vadd.f32 %v5148_v7, %v2833_v11  ;;  %v9272_v11 = vld [vmem:[#allocation5_spill] sm:$0xff] }
 0x533   :  { %v5150_v53 = vpop.eup %5149 }
 0x534   :  { %v2847_v9 = vmul.f32 %v5150_v53, %v2622_v46  ;;  %v2361_v55 = vpop.xlane.xlu1 %2360  ;;  %v2838_v45 = vsel %vm2837_vm8, %v5148_v7, %v2834_v16  ;;  %v7903_v6 = vpop.xlane.xlu2 %2624  ;;  %vm2852_vm10 = vweird.f32 %v5150_v53 }
 0x535   :  { %v2436_v17 = vsub.f32 %v7590_v22, %v2361_v55  ;;  %v2437_v63 = vsub.f32 %v7584_v40, %v2361_v55  ;;  %v3435_v39 = vpop.f32.mrf.mxu1  ;;  %v2843_v10 = vsel %vm2840_vm9, %v2842_v13, %v2838_v45  ;;  %5151 = vrcp.f32 %v7903_v6  ;;  %vm2853_vm12 = vmor %vm2851_vm11, %vm2852_vm10 }
 0x536   :  { %v2848_v37 = vsub.f32 1.0, %v2847_v9  ;;  %v2844_v50 = vmul.f32 %v7527_v18, %v2843_v10  ;;  %v2845_v49 = vmul.f32 %v9272_v11, %v2843_v10  ;;  %v2855_v22 = vand.u32 2147483647, %v2622_v46 }
 0x537   :  { %v2538_v7 = vmul.f32 1.442695, %v2436_v17  ;;  %v2540_v16 = vmul.f32 1.442695, %v2437_v63  ;;  %v3436_v18 = vadd.f32 %v7908_v48, %v3435_v39  ;;  %v2858_v10 = vor.u32 1.1754944e-38, %v2857_v32 }
 0x538   :  { %v2849_v40 = vmul.f32 %v5150_v53, %v2848_v37  ;;  %3216 = vst [vmem:[#allocation2 + $0x90] sm:$0xff] %v2844_v50  ;;  %v3270_v13 = vpack.c.bf16 %v2844_v50, %v7842_v28  ;;  %v3271_v9 = vpack.c.bf16 %v2845_v49, %v7845_v38  ;;  %vm2856_vm13 = vcmp.eq.f32.partialorder %v2855_v22, 8.507059e+37 }
 0x539   :  { %5153 = vpow2.f32 %v2538_v7  ;;  %3217 = vst [vmem:[#allocation2 + $0x98] sm:$0xff] %v2845_v49  ;;  %vm2867_vm15 = vweird.f32 %v7903_v6 }
 0x53a   :  { %v2850_v55 = vadd.f32 %v5150_v53, %v2849_v40  ;;  %5155 = vpow2.f32 %v2540_v16  ;;  %3454 = vmatmul.bf16.gmra.mxu1 %v3270_v13  ;;  %3543 = vmatmul.bf16.gmra.mxu3 %v3271_v9  ;;  %v2873_v13 = vand.u32 2147483648, %v7903_v6  ;;  %v2205_v9 = vpop.f32.mrf.mxu2 }
 0x53b   :  { %v3524_v63 = vpop.f32.mrf.mxu3  ;;  %v5152_v28 = vpop.eup %5151 }
 0x53c   :  { %v2364_v45 = vpop.xlane.xlu1 %2363  ;;  %v7916_v17 = vadd.f32 %v3524_v63, %v3436_v18  ;;  %v2854_v37 = vsel %vm2853_vm12, %v5150_v53, %v2850_v55  ;;  %v2863_v39 = vmul.f32 %v5152_v28, %v7903_v6  ;;  %v7923_v49 = vpop.xlane.xlu2 %2627  ;;  %vm2868_vm14 = vweird.f32 %v5152_v28 }
 0x53d   :  { %v2438_v50 = vsub.f32 %v7644_v15, %v2364_v45  ;;  %v2439_v38 = vsub.f32 %v7629_v43, %v2364_v45  ;;  %v7920_v11 = vpop.f32.mrf.mxu1  ;;  %v2859_v46 = vsel %vm2856_vm13, %v2858_v10, %v2854_v37  ;;  %5157 = vrcp.f32 %v7923_v49  ;;  %v2294_v45 = vpop.f32.mrf.mxu0  ;;  %vm7949_vm0 = vmor %vm2867_vm15, %vm2868_vm14 }
 0x53e   :  { %9273 = vst [vmem:[#allocation10_spill] sm:$0xff] %v7916_v17  ;;  %v7926_v32 = vmul.f32 %v7547_v29, %v2859_v46  ;;  %v2864_v15 = vsub.f32 1.0, %v2863_v39  ;;  %v7935_v43 = vmul.f32 %v7553_v60, %v2859_v46  ;;  %v2871_v55 = vand.u32 2147483647, %v7903_v6 }
 0x53f   :  { %9274 = vst [vmem:[#allocation11_spill] sm:$0xff] %v7920_v11  ;;  %v7928_v7 = vpop.eup %5153  ;;  %v2542_v16 = vmul.f32 1.442695, %v2438_v50  ;;  %v2544_v40 = vmul.f32 1.442695, %v2439_v38  ;;  %v2206_v50 = vadd.f32 %v2205_v9, %v7200_v56  ;;  %v2874_v38 = vor.u32 1.1754944e-38, %v2873_v13 }
 0x540   :  { %v7931_v53 = vpop.eup %5155  ;;  %3218 = vst [vmem:[#allocation2 + $0xa0] sm:$0xff] %v7926_v32  ;;  %v2865_v29 = vmul.f32 %v5152_v28, %v2864_v15  ;;  %vm2872_vm1 = vcmp.eq.f32.partialorder %v2871_v55, 8.507059e+37  ;;  %v2028_v13 = vadd.f32 %v7889_v42, %v7198_v36  ;;  %vm2883_vm3 = vweird.f32 %v7923_v49 }
 0x541   :  { %9275 = vst [vmem:[#allocation12_spill] sm:$0xff] %v7931_v53  ;;  %5159 = vpow2.f32 %v2542_v16  ;;  %v2647_v22 = vadd.f32 %v7931_v53, %v7928_v7  ;;  %v7967_v9 = vadd.f32 %v2294_v45, %v2206_v50  ;;  %v2887_v45 = vand.u32 2147483647, %v7923_v49 }
 0x542   :  { %5161 = vpow2.f32 %v2544_v40  ;;  %3219 = vst [vmem:[#allocation2 + $0xa8] sm:$0xff] %v7935_v43  ;;  %v2866_v10 = vadd.f32 %v5152_v28, %v2865_v29 }
 0x543   :  { %2648 = vadd.xlane.f32.xlu0 %v2647_v22  ;;  %v7942_v18 = vpop.f32.mrf.mxu3  ;;  %v7947_v63 = vpop.eup %5157  ;;  %vm2888_vm5 = vcmp.eq.f32.partialorder %v2887_v45, 8.507059e+37 }
 0x544   :  { %9276 = vst [vmem:[#allocation13_spill] sm:$0xff] %v7942_v18  ;;  %v7945_v60 = vpop.xlane.xlu0 %2630  ;;  %v2879_v46 = vmul.f32 %v7947_v63, %v7923_v49  ;;  %v2367_v39 = vpop.xlane.xlu2 %2366  ;;  %v2870_v6 = vsel %vm7949_vm0, %v5152_v28, %v2866_v10  ;;  %vm2884_vm2 = vweird.f32 %v7947_v63 }
 0x545   :  { %5163 = vrcp.f32 %v7945_v60  ;;  %v3440_v16 = vpop.f32.mrf.mxu1  ;;  %v2440_v15 = vsub.f32 %v7711_v1, %v2367_v39  ;;  %v2441_v22 = vsub.f32 %v7691_v34, %v2367_v39  ;;  %v2875_v11 = vsel %vm2872_vm1, %v2874_v38, %v2870_v6  ;;  %vm7992_vm4 = vmor %vm2883_vm3, %vm2884_vm2 }
 0x546   :  { %v2880_v18 = vsub.f32 1.0, %v2879_v46  ;;  %v2876_v55 = vmul.f32 %v7601_v20, %v2875_v11  ;;  %v2889_v34 = vand.u32 2147483648, %v7923_v49  ;;  %v2877_v10 = vmul.f32 %v7607_v0, %v2875_v11 }
 0x547   :  { %v7959_v40 = vpop.eup %5159  ;;  %v2546_v17 = vmul.f32 1.442695, %v2440_v15  ;;  %v2548_v53 = vmul.f32 1.442695, %v2441_v22  ;;  %v3441_v50 = vadd.f32 %v7908_v48, %v3440_v16  ;;  %v7988_v11 = vadd.f32 %v7891_v58, %v2028_v13  ;;  %v2208_v22 = vpop.f32.mrf.mxu2 }
 0x548   :  { %v7963_v29 = vpop.eup %5161  ;;  %v2881_v1 = vmul.f32 %v7947_v63, %v2880_v18  ;;  %3220 = vst [vmem:[#allocation2 + $0xb0] sm:$0xff] %v2876_v55  ;;  %v3272_v37 = vpack.c.bf16 %v2876_v55, %v7926_v32  ;;  %v3273_v49 = vpack.c.bf16 %v2877_v10, %v7935_v43  ;;  %vm2899_vm7 = vweird.f32 %v7945_v60 }
 0x549   :  { %v2650_v28 = vadd.f32 %v7963_v29, %v7959_v40  ;;  %5165 = vpow2.f32 %v2546_v17  ;;  %3221 = vst [vmem:[#allocation2 + $0xb8] sm:$0xff] %v2877_v10  ;;  %v2389_v43 = vmax.f32 %v7988_v11, %v7967_v9 }
 0x54a   :  { %v2882_v20 = vadd.f32 %v7947_v63, %v2881_v1  ;;  %5167 = vpow2.f32 %v2548_v53  ;;  %3459 = vmatmul.bf16.gmra.mxu1 %v3272_v37  ;;  %v2890_v53 = vor.u32 1.1754944e-38, %v2889_v34  ;;  %3548 = vmatmul.bf16.gmra.mxu3 %v3273_v49  ;;  %v2297_v1 = vpop.f32.mrf.mxu0 }
 0x54b   :  { %v7976_v42 = vpop.eup %5163  ;;  %2651 = vadd.xlane.f32.xlu0 %v2650_v28  ;;  %v3529_v32 = vpop.f32.mrf.mxu3  ;;  %v2905_v28 = vand.u32 2147483648, %v7945_v60 }
 0x54c   :  { %v2895_v18 = vmul.f32 %v7976_v42, %v7945_v60  ;;  %v7985_v0 = vpop.xlane.xlu0 %2633  ;;  %v7998_v46 = vadd.f32 %v3529_v32, %v3441_v50  ;;  %v2370_v39 = vpop.xlane.xlu2 %2369  ;;  %v2886_v58 = vsel %vm7992_vm4, %v7947_v63, %v2882_v20  ;;  %vm2900_vm6 = vweird.f32 %v7976_v42 }
 0x54d   :  { %5169 = vrcp.f32 %v7985_v0  ;;  %v2442_v16 = vsub.f32 %v7745_v26, %v2370_v39  ;;  %v2443_v6 = vsub.f32 %v7748_v62, %v2370_v39  ;;  %v8005_v15 = vpop.f32.mrf.mxu1  ;;  %v2891_v55 = vsel %vm2888_vm5, %v2890_v53, %v2886_v58  ;;  %vm8030_vm8 = vmor %vm2899_vm7, %vm2900_vm6 }
 0x54e   :  { %v2896_v38 = vsub.f32 1.0, %v2895_v18  ;;  %v8015_v62 = vmul.f32 %v7652_v19, %v2891_v55  ;;  %v8018_v10 = vmul.f32 %v7659_v21, %v2891_v55  ;;  %v2903_v20 = vand.u32 2147483647, %v7945_v60 }
 0x54f   :  { %v8012_v63 = vpop.eup %5165  ;;  %v2550_v34 = vmul.f32 1.442695, %v2442_v16  ;;  %v2552_v26 = vmul.f32 1.442695, %v2443_v6  ;;  %v2209_v50 = vadd.f32 %v2208_v22, %v7200_v56  ;;  %v2031_v53 = vadd.f32 %v7893_v14, %v7198_v36 }
 0x550   :  { %v2897_v13 = vmul.f32 %v7976_v42, %v2896_v38  ;;  %v8020_v45 = vpop.eup %5167  ;;  %3222 = vst [vmem:[#allocation2 + $0xc0] sm:$0xff] %v8015_v62  ;;  %v2906_v39 = vor.u32 1.1754944e-38, %v2905_v28  ;;  %vm2904_vm9 = vcmp.eq.f32.partialorder %v2903_v20, 8.507059e+37  ;;  %v2210_v20 = vpop.f32.mrf.mxu2  ;;  %vm2915_vm11 = vweird.f32 %v7985_v0 }
 0x551   :  { %5171 = vpow2.f32 %v2550_v34  ;;  %v2653_v21 = vadd.f32 %v8020_v45, %v8012_v63  ;;  %3223 = vst [vmem:[#allocation2 + $0xc8] sm:$0xff] %v8018_v10  ;;  %v8047_v38 = vadd.f32 %v2297_v1, %v2209_v50  ;;  %v2919_v34 = vand.u32 2147483647, %v7985_v0 }
 0x552   :  { %v2898_v37 = vadd.f32 %v7976_v42, %v2897_v13  ;;  %5173 = vpow2.f32 %v2552_v26 }
 0x553   :  { %v8025_v18 = vpop.eup %5169  ;;  %2390 = vmax.xlane.f32.xlu0 %v2389_v43  ;;  %2654 = vadd.xlane.f32.xlu1 %v2653_v21  ;;  %v8050_v58 = vpop.f32.mrf.mxu3  ;;  %vm2920_vm13 = vcmp.eq.f32.partialorder %v2919_v34, 8.507059e+37 }
 0x554   :  { %v2911_v60 = vmul.f32 %v8025_v18, %v7985_v0  ;;  %v8039_v17 = vpop.xlane.xlu1 %2636  ;;  %v2373_v49 = vpop.xlane.xlu0 %2372  ;;  %v2902_v32 = vsel %vm8030_vm8, %v7976_v42, %v2898_v37  ;;  %v8055_v42 = vadd.f32 %v7895_v59, %v2031_v53  ;;  %vm2916_vm10 = vweird.f32 %v8025_v18 }
 0x555   :  { %5175 = vrcp.f32 %v8039_v17  ;;  %v2444_v6 = vsub.f32 %v7790_v30, %v2373_v49  ;;  %v2445_v43 = vsub.f32 %v7778_v8, %v2373_v49  ;;  %v2907_v14 = vsel %vm2904_vm9, %v2906_v39, %v2902_v32  ;;  %v3445_v26 = vpop.f32.mrf.mxu1  ;;  %v2299_v21 = vpop.f32.mrf.mxu0  ;;  %vm8076_vm12 = vmor %vm2915_vm11, %vm2916_vm10 }
 0x556   :  { %v2912_v16 = vsub.f32 1.0, %v2911_v60  ;;  %v2908_v55 = vmul.f32 %v7693_v27, %v2907_v14  ;;  %v2921_v30 = vand.u32 2147483648, %v7985_v0  ;;  %v2392_v8 = vmax.f32 %v8055_v42, %v8047_v38 }
 0x557   :  { %v2554_v13 = vmul.f32 1.442695, %v2444_v6  ;;  %v2556_v28 = vmul.f32 1.442695, %v2445_v43  ;;  %v8060_v1 = vpop.eup %5171  ;;  %v2909_v59 = vmul.f32 %v7703_v54, %v2907_v14  ;;  %v3446_v49 = vadd.f32 %v7908_v48, %v3445_v26 }
 0x558   :  { %v2913_v22 = vmul.f32 %v8025_v18, %v2912_v16  ;;  %v8067_v37 = vpop.eup %5173  ;;  %3224 = vst [vmem:[#allocation2 + $0xd0] sm:$0xff] %v2908_v55  ;;  %v3274_v27 = vpack.c.bf16 %v2908_v55, %v8015_v62  ;;  %v2211_v16 = vadd.f32 %v2210_v20, %v7200_v56  ;;  %v2922_v6 = vor.u32 1.1754944e-38, %v2921_v30 }
 0x559   :  { %5177 = vpow2.f32 %v2554_v13  ;;  %v2656_v54 = vadd.f32 %v8067_v37, %v8060_v1  ;;  %3225 = vst [vmem:[#allocation2 + $0xd8] sm:$0xff] %v2909_v59  ;;  %v3275_v0 = vpack.c.bf16 %v2909_v59, %v8018_v10  ;;  %vm2931_vm15 = vweird.f32 %v8039_v17 }
 0x55a   :  { %v2914_v50 = vadd.f32 %v8025_v18, %v2913_v22  ;;  %5179 = vpow2.f32 %v2556_v28  ;;  %3464 = vmatmul.bf16.gmra.mxu1 %v3274_v27  ;;  %v2033_v28 = vadd.f32 %v7897_v61, %v7198_v36  ;;  %v2937_v36 = vand.u32 2147483648, %v8039_v17 }
 0x55b   :  { %v8072_v19 = vpop.eup %5175  ;;  %2393 = vmax.xlane.f32.xlu0 %v2392_v8  ;;  %2657 = vadd.xlane.f32.xlu1 %v2656_v54  ;;  %v3534_v10 = vpop.f32.mrf.mxu3  ;;  %v2935_v20 = vand.u32 2147483647, %v8039_v17 }
 0x55c   :  { %v2927_v62 = vmul.f32 %v8072_v19, %v8039_v17  ;;  %v8086_v32 = vpop.xlane.xlu1 %2639  ;;  %v2376_v53 = vpop.xlane.xlu0 %2375  ;;  %v2918_v39 = vsel %vm8076_vm12, %v8025_v18, %v2914_v50  ;;  %v8093_v14 = vadd.f32 %v3534_v10, %v3446_v49  ;;  %v8099_v18 = vadd.f32 %v2299_v21, %v2211_v16  ;;  %3553 = vmatmul.bf16.gmra.mxu3 %v3275_v0 }
 0x55d   :  { %5181 = vrcp.f32 %v8086_v32  ;;  %v2446_v22 = vsub.f32 %v7823_v24, %v2376_v53  ;;  %v2447_v13 = vsub.f32 %v7814_v12, %v2376_v53  ;;  %vm2932_vm14 = vweird.f32 %v8072_v19 }
 0x55e   :  { %v2928_v43 = vsub.f32 1.0, %v2927_v62  ;;  %v2923_v56 = vsel %vm2920_vm13, %v2922_v6, %v2918_v39  ;;  %v8109_v12 = vadd.f32 %v7899_v31, %v2033_v28  ;;  %vm8120_vm0 = vmor %vm2931_vm15, %vm2932_vm14  ;;  %v2938_v54 = vor.u32 1.1754944e-38, %v2937_v36 }
 0x55f   :  { %v8102_v55 = vpop.eup %5177  ;;  %v2558_v30 = vmul.f32 1.442695, %v2446_v22  ;;  %v2560_v26 = vmul.f32 1.442695, %v2447_v13  ;;  %v2924_v8 = vmul.f32 %v7750_v57, %v2923_v56  ;;  %v2925_v61 = vmul.f32 %v7754_v51, %v2923_v56 }
 0x560   :  { %v2929_v34 = vmul.f32 %v8072_v19, %v2928_v43  ;;  %v8106_v24 = vpop.eup %5179  ;;  %v2395_v51 = vmax.f32 %v8109_v12, %v8099_v18  ;;  %vm2936_vm1 = vcmp.eq.f32.partialorder %v2935_v20, 8.507059e+37  ;;  %vm2947_vm2 = vweird.f32 %v8086_v32 }
 0x561   :  { %5183 = vpow2.f32 %v2558_v30  ;;  %v2659_v50 = vadd.f32 %v8106_v24, %v8102_v55  ;;  %3226 = vst [vmem:[#allocation2 + $0xe0] sm:$0xff] %v2924_v8  ;;  %v2953_v43 = vand.u32 2147483648, %v8086_v32  ;;  %v2951_v13 = vand.u32 2147483647, %v8086_v32 }
 0x562   :  { %v2930_v59 = vadd.f32 %v8072_v19, %v2929_v34  ;;  %5185 = vpow2.f32 %v2560_v26  ;;  %3227 = vst [vmem:[#allocation2 + $0xe8] sm:$0xff] %v2925_v61 }
 0x563   :  { %v5182_v57 = vpop.eup %5181  ;;  %2660 = vadd.xlane.f32.xlu2 %v2659_v50  ;;  %2396 = vmax.xlane.f32.xlu1 %v2395_v51  ;;  %vm2952_vm5 = vcmp.eq.f32.partialorder %v2951_v13, 8.507059e+37 }
 0x564   :  { %v2943_v27 = vmul.f32 %v5182_v57, %v8086_v32  ;;  %v2379_v17 = vpop.xlane.xlu1 %2378  ;;  %v8127_v21 = vpop.xlane.xlu2 %2642  ;;  %v2934_v60 = vsel %vm8120_vm0, %v8072_v19, %v2930_v59  ;;  %vm2948_vm3 = vweird.f32 %v5182_v57  ;;  %v2954_v59 = vor.u32 1.1754944e-38, %v2953_v43 }
 0x565   :  { %v2448_v0 = vsub.f32 %v7849_v47, %v2379_v17  ;;  %v2449_v62 = vsub.f32 %v7837_v44, %v2379_v17  ;;  %5187 = vrcp.f32 %v8127_v21  ;;  %v2939_v16 = vsel %vm2936_vm1, %v2938_v54, %v2934_v60  ;;  %vm8146_vm4 = vmor %vm2947_vm2, %vm2948_vm3 }
 0x566   :  { %v2944_v49 = vsub.f32 1.0, %v2943_v27  ;;  %v2940_v44 = vmul.f32 %v7793_v35, %v2939_v16  ;;  %v2941_v47 = vmul.f32 %v7801_v41, %v2939_v16  ;;  %v2967_v54 = vand.u32 2147483647, %v8127_v21 }
 0x567   :  { %v2562_v53 = vmul.f32 1.442695, %v2448_v0  ;;  %v2564_v39 = vmul.f32 1.442695, %v2449_v62  ;;  %v8135_v6 = vpop.eup %5183  ;;  %vm2963_vm7 = vweird.f32 %v8127_v21 }
 0x568   :  { %v2945_v10 = vmul.f32 %v5182_v57, %v2944_v49  ;;  %v8138_v19 = vpop.eup %5185  ;;  %3228 = vst [vmem:[#allocation2 + $0xf0] sm:$0xff] %v2940_v44  ;;  %v3276_v30 = vpack.c.bf16 %v2940_v44, %v2924_v8  ;;  %v3277_v26 = vpack.c.bf16 %v2941_v47, %v2925_v61  ;;  %v2969_v61 = vand.u32 2147483648, %v8127_v21 }
 0x569   :  { %5189 = vpow2.f32 %v2562_v53  ;;  %v2662_v28 = vadd.f32 %v8138_v19, %v8135_v6  ;;  %3229 = vst [vmem:[#allocation2 + $0xf8] sm:$0xff] %v2941_v47  ;;  %vm2968_vm9 = vcmp.eq.f32.partialorder %v2967_v54, 8.507059e+37 }
 0x56a   :  { %v2946_v22 = vadd.f32 %v5182_v57, %v2945_v10  ;;  %5191 = vpow2.f32 %v2564_v39  ;;  %3469 = vmatmul.bf16.gmra.mxu1 %v3276_v30  ;;  %v2970_v53 = vor.u32 1.1754944e-38, %v2969_v61 }
 0x56b   :  { %v5188_v56 = vpop.eup %5187  ;;  %2663 = vadd.xlane.f32.xlu2 %v2662_v28 }
 0x56c   :  { %v2959_v36 = vmul.f32 %v5188_v56, %v8127_v21  ;;  %v2382_v35 = vpop.xlane.xlu1 %2381  ;;  %v2646_v41 = vpop.xlane.xlu2 %2645  ;;  %v2950_v32 = vsel %vm8146_vm4, %v5182_v57, %v2946_v22  ;;  %3558 = vmatmul.bf16.gmra.mxu3 %v3277_v26  ;;  %vm2964_vm6 = vweird.f32 %v5188_v56 }
 0x56d   :  { %v2450_v20 = vsub.f32 %v7865_v33, %v2382_v35  ;;  %v2451_v50 = vsub.f32 %v7861_v23, %v2382_v35  ;;  %5193 = vrcp.f32 %v2646_v41  ;;  %v2955_v17 = vsel %vm2952_vm5, %v2954_v59, %v2950_v32  ;;  %vm2965_vm8 = vmor %vm2963_vm7, %vm2964_vm6  ;;  %v9289_v59 = vld [vmem:[#allocation9_spill] sm:$0xff] }
 0x56e   :  { %v2960_v31 = vsub.f32 1.0, %v2959_v36  ;;  %v2956_v33 = vmul.f32 %v7821_v52, %v2955_v17  ;;  %v2957_v0 = vmul.f32 %v7826_v3, %v2955_v17  ;;  %v2985_v13 = vand.u32 2147483648, %v2646_v41  ;;  %v9292_v17 = vld [vmem:[#allocation7_spill] sm:$0xff] }
 0x56f   :  { %v8155_v8 = vpop.eup %5189  ;;  %v2566_v51 = vmul.f32 1.442695, %v2450_v20  ;;  %v2568_v27 = vmul.f32 1.442695, %v2451_v50  ;;  %vm2979_vm11 = vweird.f32 %v2646_v41  ;;  %v9290_v50 = vld [vmem:[#allocation8_spill] sm:$0xff]  ;;  %vm3604_vm6 = vcmask 146432  }
 0x570   :  { %v8158_v60 = vpop.eup %5191  ;;  %v2961_v57 = vmul.f32 %v5188_v56, %v2960_v31  ;;  %3230 = vst [vmem:[#allocation2 + $0x100] sm:$0xff] %v2956_v33 }
 0x571   :  { %5195 = vpow2.f32 %v2566_v51  ;;  %v2665_v23 = vadd.f32 %v8158_v60, %v8155_v8  ;;  %3231 = vst [vmem:[#allocation2 + $0x108] sm:$0xff] %v2957_v0  ;;  %v9291_v51 = vld [vmem:[#allocation6_spill] sm:$0xff] }
 0x572   :  { %v2962_v62 = vadd.f32 %v5188_v56, %v2961_v57  ;;  %5197 = vpow2.f32 %v2568_v27 }
 0x573   :  { %v5194_v49 = vpop.eup %5193  ;;  %2666 = vadd.xlane.f32.xlu0 %v2665_v23 }
 0x574   :  { %v2975_v39 = vmul.f32 %v5194_v49, %v2646_v41  ;;  %v2385_v16 = vpop.xlane.xlu2 %2384  ;;  %v2966_v10 = vsel %vm2965_vm8, %v5188_v56, %v2962_v62  ;;  %vm2980_vm10 = vweird.f32 %v5194_v49  ;;  %v2983_v56 = vand.u32 2147483647, %v2646_v41 }
 0x575   :  { %v2452_v43 = vsub.f32 %v7877_v25, %v2385_v16  ;;  %v2453_v52 = vsub.f32 %v7875_v5, %v2385_v16  ;;  %v2971_v44 = vsel %vm2968_vm9, %v2970_v53, %v2966_v10  ;;  %vm2981_vm12 = vmor %vm2979_vm11, %vm2980_vm10  ;;  %v8200_v16 = vpop.f32.mrf.mxu3 }
 0x576   :  { %v2976_v3 = vsub.f32 1.0, %v2975_v39  ;;  %v2972_v47 = vmul.f32 %v7847_v4, %v2971_v44  ;;  %v2973_v21 = vmul.f32 %v7851_v2, %v2971_v44  ;;  %v2986_v2 = vor.u32 1.1754944e-38, %v2985_v13  ;;  %v8198_v39 = vpop.f32.mrf.mxu1 }
 0x577   :  { %v8170_v22 = vpop.eup %5195  ;;  %v2570_v28 = vmul.f32 1.442695, %v2452_v43  ;;  %v2572_v34 = vmul.f32 1.442695, %v2453_v52  ;;  %vm2984_vm13 = vcmp.eq.f32.partialorder %v2983_v56, 8.507059e+37 }
 0x578   :  { %v8172_v30 = vpop.eup %5197  ;;  %v2977_v26 = vmul.f32 %v5194_v49, %v2976_v3  ;;  %3232 = vst [vmem:[#allocation2 + $0x110] sm:$0xff] %v2972_v47  ;;  %v3278_v25 = vpack.c.bf16 %v2972_v47, %v2956_v33  ;;  %v3279_v36 = vpack.c.bf16 %v2973_v21, %v2957_v0 }
 0x579   :  { %5199 = vpow2.f32 %v2570_v28  ;;  %v2668_v5 = vadd.f32 %v8172_v30, %v8170_v22  ;;  %3233 = vst [vmem:[#allocation2 + $0x118] sm:$0xff] %v2973_v21 }
 0x57a   :  { %v2978_v4 = vadd.f32 %v5194_v49, %v2977_v26  ;;  %5201 = vpow2.f32 %v2572_v34  ;;  %3474 = vmatmul.bf16.gmra.mxu1 %v3278_v25 }
 0x57b   :  { %2669 = vadd.xlane.f32.xlu1 %v2668_v5 }
 0x57c   :  { %v2388_v35 = vpop.xlane.xlu2 %2387  ;;  %v2982_v32 = vsel %vm2981_vm12, %v5194_v49, %v2978_v4  ;;  %3563 = vmatmul.bf16.gmra.mxu3 %v3279_v36 }
 0x57d   :  { %v2454_v20 = vsub.f32 %v9289_v59, %v2388_v35  ;;  %v2455_v31 = vsub.f32 %v9290_v50, %v2388_v35  ;;  %v2987_v61 = vsel %vm2984_vm13, %v2986_v2, %v2982_v32  ;;  %v8204_v43 = vpop.f32.mrf.mxu3 }
 0x57e   :  { %v8179_v27 = vmul.f32 %v9291_v51, %v2987_v61  ;;  %v8182_v57 = vmul.f32 %v9292_v17, %v2987_v61  ;;  %v8202_v10 = vpop.f32.mrf.mxu1 }
 0x57f   :  { %v8184_v41 = vpop.eup %5199  ;;  %v2574_v54 = vmul.f32 1.442695, %v2454_v20  ;;  %v2576_v23 = vmul.f32 1.442695, %v2455_v31 }
 0x580   :  { %v8186_v33 = vpop.eup %5201  ;;  %3234 = vst [vmem:[#allocation2 + $0x120] sm:$0xff] %v8179_v27 }
 0x581   :  { %5203 = vpow2.f32 %v2574_v54  ;;  %v2671_v0 = vadd.f32 %v8186_v33, %v8184_v41  ;;  %3235 = vst [vmem:[#allocation2 + $0x128] sm:$0xff] %v8182_v57 }
 0x582   :  { %5205 = vpow2.f32 %v2576_v23 }
 0x583   :  { %2672 = vadd.xlane.f32.xlu2 %v2671_v0  ;;  %v9293_v0 = vld [vmem:[#allocation12_spill] sm:$0xff] }
 0x585   :  { %v8208_v44 = vpop.f32.mrf.mxu3 }
 0x586   :  { %v8206_v52 = vpop.f32.mrf.mxu1 }
 0x587   :  { %v8192_v62 = vpop.eup %5203 }
 0x588   :  { %v8194_v49 = vpop.eup %5205 }
 0x589   :  { %v2674_v53 = vadd.f32 %v8194_v49, %v8192_v62 }
 0x58b   :  { %2675 = vadd.xlane.f32.xlu0 %v2674_v53 }
 0x5b6   :  { %v2649_v3 = vpop.xlane.xlu0 %2648 }
 0x5b7   :  { %5207 = vrcp.f32 %v2649_v3  ;;  %v8210_v47 = vpop.f32.mrf.mxu1  ;;  %v3001_v5 = vand.u32 2147483648, %v2649_v3  ;;  %v2999_v4 = vand.u32 2147483647, %v2649_v3  ;;  %vm2995_vm15 = vweird.f32 %v2649_v3 }
 0x5b9   :  { %v3002_v35 = vor.u32 1.1754944e-38, %v3001_v5  ;;  %vm3000_vm1 = vcmp.eq.f32.partialorder %v2999_v4, 8.507059e+37 }
 0x5bd   :  { %v5208_v21 = vpop.eup %5207  ;;  %v8212_v28 = vpop.f32.mrf.mxu3 }
 0x5be   :  { %v2991_v13 = vmul.f32 %v5208_v21, %v2649_v3  ;;  %v2652_v34 = vpop.xlane.xlu0 %2651  ;;  %vm2996_vm14 = vweird.f32 %v5208_v21 }
 0x5bf   :  { %5209 = vrcp.f32 %v2652_v34  ;;  %v8214_v56 = vpop.f32.mrf.mxu1  ;;  %vm2997_vm0 = vmor %vm2995_vm15, %vm2996_vm14  ;;  %v3015_v3 = vand.u32 2147483647, %v2652_v34  ;;  %vm3011_vm3 = vweird.f32 %v2652_v34 }
 0x5c0   :  { %v2992_v26 = vsub.f32 1.0, %v2991_v13  ;;  %v3017_v13 = vand.u32 2147483648, %v2652_v34 }
 0x5c1   :  { %vm3016_vm5 = vcmp.eq.f32.partialorder %v3015_v3, 8.507059e+37 }
 0x5c2   :  { %v2993_v25 = vmul.f32 %v5208_v21, %v2992_v26 }
 0x5c4   :  { %v2994_v2 = vadd.f32 %v5208_v21, %v2993_v25 }
 0x5c5   :  { %v5210_v36 = vpop.eup %5209  ;;  %v8220_v54 = vpop.f32.mrf.mxu3 }
 0x5c6   :  { %v3007_v32 = vmul.f32 %v5210_v36, %v2652_v34  ;;  %v2391_v59 = vpop.xlane.xlu0 %2390  ;;  %v2998_v20 = vsel %vm2997_vm0, %v5208_v21, %v2994_v2  ;;  %v8218_v17 = vpop.xlane.xlu1 %2654  ;;  %vm3012_vm2 = vweird.f32 %v5210_v36 }
 0x5c7   :  { %v2456_v50 = vsub.f32 %v7988_v11, %v2391_v59  ;;  %v2457_v31 = vsub.f32 %v7967_v9, %v2391_v59  ;;  %v3003_v61 = vsel %vm3000_vm1, %v3002_v35, %v2998_v20  ;;  %5211 = vrcp.f32 %v8218_v17  ;;  %v8225_v5 = vpop.f32.mrf.mxu1  ;;  %vm3013_vm4 = vmor %vm3011_vm3, %vm3012_vm2 }
 0x5c8   :  { %v3008_v51 = vsub.f32 1.0, %v3007_v32  ;;  %v3004_v23 = vmul.f32 %v7928_v7, %v3003_v61  ;;  %v3005_v53 = vmul.f32 %v9293_v0, %v3003_v61  ;;  %v3018_v7 = vor.u32 1.1754944e-38, %v3017_v13 }
 0x5c9   :  { %v2578_v26 = vmul.f32 1.442695, %v2456_v50  ;;  %v2580_v11 = vmul.f32 1.442695, %v2457_v31  ;;  %v3031_v3 = vand.u32 2147483647, %v8218_v17  ;;  %vm3027_vm8 = vweird.f32 %v8218_v17 }
 0x5ca   :  { %v3009_v21 = vmul.f32 %v5210_v36, %v3008_v51  ;;  %3236 = vst [vmem:[#allocation2 + $0x130] sm:$0xff] %v3004_v23  ;;  %v3280_v9 = vpack.c.bf16 %v3004_v23, %v8179_v27  ;;  %v3281_v25 = vpack.c.bf16 %v3005_v53, %v8182_v57  ;;  %v3033_v13 = vand.u32 2147483648, %v8218_v17 }
 0x5cb   :  { %3237 = vst [vmem:[#allocation2 + $0x138] sm:$0xff] %v3005_v53  ;;  %5213 = vpow2.f32 %v2578_v26  ;;  %vm3032_vm10 = vcmp.eq.f32.partialorder %v3031_v3, 8.507059e+37 }
 0x5cc   :  { %v3010_v4 = vadd.f32 %v5210_v36, %v3009_v21  ;;  %3479 = vmatmul.bf16.gmra.mxu1 %v3280_v9  ;;  %5215 = vpow2.f32 %v2580_v11  ;;  %3568 = vmatmul.bf16.gmra.mxu3 %v3281_v25 }
 0x5cd   :  { %v5212_v32 = vpop.eup %5211  ;;  %v8244_v51 = vpop.f32.mrf.mxu3 }
 0x5ce   :  { %v2394_v2 = vpop.xlane.xlu0 %2393  ;;  %v3014_v35 = vsel %vm3013_vm4, %v5210_v36, %v3010_v4  ;;  %v3023_v57 = vmul.f32 %v5212_v32, %v8218_v17  ;;  %v8233_v50 = vpop.xlane.xlu1 %2657  ;;  %vm3028_vm7 = vweird.f32 %v5212_v32  ;;  %v3034_v17 = vor.u32 1.1754944e-38, %v3033_v13 }
 0x5cf   :  { %v2458_v59 = vsub.f32 %v8055_v42, %v2394_v2  ;;  %v2459_v27 = vsub.f32 %v8047_v38, %v2394_v2  ;;  %v3019_v20 = vsel %vm3016_vm5, %v3018_v7, %v3014_v35  ;;  %5217 = vrcp.f32 %v8233_v50  ;;  %v8249_v0 = vpop.f32.mrf.mxu1  ;;  %vm8261_vm9 = vmor %vm3027_vm8, %vm3028_vm7  ;;  %v9296_v2 = vld [vmem:[#allocation10_spill] sm:$0xff] }
 0x5d0   :  { %v8236_v34 = vmul.f32 %v7959_v40, %v3019_v20  ;;  %v8239_v31 = vmul.f32 %v7963_v29, %v3019_v20  ;;  %v3024_v36 = vsub.f32 1.0, %v3023_v57  ;;  %v3605_v35 = vsel %vm3604_vm6, %v9296_v2, -inf }
 0x5d1   :  { %v8242_v61 = vpop.eup %5213  ;;  %v2582_v42 = vmul.f32 1.442695, %v2458_v59  ;;  %v2584_v38 = vmul.f32 1.442695, %v2459_v27  ;;  %vm3043_vm12 = vweird.f32 %v8233_v50 }
 0x5d2   :  { %3238 = vst [vmem:[#allocation2 + $0x140] sm:$0xff] %v8236_v34  ;;  %v8247_v23 = vpop.eup %5215  ;;  %v3025_v40 = vmul.f32 %v5212_v32, %v3024_v36 }
 0x5d3   :  { %3239 = vst [vmem:[#allocation2 + $0x148] sm:$0xff] %v8239_v31  ;;  %5219 = vpow2.f32 %v2582_v42  ;;  %v2677_v29 = vadd.f32 %v8247_v23, %v8242_v61  ;;  %v3047_v42 = vand.u32 2147483647, %v8233_v50 }
 0x5d4   :  { %5221 = vpow2.f32 %v2584_v38  ;;  %v3026_v53 = vadd.f32 %v5212_v32, %v3025_v40  ;;  %v3049_v40 = vand.u32 2147483648, %v8233_v50 }
 0x5d5   :  { %2678 = vadd.xlane.f32.xlu1 %v2677_v29  ;;  %v5218_v21 = vpop.eup %5217  ;;  %v8271_v20 = vpop.f32.mrf.mxu3  ;;  %vm3048_vm14 = vcmp.eq.f32.partialorder %v3047_v42, 8.507059e+37 }
 0x5d6   :  { %v8256_v26 = vpop.xlane.xlu2 %2660  ;;  %v3039_v11 = vmul.f32 %v5218_v21, %v8233_v50  ;;  %v2397_v9 = vpop.xlane.xlu1 %2396  ;;  %v3030_v57 = vsel %vm8261_vm9, %v5212_v32, %v3026_v53  ;;  %vm3044_vm11 = vweird.f32 %v5218_v21 }
 0x5d7   :  { %5223 = vrcp.f32 %v8256_v26  ;;  %v2460_v4 = vsub.f32 %v8109_v12, %v2397_v9  ;;  %v2461_v7 = vsub.f32 %v8099_v18, %v2397_v9  ;;  %v3035_v29 = vsel %vm3032_vm10, %v3034_v17, %v3030_v57  ;;  %v8279_v3 = vpop.f32.mrf.mxu1  ;;  %v9297_v17 = vld [vmem:[#allocation11_spill] sm:$0xff]  ;;  %vm3045_vm13 = vmor %vm3043_vm12, %vm3044_vm11 }
 0x5d8   :  { %v3040_v27 = vsub.f32 1.0, %v3039_v11  ;;  %v3036_v13 = vmul.f32 %v8012_v63, %v3035_v29  ;;  %v3037_v11 = vmul.f32 %v8020_v45, %v3035_v29  ;;  %v3443_v9 = vadd.f32 %v7908_v48, %v8005_v15 }
 0x5d9   :  { %v8269_v59 = vpop.eup %5219  ;;  %v2586_v12 = vmul.f32 1.442695, %v2460_v4  ;;  %v2588_v38 = vmul.f32 1.442695, %v2461_v7  ;;  %v3050_v15 = vor.u32 1.1754944e-38, %v3049_v40  ;;  %v3065_v29 = vand.u32 2147483648, %v8256_v26 }
 0x5da   :  { %v8275_v36 = vpop.eup %5221  ;;  %v3041_v18 = vmul.f32 %v5218_v21, %v3040_v27  ;;  %3240 = vst [vmem:[#allocation2 + $0x150] sm:$0xff] %v3036_v13  ;;  %v3282_v7 = vpack.c.bf16 %v3036_v13, %v8236_v34  ;;  %v3283_v63 = vpack.c.bf16 %v3037_v11, %v8239_v31  ;;  %v3438_v27 = vadd.f32 %v7908_v48, %v9297_v17  ;;  %v9298_v31 = vld [vmem:[#allocation13_spill] sm:$0xff] }
 0x5db   :  { %5225 = vpow2.f32 %v2586_v12  ;;  %v2680_v32 = vadd.f32 %v8275_v36, %v8269_v59  ;;  %3241 = vst [vmem:[#allocation2 + $0x158] sm:$0xff] %v3037_v11  ;;  %v8298_v50 = vadd.f32 %v8050_v58, %v3443_v9  ;;  %v3063_v42 = vand.u32 2147483647, %v8256_v26 }
 0x5dc   :  { %v3042_v25 = vadd.f32 %v5218_v21, %v3041_v18  ;;  %5227 = vpow2.f32 %v2588_v38  ;;  %3484 = vmatmul.bf16.gmra.mxu1 %v3282_v7  ;;  %3573 = vmatmul.bf16.gmra.mxu3 %v3283_v63  ;;  %v8301_v57 = vadd.f32 %v9298_v31, %v3438_v27  ;;  %vm3059_vm0 = vweird.f32 %v8256_v26 }
 0x5dd   :  { %v5224_v53 = vpop.eup %5223  ;;  %3606 = vmax.xlane.f32.xlu1 %v3605_v35  ;;  %2681 = vadd.xlane.f32.xlu2 %v2680_v32  ;;  %v3614_v9 = vsel %vm3604_vm6, %v8298_v50, -inf  ;;  %v3066_v7 = vor.u32 1.1754944e-38, %v3065_v29  ;;  %vm3064_vm2 = vcmp.eq.f32.partialorder %v3063_v42, 8.507059e+37 }
 0x5de   :  { %v3055_v4 = vmul.f32 %v5224_v53, %v8256_v26  ;;  %v8291_v45 = vpop.xlane.xlu2 %2663  ;;  %v3046_v34 = vsel %vm3045_vm13, %v5218_v21, %v3042_v25  ;;  %vm3060_vm15 = vweird.f32 %v5224_v53 }
 0x5df   :  { %5229 = vrcp.f32 %v8291_v45  ;;  %v8303_v12 = vpop.f32.mrf.mxu3  ;;  %v3051_v38 = vsel %vm3048_vm14, %v3050_v15, %v3046_v34  ;;  %vm3061_vm1 = vmor %vm3059_vm0, %vm3060_vm15  ;;  %v8328_v17 = vpop.f32.mrf.mxu1  ;;  %vm3075_vm4 = vweird.f32 %v8291_v45 }
 0x5e0   :  { %v3056_v35 = vsub.f32 1.0, %v3055_v4  ;;  %v8309_v13 = vmul.f32 %v8060_v1, %v3051_v38  ;;  %v3053_v21 = vmul.f32 %v8067_v37, %v3051_v38  ;;  %v3608_v1 = vsel %vm3604_vm6, %v8301_v57, -inf }
 0x5e1   :  { %v8305_v18 = vpop.eup %5225  ;;  %v3451_v37 = vadd.f32 %v7908_v48, %v8202_v10  ;;  %v3081_v38 = vand.u32 2147483648, %v8291_v45 }
 0x5e2   :  { %v3057_v40 = vmul.f32 %v5224_v53, %v3056_v35  ;;  %v8311_v58 = vpop.eup %5227  ;;  %3242 = vst [vmem:[#allocation2 + $0x160] sm:$0xff] %v8309_v13 }
 0x5e3   :  { %v2683_v32 = vadd.f32 %v8311_v58, %v8305_v18  ;;  %3243 = vst [vmem:[#allocation2 + $0x168] sm:$0xff] %v3053_v21  ;;  %v8332_v27 = vadd.f32 %v8204_v43, %v3451_v37 }
 0x5e4   :  { %v3058_v11 = vadd.f32 %v5224_v53, %v3057_v40  ;;  %v3079_v40 = vand.u32 2147483647, %v8291_v45 }
 0x5e5   :  { %v5230_v25 = vpop.eup %5229  ;;  %3615 = vmax.xlane.f32.xlu1 %v3614_v9  ;;  %2684 = vadd.xlane.f32.xlu0 %v2683_v32 }
 0x5e6   :  { %v8323_v4 = vpop.xlane.xlu0 %2666  ;;  %v3071_v63 = vmul.f32 %v5230_v25, %v8291_v45  ;;  %3609 = vmax.xlane.f32.xlu2 %v3608_v1  ;;  %v3062_v26 = vsel %vm3061_vm1, %v5224_v53, %v3058_v11  ;;  %vm3076_vm3 = vweird.f32 %v5230_v25  ;;  %v3611_v53 = vsel %vm3604_vm6, %v7998_v46, -inf }
 0x5e7   :  { %5231 = vrcp.f32 %v8323_v4  ;;  %v3067_v35 = vsel %vm3064_vm2, %v3066_v7, %v3062_v26  ;;  %v8334_v34 = vpop.f32.mrf.mxu3  ;;  %vm8363_vm5 = vmor %vm3075_vm4, %vm3076_vm3  ;;  %vm3080_vm7 = vcmp.eq.f32.partialorder %v3079_v40, 8.507059e+37  ;;  %vm3091_vm9 = vweird.f32 %v8323_v4 }
 0x5e8   :  { %v3072_v15 = vsub.f32 1.0, %v3071_v63  ;;  %v3068_v48 = vmul.f32 %v8102_v55, %v3067_v35  ;;  %v3069_v10 = vmul.f32 %v8106_v24, %v3067_v35  ;;  %v3623_v55 = vsel %vm3604_vm6, %v8332_v27, -inf  ;;  %v8348_v24 = vld [vmem:[%s9220_s8] ss:$0 sm:$0xff]  ;;  %v8380_v35 = vpop.f32.mrf.mxu1 }
 0x5e9   :  { %v3448_v32 = vadd.f32 %v8348_v24, %v8198_v39  ;;  %v3453_v1 = vadd.f32 %v8348_v24, %v8206_v52  ;;  %v3458_v37 = vadd.f32 %v8348_v24, %v8214_v56  ;;  %v3082_v39 = vor.u32 1.1754944e-38, %v3081_v38 }
 0x5ea   :  { %v3073_v31 = vmul.f32 %v5230_v25, %v3072_v15  ;;  %3244 = vst [vmem:[#allocation2 + $0x170] sm:$0xff] %v3068_v48  ;;  %v3284_v42 = vpack.c.bf16 %v3068_v48, %v8309_v13  ;;  %v3285_v11 = vpack.c.bf16 %v3069_v10, %v3053_v21  ;;  %v3617_v13 = vsel %vm3604_vm6, %v8093_v14, -inf }
 0x5eb   :  { %3245 = vst [vmem:[#allocation2 + $0x178] sm:$0xff] %v3069_v10  ;;  %v8369_v45 = vadd.f32 %v8200_v16, %v3448_v32  ;;  %v8374_v56 = vadd.f32 %v8208_v44, %v3453_v1  ;;  %v8377_v26 = vadd.f32 %v8220_v54, %v3458_v37  ;;  %v3097_v15 = vand.u32 2147483648, %v8323_v4 }
 0x5ec   :  { %v3074_v29 = vadd.f32 %v5230_v25, %v3073_v31  ;;  %3489 = vmatmul.bf16.gmra.mxu1 %v3284_v42  ;;  %3578 = vmatmul.bf16.gmra.mxu3 %v3285_v11  ;;  %v3095_v44 = vand.u32 2147483647, %v8323_v4  ;;  %v3466_v32 = vadd.f32 %v8348_v24, %v8279_v3 }
 0x5ed   :  { %v5232_v43 = vpop.eup %5231  ;;  %3624 = vmax.xlane.f32.xlu1 %v3623_v55  ;;  %3612 = vmax.xlane.f32.xlu0 %v3611_v53  ;;  %v3626_v53 = vsel %vm3604_vm6, %v8374_v56, -inf }
 0x5ee   :  { %v3087_v9 = vmul.f32 %v5232_v43, %v8323_v4  ;;  %v8356_v21 = vpop.xlane.xlu1 %2669  ;;  %3618 = vmax.xlane.f32.xlu2 %v3617_v13  ;;  %v3078_v52 = vsel %vm8363_vm5, %v5230_v25, %v3074_v29  ;;  %vm3092_vm8 = vweird.f32 %v5232_v43  ;;  %v3456_v4 = vadd.f32 %v8348_v24, %v8210_v47 }
 0x5ef   :  { %5233 = vrcp.f32 %v8356_v21  ;;  %v3083_v48 = vsel %vm3080_vm7, %v3082_v39, %v3078_v52  ;;  %v8389_v31 = vpop.f32.mrf.mxu3  ;;  %vm8393_vm10 = vmor %vm3091_vm9, %vm3092_vm8  ;;  %v3098_v29 = vor.u32 1.1754944e-38, %v3097_v15  ;;  %vm3096_vm11 = vcmp.eq.f32.partialorder %v3095_v44, 8.507059e+37 }
 0x5f0   :  { %v3088_v63 = vsub.f32 1.0, %v3087_v9  ;;  %v8383_v10 = vmul.f32 %v8135_v6, %v3083_v48  ;;  %v8386_v25 = vmul.f32 %v8138_v19, %v3083_v48  ;;  %v3620_v6 = vsel %vm3604_vm6, %v8369_v45, -inf  ;;  %v3472_v52 = vpop.f32.mrf.mxu1 }
 0x5f1   :  { %v3632_v19 = vsel %vm3604_vm6, %v8377_v26, -inf  ;;  %v8415_v9 = vadd.f32 %v8212_v28, %v3456_v4  ;;  %v3461_v47 = vadd.f32 %v8348_v24, %v8225_v5  ;;  %v8420_v37 = vadd.f32 %v8303_v12, %v3466_v32 }
 0x5f2   :  { %v3089_v16 = vmul.f32 %v5232_v43, %v3088_v63  ;;  %3246 = vst [vmem:[#allocation2 + $0x180] sm:$0xff] %v8383_v10  ;;  %v3113_v28 = vand.u32 2147483648, %v8356_v21  ;;  %v3111_v63 = vand.u32 2147483647, %v8356_v21  ;;  %vm3107_vm13 = vweird.f32 %v8356_v21 }
 0x5f3   :  { %3247 = vst [vmem:[#allocation2 + $0x188] sm:$0xff] %v8386_v25  ;;  %v8425_v7 = vadd.f32 %v8244_v51, %v3461_v47  ;;  %v3629_v12 = vsel %vm3604_vm6, %v8415_v9, -inf  ;;  %v3641_v48 = vsel %vm3604_vm6, %v8420_v37, -inf }
 0x5f4   :  { %v3090_v54 = vadd.f32 %v5232_v43, %v3089_v16  ;;  %v3114_v44 = vor.u32 1.1754944e-38, %v3113_v28  ;;  %vm3112_vm15 = vcmp.eq.f32.partialorder %v3111_v63, 8.507059e+37 }
 0x5f5   :  { %v5234_v38 = vpop.eup %5233  ;;  %3633 = vmax.xlane.f32.xlu1 %v3632_v19  ;;  %3621 = vmax.xlane.f32.xlu0 %v3620_v6  ;;  %v3635_v40 = vsel %vm3604_vm6, %v8425_v7, -inf  ;;  %v3473_v19 = vadd.f32 %v8348_v24, %v3472_v52 }
 0x5f6   :  { %v3103_v42 = vmul.f32 %v5234_v38, %v8356_v21  ;;  %v8407_v11 = vpop.xlane.xlu2 %2672  ;;  %v3094_v55 = vsel %vm8393_vm10, %v5232_v43, %v3090_v54  ;;  %3627 = vmax.xlane.f32.xlu2 %v3626_v53  ;;  %vm3108_vm12 = vweird.f32 %v5234_v38 }
 0x5f7   :  { %5235 = vrcp.f32 %v8407_v11  ;;  %v3099_v1 = vsel %vm3096_vm11, %v3098_v29, %v3094_v55  ;;  %vm8434_vm14 = vmor %vm3107_vm13, %vm3108_vm12  ;;  %v3561_v15 = vpop.f32.mrf.mxu3  ;;  %v3127_v47 = vand.u32 2147483647, %v8407_v11  ;;  %vm3123_vm1 = vweird.f32 %v8407_v11 }
 0x5f8   :  { %v3104_v13 = vsub.f32 1.0, %v3103_v42  ;;  %v3100_v43 = vmul.f32 %v8155_v8, %v3099_v1  ;;  %v3101_v3 = vmul.f32 %v8158_v60, %v3099_v1  ;;  %v3463_v60 = vadd.f32 %v8348_v24, %v8249_v0 }
 0x5f9   :  { %v8453_v29 = vadd.f32 %v3561_v15, %v3473_v19  ;;  %v3129_v42 = vand.u32 2147483648, %v8407_v11  ;;  %vm3128_vm3 = vcmp.eq.f32.partialorder %v3127_v47, 8.507059e+37 }
 0x5fa   :  { %v3105_v39 = vmul.f32 %v5234_v38, %v3104_v13  ;;  %3248 = vst [vmem:[#allocation2 + $0x190] sm:$0xff] %v3100_v43  ;;  %v3286_v16 = vpack.c.bf16 %v3100_v43, %v8383_v10  ;;  %v3287_v21 = vpack.c.bf16 %v3101_v3, %v8386_v25  ;;  %v8449_v10 = vadd.f32 %v8271_v20, %v3463_v60  ;;  %v3475_v43 = vpop.f32.mrf.mxu1 }
 0x5fb   :  { %3249 = vst [vmem:[#allocation2 + $0x198] sm:$0xff] %v3101_v3  ;;  %v3468_v25 = vadd.f32 %v8348_v24, %v8328_v17  ;;  %v3130_v1 = vor.u32 1.1754944e-38, %v3129_v42  ;;  %v3476_v52 = vadd.f32 %v8348_v24, %v3475_v43 }
 0x5fc   :  { %v3106_v5 = vadd.f32 %v5234_v38, %v3105_v39  ;;  %3494 = vmatmul.bf16.gmra.mxu1 %v3286_v16  ;;  %3583 = vmatmul.bf16.gmra.mxu3 %v3287_v21 }
 0x5fd   :  { %v5236_v8 = vpop.eup %5235  ;;  %3642 = vmax.xlane.f32.xlu1 %v3641_v48  ;;  %3630 = vmax.xlane.f32.xlu0 %v3629_v12  ;;  %v8459_v32 = vadd.f32 %v8334_v34, %v3468_v25 }
 0x5fe   :  { %v3119_v54 = vmul.f32 %v5236_v8, %v8407_v11  ;;  %v2676_v0 = vpop.xlane.xlu0 %2675  ;;  %v3110_v6 = vsel %vm8434_vm14, %v5234_v38, %v3106_v5  ;;  %3636 = vmax.xlane.f32.xlu2 %v3635_v40  ;;  %vm3124_vm0 = vweird.f32 %v5236_v8  ;;  %v3471_v11 = vadd.f32 %v8348_v24, %v8380_v35 }
 0x5ff   :  { %5237 = vrcp.f32 %v2676_v0  ;;  %v3115_v4 = vsel %vm3112_vm15, %v3114_v44, %v3110_v6  ;;  %vm3125_vm2 = vmor %vm3123_vm1, %vm3124_vm0  ;;  %v3644_v3 = vsel %vm3604_vm6, %v8459_v32, -inf  ;;  %v3564_v28 = vpop.f32.mrf.mxu3  ;;  %v3145_v15 = vand.u32 2147483648, %v2676_v0 }
 0x600   :  { %v3120_v53 = vsub.f32 1.0, %v3119_v54  ;;  %v3116_v38 = vmul.f32 %v8170_v22, %v3115_v4  ;;  %v3117_v55 = vmul.f32 %v8172_v30, %v3115_v4  ;;  %v3638_v22 = vsel %vm3604_vm6, %v8449_v10, -inf }
 0x601   :  { %v3650_v30 = vsel %vm3604_vm6, %v8453_v29, -inf  ;;  %v8475_v51 = vadd.f32 %v8389_v31, %v3471_v11  ;;  %v8477_v48 = vadd.f32 %v3564_v28, %v3476_v52  ;;  %v3143_v35 = vand.u32 2147483647, %v2676_v0 }
 0x602   :  { %v3121_v20 = vmul.f32 %v5236_v8, %v3120_v53  ;;  %3250 = vst [vmem:[#allocation2 + $0x1a0] sm:$0xff] %v3116_v38  ;;  %vm3139_vm5 = vweird.f32 %v2676_v0  ;;  %v3146_v21 = vor.u32 1.1754944e-38, %v3145_v15  ;;  %v3477_v19 = vpop.f32.mrf.mxu1 }
 0x603   :  { %3251 = vst [vmem:[#allocation2 + $0x1a8] sm:$0xff] %v3117_v55  ;;  %vm3144_vm8 = vcmp.eq.f32.partialorder %v3143_v35, 8.507059e+37 }
 0x604   :  { %v3122_v17 = vadd.f32 %v5236_v8, %v3121_v20 }
 0x605   :  { %v5238_v13 = vpop.eup %5237  ;;  %3651 = vmax.xlane.f32.xlu1 %v3650_v30  ;;  %3639 = vmax.xlane.f32.xlu0 %v3638_v22 }
 0x606   :  { %v3135_v34 = vmul.f32 %v5238_v13, %v2676_v0  ;;  %v3126_v39 = vsel %vm3125_vm2, %v5236_v8, %v3122_v17  ;;  %3645 = vmax.xlane.f32.xlu2 %v3644_v3  ;;  %vm3140_vm4 = vweird.f32 %v5238_v13 }
 0x607   :  { %v3131_v63 = vsel %vm3128_vm3, %v3130_v1, %v3126_v39  ;;  %vm3141_vm7 = vmor %vm3139_vm5, %vm3140_vm4  ;;  %v3566_v25 = vpop.f32.mrf.mxu3 }
 0x608   :  { %v3136_v5 = vsub.f32 1.0, %v3135_v34  ;;  %v3132_v12 = vmul.f32 %v8184_v41, %v3131_v63  ;;  %v3133_v60 = vmul.f32 %v8186_v33, %v3131_v63  ;;  %v3647_v41 = vsel %vm3604_vm6, %v8475_v51, -inf }
 0x609   :  { %v3653_v33 = vsel %vm3604_vm6, %v8477_v48, -inf }
 0x60a   :  { %v3137_v8 = vmul.f32 %v5238_v13, %v3136_v5  ;;  %3252 = vst [vmem:[#allocation2 + $0x1b0] sm:$0xff] %v3132_v12  ;;  %v3288_v44 = vpack.c.bf16 %v3132_v12, %v3116_v38  ;;  %v3289_v54 = vpack.c.bf16 %v3133_v60, %v3117_v55 }
 0x60b   :  { %3253 = vst [vmem:[#allocation2 + $0x1b8] sm:$0xff] %v3133_v60 }
 0x60c   :  { %v3138_v16 = vadd.f32 %v5238_v13, %v3137_v8  ;;  %3499 = vmatmul.bf16.gmra.mxu1 %v3288_v44  ;;  %3588 = vmatmul.bf16.gmra.mxu3 %v3289_v54 }
 0x60d   :  { %3648 = vmax.xlane.f32.xlu0 %v3647_v41 }
 0x60e   :  { %v3142_v31 = vsel %vm3141_vm7, %v5238_v13, %v3138_v16  ;;  %3654 = vmax.xlane.f32.xlu2 %v3653_v33 }
 0x60f   :  { %v3147_v40 = vsel %vm3144_vm8, %v3146_v21, %v3142_v31 }
 0x610   :  { %v8484_v6 = vmul.f32 %v8192_v62, %v3147_v40  ;;  %v8487_v0 = vmul.f32 %v8194_v49, %v3147_v40 }
 0x612   :  { %3254 = vst [vmem:[#allocation2 + $0x1c0] sm:$0xff] %v8484_v6 }
 0x613   :  { %3255 = vst [vmem:[#allocation2 + $0x1c8] sm:$0xff] %v8487_v0 }
 0x648   :  { %v2679_v53 = vpop.xlane.xlu1 %2678 }
 0x649   :  { %5239 = vrcp.f32 %v2679_v53  ;;  %v8491_v4 = vpop.f32.mrf.mxu1  ;;  %v3161_v17 = vand.u32 2147483648, %v2679_v53  ;;  %v3159_v22 = vand.u32 2147483647, %v2679_v53  ;;  %vm3155_vm10 = vweird.f32 %v2679_v53 }
 0x64b   :  { %v3162_v34 = vor.u32 1.1754944e-38, %v3161_v17  ;;  %vm3160_vm12 = vcmp.eq.f32.partialorder %v3159_v22, 8.507059e+37 }
 0x64f   :  { %v5240_v42 = vpop.eup %5239  ;;  %v8493_v38 = vpop.f32.mrf.mxu3 }
 0x650   :  { %v3151_v62 = vmul.f32 %v5240_v42, %v2679_v53  ;;  %v3607_v55 = vpop.xlane.xlu1 %3606  ;;  %v2682_v20 = vpop.xlane.xlu2 %2681  ;;  %vm3156_vm9 = vweird.f32 %v5240_v42 }
 0x651   :  { %v3701_v49 = vsub.f32 %v9296_v2, %v3607_v55  ;;  %5241 = vrcp.f32 %v2682_v20  ;;  %v8496_v1 = vpop.f32.mrf.mxu1  ;;  %vm3157_vm11 = vmor %vm3155_vm10, %vm3156_vm9  ;;  %v3177_v16 = vand.u32 2147483648, %v2682_v20  ;;  %v3175_v33 = vand.u32 2147483647, %v2682_v20 }
 0x652   :  { %v3152_v47 = vsub.f32 1.0, %v3151_v62  ;;  %vm3171_vm14 = vweird.f32 %v2682_v20 }
 0x653   :  { %v3733_v13 = vmul.f32 1.442695, %v3701_v49  ;;  %v3178_v62 = vor.u32 1.1754944e-38, %v3177_v16  ;;  %vm3176_vm0 = vcmp.eq.f32.partialorder %v3175_v33, 8.507059e+37 }
 0x654   :  { %v3153_v43 = vmul.f32 %v5240_v42, %v3152_v47 }
 0x655   :  { %5243 = vpow2.f32 %v3733_v13 }
 0x656   :  { %v3154_v30 = vadd.f32 %v5240_v42, %v3153_v43 }
 0x657   :  { %v5242_v3 = vpop.eup %5241  ;;  %v8498_v39 = vpop.f32.mrf.mxu3 }
 0x658   :  { %v3616_v2 = vpop.xlane.xlu1 %3615  ;;  %v3158_v11 = vsel %vm3157_vm11, %v5240_v42, %v3154_v30  ;;  %v3167_v28 = vmul.f32 %v5242_v3, %v2682_v20  ;;  %v8500_v52 = vpop.xlane.xlu0 %2684  ;;  %vm3172_vm13 = vweird.f32 %v5242_v3 }
 0x659   :  { %v3610_v63 = vpop.xlane.xlu2 %3609  ;;  %v3163_v5 = vsel %vm3160_vm12, %v3162_v34, %v3158_v11  ;;  %5245 = vrcp.f32 %v8500_v52  ;;  %v3704_v8 = vsub.f32 %v8298_v50, %v3616_v2  ;;  %v3478_v50 = vadd.f32 %v8348_v24, %v3477_v19  ;;  %vm3173_vm15 = vmor %vm3171_vm14, %vm3172_vm13 }
 0x65a   :  { %v3702_v12 = vsub.f32 %v8301_v57, %v3610_v63  ;;  %v3168_v15 = vsub.f32 1.0, %v3167_v28  ;;  %v3164_v35 = vmul.f32 %v8242_v61, %v3163_v5  ;;  %v3165_v54 = vmul.f32 %v8247_v23, %v3163_v5  ;;  %v8511_v57 = vpop.f32.mrf.mxu1 }
 0x65b   :  { %v8504_v60 = vpop.eup %5243  ;;  %v3739_v53 = vmul.f32 1.442695, %v3704_v8  ;;  %v8516_v42 = vadd.f32 %v3566_v25, %v3478_v50  ;;  %v3193_v22 = vand.u32 2147483648, %v8500_v52  ;;  %vm3187_vm2 = vweird.f32 %v8500_v52 }
 0x65c   :  { %v3735_v21 = vmul.f32 1.442695, %v3702_v12  ;;  %v3797_v44 = vsel %vm3604_vm6, %v8504_v60, 0.0  ;;  %v3169_v41 = vmul.f32 %v5242_v3, %v3168_v15  ;;  %3256 = vst [vmem:[#allocation2 + $0x1d0] sm:$0xff] %v3164_v35  ;;  %v3290_v31 = vpack.c.bf16 %v3164_v35, %v8484_v6 }
 0x65d   :  { %3798 = vadd.xlane.f32.xlu0 %v3797_v44  ;;  %3257 = vst [vmem:[#allocation2 + $0x1d8] sm:$0xff] %v3165_v54  ;;  %v3291_v61 = vpack.c.bf16 %v3165_v54, %v8487_v0  ;;  %v3194_v28 = vor.u32 1.1754944e-38, %v3193_v22 }
 0x65e   :  { %5247 = vpow2.f32 %v3735_v21  ;;  %v3170_v40 = vadd.f32 %v5242_v3, %v3169_v41  ;;  %3504 = vmatmul.bf16.gmra.mxu1 %v3290_v31 }
 0x65f   :  { %v5246_v23 = vpop.eup %5245  ;;  %3593 = vmatmul.bf16.gmra.mxu3 %v3291_v61  ;;  %5249 = vpow2.f32 %v3739_v53  ;;  %v3574_v17 = vpop.f32.mrf.mxu3 }
 0x660   :  { %v3183_v6 = vmul.f32 %v5246_v23, %v8500_v52  ;;  %v3613_v19 = vpop.xlane.xlu0 %3612  ;;  %v3174_v49 = vsel %vm3173_vm15, %v5242_v3, %v3170_v40  ;;  %v3656_v3 = vsel %vm3604_vm6, %v8516_v42, -inf  ;;  %vm3188_vm1 = vweird.f32 %v5246_v23  ;;  %v3625_v63 = vpop.xlane.xlu1 %3624 }
 0x661   :  { %v3619_v55 = vpop.xlane.xlu2 %3618  ;;  %v3703_v47 = vsub.f32 %v7998_v46, %v3613_v19  ;;  %v3179_v0 = vsel %vm3176_vm0, %v3178_v62, %v3174_v49  ;;  %v3191_v46 = vand.u32 2147483647, %v8500_v52  ;;  %vm3189_vm3 = vmor %vm3187_vm2, %vm3188_vm1  ;;  %v3707_v21 = vsub.f32 %v8332_v27, %v3625_v63 }
 0x662   :  { %v3184_v20 = vsub.f32 1.0, %v3183_v6  ;;  %v3180_v13 = vmul.f32 %v8269_v59, %v3179_v0  ;;  %v3181_v25 = vmul.f32 %v8275_v36, %v3179_v0  ;;  %v3705_v30 = vsub.f32 %v8093_v14, %v3619_v55  ;;  %v3487_v11 = vpop.f32.mrf.mxu1 }
 0x663   :  { %v3737_v34 = vmul.f32 1.442695, %v3703_v47  ;;  %v3481_v36 = vadd.f32 %v8348_v24, %v8491_v4  ;;  %vm3192_vm4 = vcmp.eq.f32.partialorder %v3191_v46, 8.507059e+37  ;;  %v3745_v61 = vmul.f32 1.442695, %v3707_v21 }
 0x664   :  { %v8523_v43 = vpop.eup %5247  ;;  %v3185_v2 = vmul.f32 %v5246_v23, %v3184_v20  ;;  %3258 = vst [vmem:[#allocation2 + $0x1e0] sm:$0xff] %v3180_v13  ;;  %v3741_v5 = vmul.f32 1.442695, %v3705_v30 }
 0x665   :  { %3657 = vmax.xlane.f32.xlu0 %v3656_v3  ;;  %v3800_v59 = vsel %vm3604_vm6, %v8523_v43, 0.0  ;;  %3259 = vst [vmem:[#allocation2 + $0x1e8] sm:$0xff] %v3181_v25  ;;  %5251 = vpow2.f32 %v3737_v34  ;;  %v8535_v12 = vpop.eup %5249  ;;  %v8538_v15 = vadd.f32 %v8493_v38, %v3481_v36 }
 0x666   :  { %3801 = vadd.xlane.f32.xlu1 %v3800_v59  ;;  %v3186_v14 = vadd.f32 %v5246_v23, %v3185_v2  ;;  %5253 = vpow2.f32 %v3741_v5  ;;  %v3806_v54 = vsel %vm3604_vm6, %v8535_v12, 0.0 }
 0x667   :  { %v3576_v4 = vpop.f32.mrf.mxu3  ;;  %v3659_v31 = vsel %vm3604_vm6, %v8538_v15, -inf  ;;  %5255 = vpow2.f32 %v3745_v61 }
 0x668   :  { %v3190_v8 = vsel %vm3189_vm3, %v5246_v23, %v3186_v14  ;;  %v3622_v35 = vpop.xlane.xlu0 %3621  ;;  %v3634_v0 = vpop.xlane.xlu1 %3633 }
 0x669   :  { %v3195_v16 = vsel %vm3192_vm4, %v3194_v28, %v3190_v8  ;;  %v3706_v38 = vsub.f32 %v8369_v45, %v3622_v35  ;;  %v3483_v45 = vadd.f32 %v8348_v24, %v8496_v1  ;;  %v3628_v53 = vpop.xlane.xlu2 %3627  ;;  %v3710_v22 = vsub.f32 %v8377_v26, %v3634_v0 }
 0x66a   :  { %v3196_v44 = vmul.f32 %v8305_v18, %v3195_v16  ;;  %v3197_v52 = vmul.f32 %v8311_v58, %v3195_v16  ;;  %v3490_v33 = vpop.f32.mrf.mxu1  ;;  %v3486_v18 = vadd.f32 %v8348_v24, %v8511_v57  ;;  %v3708_v55 = vsub.f32 %v8374_v56, %v3628_v53 }
 0x66b   :  { %v8545_v41 = vpop.eup %5251  ;;  %v3743_v23 = vmul.f32 1.442695, %v3706_v38  ;;  %v8561_v57 = vadd.f32 %v8498_v39, %v3483_v45  ;;  %v3488_v39 = vadd.f32 %v8348_v24, %v3487_v11  ;;  %v3751_v36 = vmul.f32 1.442695, %v3710_v22 }
 0x66c   :  { %3260 = vst [vmem:[#allocation2 + $0x1f0] sm:$0xff] %v3196_v44  ;;  %v3292_v27 = vpack.c.bf16 %v3196_v44, %v3180_v13  ;;  %v3293_v50 = vpack.c.bf16 %v3197_v52, %v3181_v25  ;;  %v3803_v58 = vsel %vm3604_vm6, %v8545_v41, 0.0  ;;  %v8556_v40 = vadd.f32 %v3574_v17, %v3486_v18  ;;  %v8558_v62 = vpop.eup %5253 }
 0x66d   :  { %3807 = vadd.xlane.f32.xlu0 %v3806_v54  ;;  %3261 = vst [vmem:[#allocation2 + $0x1f8] sm:$0xff] %v3197_v52  ;;  %3804 = vadd.xlane.f32.xlu2 %v3803_v58  ;;  %5257 = vpow2.f32 %v3743_v23  ;;  %v3809_v1 = vsel %vm3604_vm6, %v8558_v62, 0.0  ;;  %v3662_v47 = vsel %vm3604_vm6, %v8561_v57, -inf  ;;  %v3747_v20 = vmul.f32 1.442695, %v3708_v55  ;;  %v8571_v17 = vpop.eup %5255 }
 0x66e   :  { %3660 = vmax.xlane.f32.xlu1 %v3659_v31  ;;  %3509 = vmatmul.bf16.gmra.mxu1 %v3292_v27  ;;  %v3665_v19 = vsel %vm3604_vm6, %v8556_v40, -inf  ;;  %v8573_v56 = vadd.f32 %v3576_v4, %v3488_v39  ;;  %v3815_v34 = vsel %vm3604_vm6, %v8571_v17, 0.0  ;;  %v3491_v26 = vadd.f32 %v8348_v24, %v3490_v33  ;;  %4417 = dma.vmem_to_hbm [thread:$0]  %s4410_s20, 8192, %s4412_s2, [#allocation3], %s5402_s9, %s5402_s9, %s5403_s21  }
 0x66f   :  { %3598 = vmatmul.bf16.gmra.mxu3 %v3293_v50  ;;  %v3579_v6 = vpop.f32.mrf.mxu3  ;;  %5259 = vpow2.f32 %v3747_v20 }
 0x670   :  { %v3631_v13 = vpop.xlane.xlu0 %3630  ;;  %v3668_v46 = vsel %vm3604_vm6, %v8573_v56, -inf  ;;  %v8591_v5 = vadd.f32 %v3579_v6, %v3491_v26  ;;  %5261 = vpow2.f32 %v3751_v36 }
 0x671   :  { %v3709_v3 = vsub.f32 %v8415_v9, %v3631_v13  ;;  %v3637_v28 = vpop.xlane.xlu2 %3636 }
 0x672   :  { %v3492_v49 = vpop.f32.mrf.mxu1  ;;  %v3711_v35 = vsub.f32 %v8425_v7, %v3637_v28  ;;  %v3671_v44 = vsel %vm3604_vm6, %v8591_v5, -inf }
 0x673   :  { %v8575_v25 = vpop.eup %5257  ;;  %v3493_v11 = vadd.f32 %v8348_v24, %v3492_v49  ;;  %v3749_v63 = vmul.f32 1.442695, %v3709_v3 }
 0x674   :  { %v3812_v59 = vsel %vm3604_vm6, %v8575_v25, 0.0  ;;  %v3753_v54 = vmul.f32 1.442695, %v3711_v35 }
 0x675   :  { %3666 = vmax.xlane.f32.xlu0 %v3665_v19  ;;  %3663 = vmax.xlane.f32.xlu2 %v3662_v47  ;;  %v8589_v9 = vpop.eup %5259  ;;  %5263 = vpow2.f32 %v3749_v63 }
 0x676   :  { %3810 = vadd.xlane.f32.xlu1 %v3809_v1  ;;  %v3818_v4 = vsel %vm3604_vm6, %v8589_v9, 0.0  ;;  %v8601_v38 = vpop.eup %5261  ;;  %5265 = vpow2.f32 %v3753_v54 }
 0x677   :  { %v3581_v30 = vpop.f32.mrf.mxu3  ;;  %v3824_v27 = vsel %vm3604_vm6, %v8601_v38, 0.0 }
 0x678   :  { %v8587_v14 = vadd.f32 %v3581_v30, %v3493_v11  ;;  %v8632_v22 = vpop.xlane.xlu0 %3639  ;;  %v3643_v30 = vpop.xlane.xlu1 %3642 }
 0x679   :  { %v3646_v3 = vpop.xlane.xlu2 %3645  ;;  %v3713_v54 = vsub.f32 %v8420_v37, %v3643_v30 }
 0x67a   :  { %v3495_v2 = vpop.f32.mrf.mxu1  ;;  %v3674_v16 = vsel %vm3604_vm6, %v8587_v14, -inf  ;;  %v3714_v30 = vsub.f32 %v8459_v32, %v3646_v3 }
 0x67b   :  { %v3496_v52 = vadd.f32 %v8348_v24, %v3495_v2  ;;  %v8605_v33 = vpop.eup %5263 }
 0x67c   :  { %v3821_v58 = vsel %vm3604_vm6, %v8605_v33, 0.0  ;;  %v8614_v45 = vpop.eup %5265 }
 0x67d   :  { %3816 = vadd.xlane.f32.xlu0 %v3815_v34  ;;  %3813 = vadd.xlane.f32.xlu2 %v3812_v59  ;;  %v3827_v19 = vsel %vm3604_vm6, %v8614_v45, 0.0 }
 0x67e   :  { %3669 = vmax.xlane.f32.xlu1 %v3668_v46 }
 0x67f   :  { %v3584_v8 = vpop.f32.mrf.mxu3 }
 0x680   :  { %v8603_v7 = vadd.f32 %v3584_v8, %v3496_v52  ;;  %v8634_v34 = vpop.xlane.xlu0 %3648  ;;  %v3652_v46 = vpop.xlane.xlu1 %3651 }
 0x681   :  { %v8638_v28 = vpop.xlane.xlu2 %3654 }
 0x682   :  { %v3497_v21 = vpop.f32.mrf.mxu1  ;;  %v3677_v18 = vsel %vm3604_vm6, %v8603_v7, -inf }
 0x683   :  { %v3498_v61 = vadd.f32 %v8348_v24, %v3497_v21 }
 0x685   :  { %3675 = vmax.xlane.f32.xlu0 %v3674_v16  ;;  %3672 = vmax.xlane.f32.xlu2 %v3671_v44 }
 0x686   :  { %3819 = vadd.xlane.f32.xlu1 %v3818_v4 }
 0x687   :  { %v3586_v31 = vpop.f32.mrf.mxu3 }
 0x688   :  { %v8616_v53 = vadd.f32 %v3586_v31, %v3498_v61 }
 0x68a   :  { %v3500_v50 = vpop.f32.mrf.mxu1  ;;  %v3680_v1 = vsel %vm3604_vm6, %v8616_v53, -inf }
 0x68b   :  { %v3501_v23 = vadd.f32 %v8348_v24, %v3500_v50 }
 0x68d   :  { %3825 = vadd.xlane.f32.xlu0 %v3824_v27  ;;  %3822 = vadd.xlane.f32.xlu2 %v3821_v58 }
 0x68e   :  { %3678 = vmax.xlane.f32.xlu1 %v3677_v18 }
 0x68f   :  { %v3589_v6 = vpop.f32.mrf.mxu3 }
 0x690   :  { %v8619_v55 = vadd.f32 %v3589_v6, %v3501_v23 }
 0x692   :  { %v3683_v49 = vsel %vm3604_vm6, %v8619_v55, -inf  ;;  %v3502_v47 = vpop.f32.mrf.mxu1 }
 0x693   :  { %v3503_v39 = vadd.f32 %v8348_v24, %v3502_v47 }
 0x695   :  { %3684 = vmax.xlane.f32.xlu0 %v3683_v49  ;;  %3681 = vmax.xlane.f32.xlu2 %v3680_v1  ;;  %v3757_v49 = vmul.f32 1.442695, %v3713_v54  ;;  %v3716_v1 = vsub.f32 %v8453_v29, %v3652_v46 }
 0x696   :  { %3828 = vadd.xlane.f32.xlu1 %v3827_v19 }
 0x697   :  { %v3591_v0 = vpop.f32.mrf.mxu3 }
 0x698   :  { %v8628_v20 = vadd.f32 %v3591_v0, %v3503_v39 }
 0x69a   :  { %v3686_v13 = vsel %vm3604_vm6, %v8628_v20, -inf }
 0x69e   :  { %3687 = vmax.xlane.f32.xlu1 %v3686_v13 }
 0x6d0   :  { %v3799_v2 = vpop.xlane.xlu0 %3798 }
 0x6d1   :  { %5267 = vrcp.f32 %v3799_v2  ;;  %v3904_v8 = vand.u32 2147483648, %v3799_v2  ;;  %v3902_v16 = vand.u32 2147483647, %v3799_v2  ;;  %vm3898_vm7 = vweird.f32 %v3799_v2 }
 0x6d3   :  { %v3905_v44 = vor.u32 1.1754944e-38, %v3904_v8  ;;  %vm3903_vm9 = vcmp.eq.f32.partialorder %v3902_v16, 8.507059e+37  ;;  %v3712_v16 = vsub.f32 %v8449_v10, %v8632_v22 }
 0x6d7   :  { %v5268_v11 = vpop.eup %5267 }
 0x6d8   :  { %v3894_v59 = vmul.f32 %v5268_v11, %v3799_v2  ;;  %v8636_v36 = vpop.xlane.xlu0 %3657  ;;  %vm3899_vm5 = vweird.f32 %v5268_v11 }
 0x6d9   :  { %v3802_v26 = vpop.xlane.xlu1 %3801  ;;  %vm3900_vm8 = vmor %vm3898_vm7, %vm3899_vm5 }
 0x6da   :  { %v3895_v63 = vsub.f32 1.0, %v3894_v59  ;;  %5269 = vrcp.f32 %v3802_v26  ;;  %v3919_v47 = vand.u32 2147483648, %v3802_v26  ;;  %vm3913_vm11 = vweird.f32 %v3802_v26 }
 0x6db   :  { %v3505_v21 = vpop.f32.mrf.mxu1 }
 0x6dc   :  { %v3896_v35 = vmul.f32 %v5268_v11, %v3895_v63  ;;  %v3506_v19 = vadd.f32 %v8348_v24, %v3505_v21  ;;  %v3920_v46 = vor.u32 1.1754944e-38, %v3919_v47 }
 0x6de   :  { %v3897_v4 = vadd.f32 %v5268_v11, %v3896_v35  ;;  %v3763_v35 = vmul.f32 1.442695, %v3716_v1 }
 0x6e0   :  { %v5270_v52 = vpop.eup %5269  ;;  %v3901_v31 = vsel %vm3900_vm8, %v5268_v11, %v3897_v4  ;;  %v8641_v27 = vpop.xlane.xlu0 %3807 }
 0x6e1   :  { %v3906_v50 = vsel %vm3903_vm9, %v3905_v44, %v3901_v31  ;;  %v3909_v18 = vmul.f32 %v5270_v52, %v3802_v26  ;;  %v8643_v58 = vpop.xlane.xlu1 %3660  ;;  %5271 = vrcp.f32 %v8641_v27  ;;  %v8647_v23 = vpop.xlane.xlu2 %3804  ;;  %vm3914_vm10 = vweird.f32 %v5270_v52 }
 0x6e2   :  { %v3907_v61 = vmul.f32 %v8504_v60, %v3906_v50  ;;  %5273 = vrcp.f32 %v8647_v23  ;;  %v3594_v37 = vpop.f32.mrf.mxu3  ;;  %v3917_v60 = vand.u32 2147483647, %v3802_v26  ;;  %vm3915_vm12 = vmor %vm3913_vm11, %vm3914_vm10  ;;  %v3759_v26 = vmul.f32 1.442695, %v3714_v30 }
 0x6e3   :  { %v3910_v6 = vsub.f32 1.0, %v3909_v18  ;;  %v3507_v39 = vpop.f32.mrf.mxu1  ;;  %v8656_v13 = vadd.f32 %v3594_v37, %v3506_v19  ;;  %5275 = vpow2.f32 %v3757_v49  ;;  %v3949_v50 = vand.u32 2147483648, %v8641_v27 }
 0x6e4   :  { %4373 = vst.msk [vmem:[%s9222_s10] sm:$0xff] %vm3604_vm6, %v3907_v61  ;;  %vm3918_vm13 = vcmp.eq.f32.partialorder %v3917_v60, 8.507059e+37  ;;  %v3508_v18 = vadd.f32 %v8348_v24, %v3507_v39  ;;  %v3947_v61 = vand.u32 2147483647, %v8641_v27  ;;  %vm3943_vm15 = vweird.f32 %v8641_v27 }
 0x6e5   :  { %v3911_v0 = vmul.f32 %v5270_v52, %v3910_v6  ;;  %v3689_v29 = vsel %vm3604_vm6, %v8656_v13, -inf  ;;  %v3932_v49 = vand.u32 2147483647, %v8647_v23  ;;  %v3755_v39 = vmul.f32 1.442695, %v3712_v16 }
 0x6e6   :  { %3690 = vmax.xlane.f32.xlu2 %v3689_v29  ;;  %v3950_v60 = vor.u32 1.1754944e-38, %v3949_v50  ;;  %vm3928_vm2 = vweird.f32 %v8647_v23  ;;  %vm3948_vm3 = vcmp.eq.f32.partialorder %v3947_v61, 8.507059e+37 }
 0x6e7   :  { %v5272_v2 = vpop.eup %5271  ;;  %v3912_v11 = vadd.f32 %v5270_v52, %v3911_v0  ;;  %v3717_v0 = vsub.f32 %v8477_v48, %v8638_v28  ;;  %vm3933_vm5 = vcmp.eq.f32.partialorder %v3932_v49, 8.507059e+37 }
 0x6e8   :  { %v3939_v59 = vmul.f32 %v5272_v2, %v8641_v27  ;;  %v8662_v63 = vpop.xlane.xlu0 %3666  ;;  %v5274_v8 = vpop.eup %5273  ;;  %vm3944_vm14 = vweird.f32 %v5272_v2 }
 0x6e9   :  { %v3916_v32 = vsel %vm3915_vm12, %v5270_v52, %v3912_v11  ;;  %v8666_v3 = vpop.xlane.xlu1 %3810  ;;  %v3924_v4 = vmul.f32 %v5274_v8, %v8647_v23  ;;  %v8669_v54 = vpop.xlane.xlu2 %3663  ;;  %vm3929_vm0 = vweird.f32 %v5274_v8  ;;  %vm3945_vm1 = vmor %vm3943_vm15, %vm3944_vm14 }
 0x6ea   :  { %v3921_v21 = vsel %vm3918_vm13, %v3920_v46, %v3916_v32  ;;  %v3940_v44 = vsub.f32 1.0, %v3939_v59  ;;  %5277 = vrcp.f32 %v8666_v3  ;;  %v3596_v10 = vpop.f32.mrf.mxu3  ;;  %v8684_v19 = vpop.eup %5275  ;;  %v3719_v59 = vsub.f32 %v8538_v15, %v8643_v58  ;;  %vm3930_vm4 = vmor %vm3928_vm2, %vm3929_vm0 }
 0x6eb   :  { %v3922_v31 = vmul.f32 %v8523_v43, %v3921_v21  ;;  %v3925_v22 = vsub.f32 1.0, %v3924_v4  ;;  %5279 = vpow2.f32 %v3763_v35  ;;  %v3934_v43 = vand.u32 2147483648, %v8647_v23  ;;  %v3510_v47 = vpop.f32.mrf.mxu1 }
 0x6ec   :  { %v3941_v52 = vmul.f32 %v5272_v2, %v3940_v44  ;;  %v8682_v6 = vadd.f32 %v3596_v10, %v3508_v18  ;;  %v3715_v15 = vsub.f32 %v8475_v51, %v8634_v34  ;;  %v3511_v4 = vadd.f32 %v8348_v24, %v3510_v47 }
 0x6ed   :  { %4374 = vst.msk [vmem:[%s9222_s10 + $0x8] sm:$0xff] %vm3604_vm6, %v3922_v31  ;;  %v3926_v37 = vmul.f32 %v5274_v8, %v3925_v22  ;;  %v3935_v48 = vor.u32 1.1754944e-38, %v3934_v43  ;;  %v3765_v31 = vmul.f32 1.442695, %v3717_v0  ;;  %v3769_v50 = vmul.f32 1.442695, %v3719_v59 }
 0x6ee   :  { %v3942_v1 = vadd.f32 %v5272_v2, %v3941_v52  ;;  %v3692_v27 = vsel %vm3604_vm6, %v8682_v6, -inf  ;;  %v3962_v18 = vand.u32 2147483647, %v8666_v3  ;;  %v3964_v51 = vand.u32 2147483648, %v8666_v3 }
 0x6ef   :  { %v3927_v30 = vadd.f32 %v5274_v8, %v3926_v37  ;;  %3693 = vmax.xlane.f32.xlu0 %v3692_v27  ;;  %v3761_v22 = vmul.f32 1.442695, %v3715_v15  ;;  %vm3958_vm8 = vweird.f32 %v8666_v3 }
 0x6f0   :  { %v3946_v11 = vsel %vm3945_vm1, %v5272_v2, %v3942_v1  ;;  %v8693_v29 = vpop.xlane.xlu0 %3816  ;;  %v5278_v46 = vpop.eup %5277  ;;  %vm3963_vm10 = vcmp.eq.f32.partialorder %v3962_v18, 8.507059e+37  ;;  %v3965_v47 = vor.u32 1.1754944e-38, %v3964_v51 }
 0x6f1   :  { %v3951_v28 = vsel %vm3948_vm3, %v3950_v60, %v3946_v11  ;;  %v8698_v35 = vpop.xlane.xlu1 %3669  ;;  %5281 = vrcp.f32 %v8693_v29  ;;  %v3931_v16 = vsel %vm3930_vm4, %v5274_v8, %v3927_v30  ;;  %v3954_v2 = vmul.f32 %v5278_v46, %v8666_v3  ;;  %v8703_v32 = vpop.xlane.xlu2 %3813 }
 0x6f2   :  { %v3952_v23 = vmul.f32 %v8535_v12, %v3951_v28  ;;  %v8705_v21 = vpop.eup %5279  ;;  %v3936_v58 = vsel %vm3933_vm5, %v3935_v48, %v3931_v16  ;;  %5283 = vrcp.f32 %v8703_v32  ;;  %v3599_v44 = vpop.f32.mrf.mxu3  ;;  %vm3959_vm7 = vweird.f32 %v5278_v46  ;;  %v5374_v28 = vld [vmem:[%s9220_s8] ss:$0 sm:$0xff] }
 0x6f3   :  { %v3937_v8 = vmul.f32 %v8545_v41, %v3936_v58  ;;  %v3955_v12 = vsub.f32 1.0, %v3954_v2  ;;  %v8718_v34 = vadd.f32 %v3599_v44, %v3511_v4  ;;  %5285 = vpow2.f32 %v3759_v26  ;;  %v3512_v37 = vpop.f32.mrf.mxu1  ;;  %vm3960_vm9 = vmor %vm3958_vm8, %vm3959_vm7 }
 0x6f4   :  { %4376 = vst.msk [vmem:[%s9222_s10 + $0x18] sm:$0xff] %vm3604_vm6, %v3952_v23  ;;  %v3833_v41 = vsel %vm3604_vm6, %v8684_v19, 0.0  ;;  %5287 = vpow2.f32 %v3755_v39  ;;  %v3842_v26 = vsel %vm3604_vm6, %v8705_v21, 0.0  ;;  %v3720_v39 = vsub.f32 %v8561_v57, %v8669_v54 }
 0x6f5   :  { %4375 = vst.msk [vmem:[%s9222_s10 + $0x10] sm:$0xff] %vm3604_vm6, %v3937_v8  ;;  %v3956_v24 = vmul.f32 %v5278_v46, %v3955_v12  ;;  %v3695_v52 = vsel %vm3604_vm6, %v8718_v34, -inf  ;;  %5289 = vpow2.f32 %v3765_v31  ;;  %v3992_v30 = vand.u32 2147483647, %v8693_v29 }
 0x6f6   :  { %3696 = vmax.xlane.f32.xlu1 %v3695_v52  ;;  %5291 = vpow2.f32 %v3769_v50  ;;  %v3994_v48 = vand.u32 2147483648, %v8693_v29  ;;  %v3513_v16 = vadd.f32 %v5374_v28, %v3512_v37  ;;  %v3722_v58 = vsub.f32 %v8573_v56, %v8698_v35 }
 0x6f7   :  { %v8726_v10 = vpop.eup %5281  ;;  %v3957_v61 = vadd.f32 %v5278_v46, %v3956_v24  ;;  %3834 = vadd.xlane.f32.xlu0 %v3833_v41  ;;  %v3979_v4 = vand.u32 2147483648, %v8703_v32  ;;  %vm3988_vm12 = vweird.f32 %v8693_v29  ;;  %v3977_v8 = vand.u32 2147483647, %v8703_v32 }
 0x6f8   :  { %v3984_v43 = vmul.f32 %v8726_v10, %v8693_v29  ;;  %v8735_v49 = vpop.xlane.xlu0 %3675  ;;  %v8737_v1 = vpop.eup %5283  ;;  %vm3989_vm11 = vweird.f32 %v8726_v10  ;;  %v3771_v29 = vmul.f32 1.442695, %v3720_v39  ;;  %v3995_v50 = vor.u32 1.1754944e-38, %v3994_v48 }
 0x6f9   :  { %v8742_v0 = vpop.xlane.xlu1 %3819  ;;  %v3961_v3 = vsel %vm3960_vm9, %v5278_v46, %v3957_v61  ;;  %v3969_v60 = vmul.f32 %v8737_v1, %v8703_v32  ;;  %v8747_v11 = vpop.xlane.xlu2 %3672  ;;  %vm3974_vm13 = vweird.f32 %v8737_v1  ;;  %vm8779_vm14 = vmor %vm3988_vm12, %vm3989_vm11  ;;  %vm3973_vm15 = vweird.f32 %v8703_v32 }
 0x6fa   :  { %v3985_v27 = vsub.f32 1.0, %v3984_v43  ;;  %v3966_v59 = vsel %vm3963_vm10, %v3965_v47, %v3961_v3  ;;  %5293 = vrcp.f32 %v8742_v0  ;;  %v3601_v57 = vpop.f32.mrf.mxu3  ;;  %v8754_v54 = vpop.eup %5285  ;;  %vm3993_vm0 = vcmp.eq.f32.partialorder %v3992_v30, 8.507059e+37  ;;  %vm3975_vm1 = vmor %vm3973_vm15, %vm3974_vm13 }
 0x6fb   :  { %v3967_v46 = vmul.f32 %v8558_v62, %v3966_v59  ;;  %v3970_v23 = vsub.f32 1.0, %v3969_v60  ;;  %v8759_v15 = vpop.eup %5287  ;;  %v8765_v44 = vadd.f32 %v3601_v57, %v3513_v16  ;;  %v3836_v18 = vsel %vm3604_vm6, %v8754_v54, 0.0 }
 0x6fc   :  { %v3986_v2 = vmul.f32 %v8726_v10, %v3985_v27  ;;  %v8767_v31 = vpop.eup %5289  ;;  %5295 = vpow2.f32 %v3761_v22  ;;  %v3775_v61 = vmul.f32 1.442695, %v3722_v58  ;;  %v3980_v43 = vor.u32 1.1754944e-38, %v3979_v4 }
 0x6fd   :  { %4377 = vst.msk [vmem:[%s9222_s10 + $0x20] sm:$0xff] %vm3604_vm6, %v3967_v46  ;;  %v3971_v62 = vmul.f32 %v8737_v1, %v3970_v23  ;;  %v8777_v35 = vpop.eup %5291  ;;  %v3698_v51 = vsel %vm3604_vm6, %v8765_v44, -inf  ;;  %vm3978_vm2 = vcmp.eq.f32.partialorder %v3977_v8, 8.507059e+37  ;;  %v3718_v22 = vsub.f32 %v8516_v42, %v8636_v36 }
 0x6fe   :  { %v3987_v56 = vadd.f32 %v8726_v10, %v3986_v2  ;;  %3837 = vadd.xlane.f32.xlu1 %v3836_v18  ;;  %3699 = vmax.xlane.f32.xlu2 %v3698_v51  ;;  %v4009_v30 = vand.u32 2147483648, %v8742_v0  ;;  %vm4003_vm4 = vweird.f32 %v8742_v0  ;;  %v3830_v57 = vsel %vm3604_vm6, %v8759_v15, 0.0 }
 0x6ff   :  { %v3972_v24 = vadd.f32 %v8737_v1, %v3971_v62  ;;  %3843 = vadd.xlane.f32.xlu0 %v3842_v26  ;;  %v3767_v48 = vmul.f32 1.442695, %v3718_v22 }
 0x700   :  { %v3991_v41 = vsel %vm8779_vm14, %v8726_v10, %v3987_v56  ;;  %v5294_v52 = vpop.eup %5293  ;;  %v8799_v26 = vpop.xlane.xlu0 %3825  ;;  %v4010_v23 = vor.u32 1.1754944e-38, %v4009_v30 }
 0x701   :  { %v3996_v37 = vsel %vm3993_vm0, %v3995_v50, %v3991_v41  ;;  %v3679_v47 = vpop.xlane.xlu1 %3678  ;;  %v3976_v39 = vsel %vm3975_vm1, %v8737_v1, %v3972_v24  ;;  %v3999_v10 = vmul.f32 %v5294_v52, %v8742_v0  ;;  %v8797_v3 = vpop.xlane.xlu2 %3822  ;;  %v3723_v1 = vsub.f32 %v8591_v5, %v8747_v11 }
 0x702   :  { %v3997_v32 = vmul.f32 %v8571_v17, %v3996_v37  ;;  %v3981_v60 = vsel %vm3978_vm2, %v3980_v43, %v3976_v39  ;;  %5297 = vrcp.f32 %v8797_v3  ;;  %v3725_v59 = vsub.f32 %v8603_v7, %v3679_v47  ;;  %v8819_v36 = vpop.eup %5295 }
 0x703   :  { %5299 = vpow2.f32 %v3771_v29  ;;  %v3982_v27 = vmul.f32 %v8575_v25, %v3981_v60  ;;  %v4000_v17 = vsub.f32 1.0, %v3999_v10  ;;  %vm4004_vm3 = vweird.f32 %v5294_v52 }
 0x704   :  { %4379 = vst.msk [vmem:[%s9222_s10 + $0x30] sm:$0xff] %vm3604_vm6, %v3997_v32  ;;  %5301 = vrcp.f32 %v8799_v26  ;;  %v4007_v25 = vand.u32 2147483647, %v8742_v0  ;;  %v3721_v5 = vsub.f32 %v8556_v40, %v8662_v63  ;;  %v3851_v7 = vsel %vm3604_vm6, %v8777_v35, 0.0  ;;  %vm4005_vm5 = vmor %vm4003_vm4, %vm4004_vm3 }
 0x705   :  { %5303 = vpow2.f32 %v3775_v61  ;;  %4378 = vst.msk [vmem:[%s9222_s10 + $0x28] sm:$0xff] %vm3604_vm6, %v3982_v27  ;;  %v4001_v42 = vmul.f32 %v5294_v52, %v4000_v17  ;;  %v3845_v11 = vsel %vm3604_vm6, %v8767_v31, 0.0  ;;  %v3777_v16 = vmul.f32 1.442695, %v3723_v1 }
 0x706   :  { %3846 = vadd.xlane.f32.xlu1 %v3845_v11  ;;  %v3781_v2 = vmul.f32 1.442695, %v3725_v59  ;;  %3831 = vadd.xlane.f32.xlu2 %v3830_v57  ;;  %vm4008_vm7 = vcmp.eq.f32.partialorder %v4007_v25, 8.507059e+37  ;;  %v3773_v62 = vmul.f32 1.442695, %v3721_v5  ;;  %v3839_v29 = vsel %vm3604_vm6, %v8819_v36, 0.0 }
 0x707   :  { %v4002_v28 = vadd.f32 %v5294_v52, %v4001_v42  ;;  %3852 = vadd.xlane.f32.xlu0 %v3851_v7  ;;  %v4022_v24 = vand.u32 2147483647, %v8797_v3  ;;  %v4024_v41 = vand.u32 2147483648, %v8797_v3  ;;  %v4039_v37 = vand.u32 2147483648, %v8799_v26 }
 0x708   :  { %v5298_v46 = vpop.eup %5297  ;;  %vm4018_vm9 = vweird.f32 %v8797_v3  ;;  %vm4033_vm12 = vweird.f32 %v8799_v26 }
 0x709   :  { %v8830_v40 = vpop.xlane.xlu1 %3828  ;;  %v8832_v63 = vpop.eup %5299  ;;  %v4006_v58 = vsel %vm4005_vm5, %v5294_v52, %v4002_v28  ;;  %v4014_v4 = vmul.f32 %v5298_v46, %v8797_v3  ;;  %v4037_v52 = vand.u32 2147483647, %v8799_v26  ;;  %vm4019_vm8 = vweird.f32 %v5298_v46 }
 0x70a   :  { %5305 = vrcp.f32 %v8830_v40  ;;  %v5302_v0 = vpop.eup %5301  ;;  %v4011_v8 = vsel %vm4008_vm7, %v4010_v23, %v4006_v58  ;;  %v3682_v56 = vpop.xlane.xlu2 %3681  ;;  %v3854_v39 = vsel %vm3604_vm6, %v8832_v63, 0.0  ;;  %vm4020_vm11 = vmor %vm4018_vm9, %vm4019_vm8  ;;  %vm4023_vm14 = vcmp.eq.f32.partialorder %v4022_v24, 8.507059e+37 }
 0x70b   :  { %5307 = vpow2.f32 %v3767_v48  ;;  %v8838_v12 = vpop.eup %5303  ;;  %v4012_v50 = vmul.f32 %v8589_v9, %v4011_v8  ;;  %v4015_v18 = vsub.f32 1.0, %v4014_v4  ;;  %v4029_v51 = vmul.f32 %v5302_v0, %v8799_v26 }
 0x70c   :  { %5309 = vpow2.f32 %v3777_v16  ;;  %v3726_v9 = vsub.f32 %v8616_v53, %v3682_v56  ;;  %v3860_v47 = vsel %vm3604_vm6, %v8838_v12, 0.0  ;;  %vm4034_vm10 = vweird.f32 %v5302_v0 }
 0x70d   :  { %5311 = vpow2.f32 %v3781_v2  ;;  %4380 = vst.msk [vmem:[%s9222_s10 + $0x38] sm:$0xff] %vm3604_vm6, %v4012_v50  ;;  %v4016_v61 = vmul.f32 %v5298_v46, %v4015_v18  ;;  %v4030_v43 = vsub.f32 1.0, %v4029_v51  ;;  %v4025_v53 = vor.u32 1.1754944e-38, %v4024_v41  ;;  %vm4035_vm15 = vmor %vm4033_vm12, %vm4034_vm10  ;;  %v3685_v50 = vpop.xlane.xlu0 %3684 }
 0x70e   :  { %5313 = vpow2.f32 %v3773_v62  ;;  %3855 = vadd.xlane.f32.xlu1 %v3854_v39  ;;  %vm8860_vm13 = vcmp.eq.f32.partialorder %v4037_v52, 8.507059e+37  ;;  %3840 = vadd.xlane.f32.xlu2 %v3839_v29  ;;  %v3783_v59 = vmul.f32 1.442695, %v3726_v9  ;;  %v4040_v26 = vor.u32 1.1754944e-38, %v4039_v37 }
 0x70f   :  { %v4017_v10 = vadd.f32 %v5298_v46, %v4016_v61  ;;  %v4031_v22 = vmul.f32 %v5302_v0, %v4030_v43  ;;  %3861 = vadd.xlane.f32.xlu0 %v3860_v47  ;;  %v4052_v16 = vand.u32 2147483647, %v8830_v40  ;;  %v4054_v57 = vand.u32 2147483648, %v8830_v40 }
 0x710   :  { %v5306_v32 = vpop.eup %5305  ;;  %v3724_v4 = vsub.f32 %v8587_v14, %v8735_v49  ;;  %5315 = vpow2.f32 %v3783_v59  ;;  %vm4048_vm1 = vweird.f32 %v8830_v40  ;;  %v3727_v24 = vsub.f32 %v8619_v55, %v3685_v50 }
 0x711   :  { %v8856_v60 = vpop.eup %5307  ;;  %v4044_v17 = vmul.f32 %v5306_v32, %v8830_v40  ;;  %v4021_v3 = vsel %vm4020_vm11, %v5298_v46, %v4017_v10  ;;  %v4032_v30 = vadd.f32 %v5302_v0, %v4031_v22  ;;  %v3688_v42 = vpop.xlane.xlu1 %3687  ;;  %vm4049_vm0 = vweird.f32 %v5306_v32 }
 0x712   :  { %v8865_v1 = vpop.eup %5309  ;;  %v4026_v48 = vsel %vm4023_vm14, %v4025_v53, %v4021_v3  ;;  %v3728_v7 = vsub.f32 %v8628_v20, %v3688_v42  ;;  %vm4050_vm2 = vmor %vm4048_vm1, %vm4049_vm0  ;;  %v4055_v14 = vor.u32 1.1754944e-38, %v4054_v57  ;;  %vm4053_vm3 = vcmp.eq.f32.partialorder %v4052_v16, 8.507059e+37 }
 0x713   :  { %v8867_v25 = vpop.eup %5311  ;;  %v4045_v5 = vsub.f32 1.0, %v4044_v17  ;;  %v4027_v11 = vmul.f32 %v8605_v33, %v4026_v48  ;;  %v4036_v28 = vsel %vm4035_vm15, %v5302_v0, %v4032_v30  ;;  %v3863_v20 = vsel %vm3604_vm6, %v8865_v1, 0.0 }
 0x714   :  { %v8874_v46 = vpop.eup %5313  ;;  %v4041_v23 = vsel %vm8860_vm13, %v4040_v26, %v4036_v28  ;;  %v3787_v58 = vmul.f32 1.442695, %v3728_v7  ;;  %v3869_v62 = vsel %vm3604_vm6, %v8867_v25, 0.0  ;;  %v3779_v8 = vmul.f32 1.442695, %v3724_v4 }
 0x715   :  { %v4046_v2 = vmul.f32 %v5306_v32, %v4045_v5  ;;  %4381 = vst.msk [vmem:[%s9222_s10 + $0x40] sm:$0xff] %vm3604_vm6, %v4027_v11  ;;  %v4042_v33 = vmul.f32 %v8601_v38, %v4041_v23  ;;  %v3848_v38 = vsel %vm3604_vm6, %v8856_v60, 0.0  ;;  %v3785_v52 = vmul.f32 1.442695, %v3727_v24 }
 0x716   :  { %5317 = vpow2.f32 %v3787_v58  ;;  %3864 = vadd.xlane.f32.xlu1 %v3863_v20  ;;  %3849 = vadd.xlane.f32.xlu2 %v3848_v38  ;;  %v8897_v29 = vpop.eup %5315 }
 0x717   :  { %v4047_v0 = vadd.f32 %v5306_v32, %v4046_v2  ;;  %4382 = vst.msk [vmem:[%s9222_s10 + $0x48] sm:$0xff] %vm3604_vm6, %v4042_v33  ;;  %3870 = vadd.xlane.f32.xlu0 %v3869_v62  ;;  %5319 = vpow2.f32 %v3779_v8  ;;  %v3872_v41 = vsel %vm3604_vm6, %v8897_v29, 0.0 }
 0x718   :  { %5321 = vpow2.f32 %v3785_v52 }
 0x719   :  { %v4051_v49 = vsel %vm4050_vm2, %v5306_v32, %v4047_v0 }
 0x71a   :  { %v4056_v40 = vsel %vm4053_vm3, %v4055_v14, %v4051_v49 }
 0x71b   :  { %v4057_v56 = vmul.f32 %v8614_v45, %v4056_v40  ;;  %v3857_v45 = vsel %vm3604_vm6, %v8874_v46, 0.0 }
 0x71c   :  { %v8899_v18 = vpop.eup %5317 }
 0x71d   :  { %4383 = vst.msk [vmem:[%s9222_s10 + $0x50] sm:$0xff] %vm3604_vm6, %v4057_v56  ;;  %v3878_v51 = vsel %vm3604_vm6, %v8899_v18, 0.0  ;;  %v8912_v61 = vpop.eup %5319 }
 0x71e   :  { %3873 = vadd.xlane.f32.xlu1 %v3872_v41  ;;  %3858 = vadd.xlane.f32.xlu2 %v3857_v45  ;;  %v3866_v43 = vsel %vm3604_vm6, %v8912_v61, 0.0  ;;  %v8916_v9 = vpop.eup %5321 }
 0x71f   :  { %3879 = vadd.xlane.f32.xlu0 %v3878_v51  ;;  %v3875_v55 = vsel %vm3604_vm6, %v8916_v9, 0.0 }
 0x726   :  { %3867 = vadd.xlane.f32.xlu2 %v3866_v43 }
 0x72e   :  { %3876 = vadd.xlane.f32.xlu2 %v3875_v55 }
 0x759   :  { %v3691_v37 = vpop.xlane.xlu2 %3690 }
 0x75a   :  { %v3729_v47 = vsub.f32 %v8656_v13, %v3691_v37 }
 0x75c   :  { %v3789_v39 = vmul.f32 1.442695, %v3729_v47 }
 0x75e   :  { %5323 = vpow2.f32 %v3789_v39 }
 0x762   :  { %v3694_v32 = vpop.xlane.xlu0 %3693 }
 0x763   :  { %v3730_v10 = vsub.f32 %v8682_v6, %v3694_v32 }
 0x764   :  { %v8922_v22 = vpop.eup %5323 }
 0x765   :  { %v3791_v53 = vmul.f32 1.442695, %v3730_v10  ;;  %v3881_v27 = vsel %vm3604_vm6, %v8922_v22, 0.0 }
 0x766   :  { %3882 = vadd.xlane.f32.xlu1 %v3881_v27 }
 0x767   :  { %5325 = vpow2.f32 %v3791_v53 }
 0x769   :  { %v3697_v17 = vpop.xlane.xlu1 %3696 }
 0x76a   :  { %v3835_v3 = vpop.xlane.xlu0 %3834  ;;  %v3731_v30 = vsub.f32 %v8718_v34, %v3697_v17 }
 0x76b   :  { %5327 = vrcp.f32 %v3835_v3  ;;  %v4082_v16 = vand.u32 2147483647, %v3835_v3  ;;  %v4084_v57 = vand.u32 2147483648, %v3835_v3  ;;  %vm4078_vm5 = vweird.f32 %v3835_v3 }
 0x76c   :  { %v3793_v13 = vmul.f32 1.442695, %v3731_v30 }
 0x76d   :  { %v8927_v59 = vpop.eup %5325  ;;  %v4085_v20 = vor.u32 1.1754944e-38, %v4084_v57  ;;  %vm4083_vm8 = vcmp.eq.f32.partialorder %v4082_v16, 8.507059e+37 }
 0x76e   :  { %v3884_v42 = vsel %vm3604_vm6, %v8927_v59, 0.0  ;;  %5329 = vpow2.f32 %v3793_v13 }
 0x76f   :  { %3885 = vadd.xlane.f32.xlu2 %v3884_v42 }
 0x771   :  { %v5328_v6 = vpop.eup %5327  ;;  %v3838_v26 = vpop.xlane.xlu1 %3837 }
 0x772   :  { %v4074_v48 = vmul.f32 %v5328_v6, %v3835_v3  ;;  %v3844_v5 = vpop.xlane.xlu0 %3843  ;;  %5331 = vrcp.f32 %v3838_v26  ;;  %v3700_v7 = vpop.xlane.xlu2 %3699  ;;  %vm4079_vm4 = vweird.f32 %v5328_v6  ;;  %v4097_v49 = vand.u32 2147483647, %v3838_v26 }
 0x773   :  { %v3732_v28 = vsub.f32 %v8765_v44, %v3700_v7  ;;  %5333 = vrcp.f32 %v3844_v5  ;;  %vm4080_vm7 = vmor %vm4078_vm5, %vm4079_vm4  ;;  %v4099_v51 = vand.u32 2147483648, %v3838_v26  ;;  %v4127_v24 = vand.u32 2147483647, %v3844_v5 }
 0x774   :  { %v4075_v11 = vsub.f32 1.0, %v4074_v48  ;;  %v8932_v34 = vpop.eup %5329  ;;  %v4129_v52 = vand.u32 2147483648, %v3844_v5  ;;  %vm4093_vm9 = vweird.f32 %v3838_v26  ;;  %vm4123_vm11 = vweird.f32 %v3844_v5 }
 0x775   :  { %v3795_v2 = vmul.f32 1.442695, %v3732_v28  ;;  %v3887_v58 = vsel %vm3604_vm6, %v8932_v34, 0.0  ;;  %vm8953_vm13 = vcmp.eq.f32.partialorder %v4097_v49, 8.507059e+37  ;;  %v4100_v32 = vor.u32 1.1754944e-38, %v4099_v51 }
 0x776   :  { %v4076_v23 = vmul.f32 %v5328_v6, %v4075_v11  ;;  %3888 = vadd.xlane.f32.xlu0 %v3887_v58  ;;  %vm8957_vm14 = vcmp.eq.f32.partialorder %v4127_v24, 8.507059e+37  ;;  %v4130_v17 = vor.u32 1.1754944e-38, %v4129_v52 }
 0x777   :  { %5335 = vpow2.f32 %v3795_v2 }
 0x778   :  { %v4077_v4 = vadd.f32 %v5328_v6, %v4076_v23  ;;  %v5332_v33 = vpop.eup %5331 }
 0x779   :  { %v5334_v0 = vpop.eup %5333  ;;  %v4089_v62 = vmul.f32 %v5332_v33, %v3838_v26  ;;  %v8936_v14 = vpop.xlane.xlu1 %3846  ;;  %vm4094_vm10 = vweird.f32 %v5332_v33 }
 0x77a   :  { %v4081_v44 = vsel %vm4080_vm7, %v5328_v6, %v4077_v4  ;;  %v4119_v40 = vmul.f32 %v5334_v0, %v3844_v5  ;;  %5337 = vrcp.f32 %v8936_v14  ;;  %v8939_v8 = vpop.xlane.xlu2 %3831  ;;  %v8942_v41 = vpop.xlane.xlu0 %3852  ;;  %vm4124_vm12 = vweird.f32 %v5334_v0  ;;  %vm4095_vm15 = vmor %vm4093_vm9, %vm4094_vm10 }
 0x77b   :  { %v4086_v38 = vsel %vm4083_vm8, %v4085_v20, %v4081_v44  ;;  %v4090_v50 = vsub.f32 1.0, %v4089_v62  ;;  %5339 = vrcp.f32 %v8939_v8  ;;  %v4142_v37 = vand.u32 2147483647, %v8936_v14  ;;  %vm4125_vm0 = vmor %vm4123_vm11, %vm4124_vm12 }
 0x77c   :  { %v4087_v56 = vmul.f32 %v8684_v19, %v4086_v38  ;;  %v4120_v45 = vsub.f32 1.0, %v4119_v40  ;;  %5341 = vrcp.f32 %v8942_v41  ;;  %v4144_v3 = vand.u32 2147483648, %v8936_v14 }
 0x77d   :  { %v8945_v43 = vpop.eup %5335  ;;  %v4091_v55 = vmul.f32 %v5332_v33, %v4090_v50  ;;  %vm4138_vm1 = vweird.f32 %v8936_v14  ;;  %vm4063_vm2 = vweird.f32 %v8939_v8  ;;  %vm8972_vm3 = vcmp.eq.f32.partialorder %v4142_v37, 8.507059e+37 }
 0x77e   :  { %4385 = vst.msk [vmem:[%s9222_s10 + $0x60] sm:$0xff] %vm3604_vm6, %v4087_v56  ;;  %v4121_v19 = vmul.f32 %v5334_v0, %v4120_v45  ;;  %v3890_v30 = vsel %vm3604_vm6, %v8945_v43, 0.0  ;;  %v4145_v4 = vor.u32 1.1754944e-38, %v4144_v3  ;;  %v4069_v20 = vand.u32 2147483648, %v8939_v8 }
 0x77f   :  { %v4092_v47 = vadd.f32 %v5332_v33, %v4091_v55  ;;  %3891 = vadd.xlane.f32.xlu1 %v3890_v30  ;;  %vm4168_vm5 = vweird.f32 %v8942_v41  ;;  %v4174_v38 = vand.u32 2147483648, %v8942_v41 }
 0x780   :  { %v5338_v53 = vpop.eup %5337  ;;  %v4122_v27 = vadd.f32 %v5334_v0, %v4121_v19  ;;  %v4070_v24 = vor.u32 1.1754944e-38, %v4069_v20 }
 0x781   :  { %v4096_v13 = vsel %vm4095_vm15, %v5332_v33, %v4092_v47  ;;  %v4134_v42 = vmul.f32 %v5338_v53, %v8936_v14  ;;  %v8968_v6 = vpop.xlane.xlu1 %3855  ;;  %v5340_v48 = vpop.eup %5339  ;;  %v4067_v33 = vand.u32 2147483647, %v8939_v8  ;;  %vm4139_vm4 = vweird.f32 %v5338_v53 }
 0x782   :  { %v4101_v26 = vsel %vm8953_vm13, %v4100_v32, %v4096_v13  ;;  %v4126_v7 = vsel %vm4125_vm0, %v5334_v0, %v4122_v27  ;;  %5343 = vrcp.f32 %v8968_v6  ;;  %v8977_v5 = vpop.xlane.xlu2 %3840  ;;  %v4059_v23 = vmul.f32 %v5340_v48, %v8939_v8  ;;  %v8983_v2 = vpop.eup %5341  ;;  %vm4140_vm8 = vmor %vm4138_vm1, %vm4139_vm4 }
 0x783   :  { %v4102_v28 = vmul.f32 %v8754_v54, %v4101_v26  ;;  %v4131_v16 = vsel %vm8957_vm14, %v4130_v17, %v4126_v7  ;;  %v4135_v57 = vsub.f32 1.0, %v4134_v42  ;;  %v4164_v44 = vmul.f32 %v8983_v2, %v8942_v41  ;;  %v8994_v62 = vpop.xlane.xlu0 %3861 }
 0x784   :  { %v4132_v58 = vmul.f32 %v8705_v21, %v4131_v16  ;;  %v4060_v0 = vsub.f32 1.0, %v4059_v23  ;;  %v4172_v21 = vand.u32 2147483647, %v8942_v41  ;;  %5345 = vrcp.f32 %v8977_v5 }
 0x785   :  { %4386 = vst.msk [vmem:[%s9222_s10 + $0x68] sm:$0xff] %vm3604_vm6, %v4102_v28  ;;  %v4136_v54 = vmul.f32 %v5338_v53, %v4135_v57  ;;  %vm4064_vm7 = vweird.f32 %v5340_v48  ;;  %v4165_v56 = vsub.f32 1.0, %v4164_v44  ;;  %vm9008_vm9 = vcmp.eq.f32.partialorder %v4067_v33, 8.507059e+37 }
 0x786   :  { %4388 = vst.msk [vmem:[%s9222_s10 + $0x78] sm:$0xff] %vm3604_vm6, %v4132_v58  ;;  %v4061_v40 = vmul.f32 %v5340_v48, %v4060_v0  ;;  %vm4169_vm10 = vweird.f32 %v8983_v2  ;;  %5347 = vrcp.f32 %v8994_v62  ;;  %vm4065_vm11 = vmor %vm4063_vm2, %vm4064_vm7  ;;  %vm9027_vm12 = vcmp.eq.f32.partialorder %v4172_v21, 8.507059e+37 }
 0x787   :  { %v4137_v49 = vadd.f32 %v5338_v53, %v4136_v54  ;;  %v4166_v55 = vmul.f32 %v8983_v2, %v4165_v56  ;;  %v4175_v39 = vor.u32 1.1754944e-38, %v4174_v38  ;;  %v4187_v32 = vand.u32 2147483647, %v8968_v6  ;;  %vm4170_vm13 = vmor %vm4168_vm5, %vm4169_vm10 }
 0x788   :  { %v9004_v50 = vpop.eup %5343  ;;  %v4062_v52 = vadd.f32 %v5340_v48, %v4061_v40  ;;  %v4189_v13 = vand.u32 2147483648, %v8968_v6  ;;  %vm4183_vm15 = vweird.f32 %v8968_v6  ;;  %v4112_v28 = vand.u32 2147483647, %v8977_v5 }
 0x789   :  { %v4141_v45 = vsel %vm4140_vm8, %v5338_v53, %v4137_v49  ;;  %v4179_v14 = vmul.f32 %v9004_v50, %v8968_v6  ;;  %v9020_v19 = vpop.xlane.xlu1 %3864  ;;  %v4167_v17 = vadd.f32 %v8983_v2, %v4166_v55  ;;  %vm4184_vm14 = vweird.f32 %v9004_v50 }
 0x78a   :  { %v4146_v37 = vsel %vm8972_vm3, %v4145_v4, %v4141_v45  ;;  %v9032_v10 = vpop.xlane.xlu2 %3849  ;;  %v4066_v27 = vsel %vm4065_vm11, %v5340_v48, %v4062_v52  ;;  %v5346_v30 = vpop.eup %5345  ;;  %5349 = vrcp.f32 %v9020_v19  ;;  %vm9056_vm0 = vcmp.eq.f32.partialorder %v4187_v32, 8.507059e+37  ;;  %vm4185_vm1 = vmor %vm4183_vm15, %vm4184_vm14 }
 0x78b   :  { %v4147_v53 = vmul.f32 %v8767_v31, %v4146_v37  ;;  %v4180_v3 = vsub.f32 1.0, %v4179_v14  ;;  %v4071_v8 = vsel %vm9008_vm9, %v4070_v24, %v4066_v27  ;;  %v4171_v42 = vsel %vm4170_vm13, %v8983_v2, %v4167_v17  ;;  %v9078_v20 = vpop.xlane.xlu0 %3870 }
 0x78c   :  { %v4072_v31 = vmul.f32 %v8759_v15, %v4071_v8  ;;  %v4104_v48 = vmul.f32 %v5346_v30, %v8977_v5  ;;  %v5348_v26 = vpop.eup %5347  ;;  %v4176_v7 = vsel %vm9027_vm12, %v4175_v39, %v4171_v42  ;;  %v4190_v6 = vor.u32 1.1754944e-38, %v4189_v13 }
 0x78d   :  { %4389 = vst.msk [vmem:[%s9222_s10 + $0x80] sm:$0xff] %vm3604_vm6, %v4147_v53  ;;  %v4181_v41 = vmul.f32 %v9004_v50, %v4180_v3  ;;  %v4177_v15 = vmul.f32 %v8777_v35, %v4176_v7  ;;  %v4209_v23 = vmul.f32 %v5348_v26, %v8994_v62  ;;  %vm4109_vm2 = vweird.f32 %v5346_v30 }
 0x78e   :  { %4384 = vst.msk [vmem:[%s9222_s10 + $0x58] sm:$0xff] %vm3604_vm6, %v4072_v31  ;;  %v4105_v57 = vsub.f32 1.0, %v4104_v48  ;;  %v4114_v2 = vand.u32 2147483648, %v8977_v5  ;;  %v4217_v58 = vand.u32 2147483647, %v8994_v62  ;;  %5351 = vrcp.f32 %v9032_v10 }
 0x78f   :  { %v4182_v16 = vadd.f32 %v9004_v50, %v4181_v41  ;;  %4391 = vst.msk [vmem:[%s9222_s10 + $0x90] sm:$0xff] %vm3604_vm6, %v4177_v15  ;;  %v4210_v33 = vsub.f32 1.0, %v4209_v23  ;;  %vm4108_vm3 = vweird.f32 %v8977_v5  ;;  %vm4214_vm4 = vweird.f32 %v5348_v26 }
 0x790   :  { %v4106_v4 = vmul.f32 %v5346_v30, %v4105_v57  ;;  %v5350_v54 = vpop.eup %5349  ;;  %v4219_v44 = vand.u32 2147483648, %v8994_v62  ;;  %vm4110_vm5 = vmor %vm4108_vm3, %vm4109_vm2  ;;  %vm4113_vm7 = vcmp.eq.f32.partialorder %v4112_v28, 8.507059e+37  ;;  %vm4213_vm8 = vweird.f32 %v8994_v62 }
 0x791   :  { %v4186_v35 = vsel %vm4185_vm1, %v9004_v50, %v4182_v16  ;;  %v4211_v40 = vmul.f32 %v5348_v26, %v4210_v33  ;;  %v4224_v56 = vmul.f32 %v5350_v54, %v9020_v19  ;;  %v4115_v50 = vor.u32 1.1754944e-38, %v4114_v2  ;;  %vm4215_vm10 = vmor %vm4213_vm8, %vm4214_vm4  ;;  %v9098_v62 = vpop.xlane.xlu1 %3873 }
 0x792   :  { %v4191_v0 = vsel %vm9056_vm0, %v4190_v6, %v4186_v35  ;;  %v9084_v21 = vpop.xlane.xlu2 %3858  ;;  %v4107_v49 = vadd.f32 %v5346_v30, %v4106_v4  ;;  %5353 = vrcp.f32 %v9078_v20  ;;  %vm4218_vm9 = vcmp.eq.f32.partialorder %v4217_v58, 8.507059e+37 }
 0x793   :  { %v4192_v38 = vmul.f32 %v8832_v63, %v4191_v0  ;;  %v4212_v51 = vadd.f32 %v5348_v26, %v4211_v40  ;;  %v4225_v63 = vsub.f32 1.0, %v4224_v56  ;;  %v4220_v45 = vor.u32 1.1754944e-38, %v4219_v44 }
 0x794   :  { %v4111_v5 = vsel %vm4110_vm5, %v5346_v30, %v4107_v49  ;;  %v4232_v52 = vand.u32 2147483647, %v9020_v19  ;;  %v4234_v55 = vand.u32 2147483648, %v9020_v19  ;;  %v5352_v14 = vpop.eup %5351  ;;  %vm4229_vm11 = vweird.f32 %v5350_v54 }
 0x795   :  { %4392 = vst.msk [vmem:[%s9222_s10 + $0x98] sm:$0xff] %vm3604_vm6, %v4192_v38  ;;  %v4116_v24 = vsel %vm4113_vm7, %v4115_v50, %v4111_v5  ;;  %v4216_v47 = vsel %vm4215_vm10, %v5348_v26, %v4212_v51  ;;  %v4226_v39 = vmul.f32 %v5350_v54, %v4225_v63  ;;  %v4149_v53 = vmul.f32 %v5352_v14, %v9032_v10 }
 0x796   :  { %v4117_v37 = vmul.f32 %v8819_v36, %v4116_v24  ;;  %v4221_v32 = vsel %vm4218_vm9, %v4220_v45, %v4216_v47  ;;  %vm4228_vm12 = vweird.f32 %v9020_v19  ;;  %5355 = vrcp.f32 %v9098_v62  ;;  %v9118_v19 = vpop.xlane.xlu0 %3879 }
 0x797   :  { %v4222_v27 = vmul.f32 %v8838_v12, %v4221_v32  ;;  %v4227_v17 = vadd.f32 %v5350_v54, %v4226_v39  ;;  %vm4230_vm13 = vmor %vm4228_vm12, %vm4229_vm11  ;;  %vm4233_vm14 = vcmp.eq.f32.partialorder %v4232_v52, 8.507059e+37  ;;  %v4235_v36 = vor.u32 1.1754944e-38, %v4234_v55 }
 0x798   :  { %4387 = vst.msk [vmem:[%s9222_s10 + $0x70] sm:$0xff] %vm3604_vm6, %v4117_v37  ;;  %v5354_v3 = vpop.eup %5353  ;;  %v4150_v30 = vsub.f32 1.0, %v4149_v53  ;;  %v4159_v12 = vand.u32 2147483648, %v9032_v10  ;;  %5357 = vrcp.f32 %v9084_v21  ;;  %vm4154_vm15 = vweird.f32 %v5352_v14 }
 0x799   :  { %4394 = vst.msk [vmem:[%s9222_s10 + $0xa8] sm:$0xff] %vm3604_vm6, %v4222_v27  ;;  %v4231_v13 = vsel %vm4230_vm13, %v5350_v54, %v4227_v17  ;;  %v4254_v31 = vmul.f32 %v5354_v3, %v9078_v20  ;;  %v4157_v48 = vand.u32 2147483647, %v9032_v10  ;;  %v4262_v11 = vand.u32 2147483647, %v9078_v20 }
 0x79a   :  { %v9109_v8 = vpop.xlane.xlu2 %3867  ;;  %v4236_v42 = vsel %vm4233_vm14, %v4235_v36, %v4231_v13  ;;  %v4151_v41 = vmul.f32 %v5352_v14, %v4150_v30  ;;  %v4264_v28 = vand.u32 2147483648, %v9078_v20  ;;  %vm4153_vm0 = vweird.f32 %v9032_v10 }
 0x79b   :  { %v4237_v26 = vmul.f32 %v8865_v1, %v4236_v42  ;;  %v4255_v7 = vsub.f32 1.0, %v4254_v31  ;;  %5359 = vrcp.f32 %v9118_v19  ;;  %vm4155_vm1 = vmor %vm4153_vm0, %vm4154_vm15  ;;  %v4160_v57 = vor.u32 1.1754944e-38, %v4159_v12 }
 0x79c   :  { %v4152_v15 = vadd.f32 %v5352_v14, %v4151_v41  ;;  %v5356_v16 = vpop.eup %5355  ;;  %vm4259_vm2 = vweird.f32 %v5354_v3  ;;  %vm4158_vm3 = vcmp.eq.f32.partialorder %v4157_v48, 8.507059e+37  ;;  %vm4258_vm4 = vweird.f32 %v9078_v20 }
 0x79d   :  { %4395 = vst.msk [vmem:[%s9222_s10 + $0xb0] sm:$0xff] %vm3604_vm6, %v4237_v26  ;;  %v4256_v23 = vmul.f32 %v5354_v3, %v4255_v7  ;;  %v4269_v6 = vmul.f32 %v5356_v16, %v9098_v62  ;;  %vm4263_vm5 = vcmp.eq.f32.partialorder %v4262_v11, 8.507059e+37  ;;  %v4265_v35 = vor.u32 1.1754944e-38, %v4264_v28  ;;  %vm4260_vm7 = vmor %vm4258_vm4, %vm4259_vm2 }
 0x79e   :  { %v4156_v1 = vsel %vm4155_vm1, %v5352_v14, %v4152_v15  ;;  %v5358_v2 = vpop.eup %5357  ;;  %vm4273_vm8 = vweird.f32 %v9098_v62  ;;  %v4277_v44 = vand.u32 2147483647, %v9098_v62  ;;  %v4279_v20 = vand.u32 2147483648, %v9098_v62 }
 0x79f   :  { %v4161_v10 = vsel %vm4158_vm3, %v4160_v57, %v4156_v1  ;;  %v4257_v58 = vadd.f32 %v5354_v3, %v4256_v23  ;;  %v4270_v33 = vsub.f32 1.0, %v4269_v6  ;;  %v4194_v54 = vmul.f32 %v5358_v2, %v9084_v21 }
 0x7a0   :  { %v4162_v4 = vmul.f32 %v8856_v60, %v4161_v10  ;;  %5361 = vrcp.f32 %v9109_v8  ;;  %vm4274_vm9 = vweird.f32 %v5356_v16  ;;  %v4202_v5 = vand.u32 2147483647, %v9084_v21 }
 0x7a1   :  { %v4261_v0 = vsel %vm4260_vm7, %v5354_v3, %v4257_v58  ;;  %v5360_v49 = vpop.eup %5359  ;;  %v4271_v40 = vmul.f32 %v5356_v16, %v4270_v33  ;;  %v4195_v56 = vsub.f32 1.0, %v4194_v54  ;;  %v4204_v51 = vand.u32 2147483648, %v9084_v21  ;;  %vm4275_vm11 = vmor %vm4273_vm8, %vm4274_vm9 }
 0x7a2   :  { %v9138_v38 = vpop.xlane.xlu2 %3876  ;;  %4390 = vst.msk [vmem:[%s9222_s10 + $0x88] sm:$0xff] %vm3604_vm6, %v4162_v4  ;;  %v4266_v60 = vsel %vm4263_vm5, %v4265_v35, %v4261_v0  ;;  %v4299_v63 = vmul.f32 %v5360_v49, %v9118_v19  ;;  %vm4199_vm10 = vweird.f32 %v5358_v2  ;;  %vm4278_vm12 = vcmp.eq.f32.partialorder %v4277_v44, 8.507059e+37 }
 0x7a3   :  { %v4267_v50 = vmul.f32 %v8867_v25, %v4266_v60  ;;  %v4272_v24 = vadd.f32 %v5356_v16, %v4271_v40  ;;  %v4196_v45 = vmul.f32 %v5358_v2, %v4195_v56  ;;  %5363 = vrcp.f32 %v9138_v38 }
 0x7a4   :  { %v4280_v25 = vor.u32 1.1754944e-38, %v4279_v20  ;;  %vm4198_vm13 = vweird.f32 %v9084_v21  ;;  %v4300_v52 = vsub.f32 1.0, %v4299_v63  ;;  %v4307_v37 = vand.u32 2147483647, %v9118_v19 }
 0x7a5   :  { %4397 = vst.msk [vmem:[%s9222_s10 + $0xc0] sm:$0xff] %vm3604_vm6, %v4267_v50  ;;  %v4276_v55 = vsel %vm4275_vm11, %v5356_v16, %v4272_v24  ;;  %v4197_v14 = vadd.f32 %v5358_v2, %v4196_v45  ;;  %v4309_v47 = vand.u32 2147483648, %v9118_v19  ;;  %vm4200_vm14 = vmor %vm4198_vm13, %vm4199_vm10  ;;  %v4205_v53 = vor.u32 1.1754944e-38, %v4204_v51 }
 0x7a6   :  { %v5362_v39 = vpop.eup %5361  ;;  %v4281_v32 = vsel %vm4278_vm12, %v4280_v25, %v4276_v55  ;;  %v4301_v27 = vmul.f32 %v5360_v49, %v4300_v52  ;;  %vm4304_vm15 = vweird.f32 %v5360_v49  ;;  %vm4203_vm0 = vcmp.eq.f32.partialorder %v4202_v5, 8.507059e+37 }
 0x7a7   :  { %v4282_v62 = vmul.f32 %v8897_v29, %v4281_v32  ;;  %v4201_v17 = vsel %vm4200_vm14, %v5358_v2, %v4197_v14  ;;  %v4239_v3 = vmul.f32 %v5362_v39, %v9109_v8  ;;  %vm4303_vm1 = vweird.f32 %v9118_v19 }
 0x7a8   :  { %v4206_v21 = vsel %vm4203_vm0, %v4205_v53, %v4201_v17  ;;  %v4302_v36 = vadd.f32 %v5360_v49, %v4301_v27  ;;  %vm4305_vm2 = vmor %vm4303_vm1, %vm4304_vm15  ;;  %v4310_v12 = vor.u32 1.1754944e-38, %v4309_v47  ;;  %vm4308_vm3 = vcmp.eq.f32.partialorder %v4307_v37, 8.507059e+37 }
 0x7a9   :  { %v5364_v30 = vpop.eup %5363  ;;  %4398 = vst.msk [vmem:[%s9222_s10 + $0xc8] sm:$0xff] %vm3604_vm6, %v4282_v62  ;;  %v4207_v13 = vmul.f32 %v8874_v46, %v4206_v21  ;;  %v4240_v31 = vsub.f32 1.0, %v4239_v3  ;;  %v4249_v42 = vand.u32 2147483648, %v9109_v8  ;;  %vm4244_vm4 = vweird.f32 %v5362_v39 }
 0x7aa   :  { %v4306_v29 = vsel %vm4305_vm2, %v5360_v49, %v4302_v36  ;;  %v4284_v41 = vmul.f32 %v5364_v30, %v9138_v38  ;;  %v4247_v26 = vand.u32 2147483647, %v9109_v8  ;;  %vm4243_vm5 = vweird.f32 %v9109_v8 }
 0x7ab   :  { %4393 = vst.msk [vmem:[%s9222_s10 + $0xa0] sm:$0xff] %vm3604_vm6, %v4207_v13  ;;  %v4311_v19 = vsel %vm4308_vm3, %v4310_v12, %v4306_v29  ;;  %v4241_v48 = vmul.f32 %v5362_v39, %v4240_v31  ;;  %v4294_v28 = vand.u32 2147483648, %v9138_v38  ;;  %vm4245_vm7 = vmor %vm4243_vm5, %vm4244_vm4  ;;  %v4250_v15 = vor.u32 1.1754944e-38, %v4249_v42 }
 0x7ac   :  { %v4312_v46 = vmul.f32 %v8899_v18, %v4311_v19  ;;  %v4285_v7 = vsub.f32 1.0, %v4284_v41  ;;  %vm4289_vm8 = vweird.f32 %v5364_v30  ;;  %v4292_v57 = vand.u32 2147483647, %v9138_v38 }
 0x7ad   :  { %v4242_v11 = vadd.f32 %v5362_v39, %v4241_v48  ;;  %vm4248_vm9 = vcmp.eq.f32.partialorder %v4247_v26, 8.507059e+37  ;;  %vm4288_vm10 = vweird.f32 %v9138_v38  ;;  %v4295_v6 = vor.u32 1.1754944e-38, %v4294_v28 }
 0x7ae   :  { %4400 = vst.msk [vmem:[%s9222_s10 + $0xd8] sm:$0xff] %vm3604_vm6, %v4312_v46  ;;  %v4286_v16 = vmul.f32 %v5364_v30, %v4285_v7  ;;  %vm4290_vm11 = vmor %vm4288_vm10, %vm4289_vm8  ;;  %vm4293_vm12 = vcmp.eq.f32.partialorder %v4292_v57, 8.507059e+37 }
 0x7af   :  { %v4246_v23 = vsel %vm4245_vm7, %v5362_v39, %v4242_v11 }
 0x7b0   :  { %v4251_v18 = vsel %vm4248_vm9, %v4250_v15, %v4246_v23  ;;  %v4287_v1 = vadd.f32 %v5364_v30, %v4286_v16 }
 0x7b1   :  { %v4252_v8 = vmul.f32 %v8912_v61, %v4251_v18 }
 0x7b2   :  { %v4291_v2 = vsel %vm4290_vm11, %v5364_v30, %v4287_v1 }
 0x7b3   :  { %4396 = vst.msk [vmem:[%s9222_s10 + $0xb8] sm:$0xff] %vm3604_vm6, %v4252_v8  ;;  %v4296_v10 = vsel %vm4293_vm12, %v4295_v6, %v4291_v2 }
 0x7b4   :  { %v4297_v58 = vmul.f32 %v8916_v9, %v4296_v10 }
 0x7b6   :  { %4399 = vst.msk [vmem:[%s9222_s10 + $0xd0] sm:$0xff] %vm3604_vm6, %v4297_v58 }
 0x7d9   :  { %v3883_v35 = vpop.xlane.xlu1 %3882 }
 0x7da   :  { %5365 = vrcp.f32 %v3883_v35  ;;  %v4324_v0 = vand.u32 2147483648, %v3883_v35  ;;  %v4322_v20 = vand.u32 2147483647, %v3883_v35  ;;  %vm4318_vm14 = vweird.f32 %v3883_v35 }
 0x7dc   :  { %v4325_v9 = vor.u32 1.1754944e-38, %v4324_v0  ;;  %vm4323_vm0 = vcmp.eq.f32.partialorder %v4322_v20, 8.507059e+37 }
 0x7e0   :  { %v5366_v61 = vpop.eup %5365 }
 0x7e1   :  { %v4314_v4 = vmul.f32 %v5366_v61, %v3883_v35  ;;  %vm4319_vm13 = vweird.f32 %v5366_v61 }
 0x7e2   :  { %v3886_v33 = vpop.xlane.xlu2 %3885  ;;  %vm4320_vm15 = vmor %vm4318_vm14, %vm4319_vm13 }
 0x7e3   :  { %5367 = vrcp.f32 %v3886_v33  ;;  %v4315_v54 = vsub.f32 1.0, %v4314_v4  ;;  %v4339_v63 = vand.u32 2147483648, %v3886_v33  ;;  %v4337_v45 = vand.u32 2147483647, %v3886_v33 }
 0x7e4   :  { %vm4333_vm2 = vweird.f32 %v3886_v33 }
 0x7e5   :  { %v4316_v44 = vmul.f32 %v5366_v61, %v4315_v54  ;;  %v4340_v55 = vor.u32 1.1754944e-38, %v4339_v63  ;;  %vm4338_vm4 = vcmp.eq.f32.partialorder %v4337_v45, 8.507059e+37 }
 0x7e7   :  { %v4317_v38 = vadd.f32 %v5366_v61, %v4316_v44 }
 0x7e9   :  { %v5368_v49 = vpop.eup %5367  ;;  %v4321_v60 = vsel %vm4320_vm15, %v5366_v61, %v4317_v38  ;;  %v3889_v56 = vpop.xlane.xlu0 %3888 }
 0x7ea   :  { %v4329_v40 = vmul.f32 %v5368_v49, %v3886_v33  ;;  %v4326_v50 = vsel %vm4323_vm0, %v4325_v9, %v4321_v60  ;;  %5369 = vrcp.f32 %v3889_v56  ;;  %vm4334_vm1 = vweird.f32 %v5368_v49 }
 0x7eb   :  { %v4327_v5 = vmul.f32 %v8922_v22, %v4326_v50  ;;  %vm4335_vm3 = vmor %vm4333_vm2, %vm4334_vm1  ;;  %v4354_v32 = vand.u32 2147483648, %v3889_v56  ;;  %v4352_v62 = vand.u32 2147483647, %v3889_v56  ;;  %vm4348_vm7 = vweird.f32 %v3889_v56 }
 0x7ec   :  { %v4330_v51 = vsub.f32 1.0, %v4329_v40 }
 0x7ed   :  { %4401 = vst.msk [vmem:[%s9222_s10 + $0xe0] sm:$0xff] %vm3604_vm6, %v4327_v5  ;;  %v4355_v3 = vor.u32 1.1754944e-38, %v4354_v32  ;;  %vm4353_vm9 = vcmp.eq.f32.partialorder %v4352_v62, 8.507059e+37 }
 0x7ee   :  { %v4331_v24 = vmul.f32 %v5368_v49, %v4330_v51 }
 0x7f0   :  { %v4332_v25 = vadd.f32 %v5368_v49, %v4331_v24  ;;  %v5370_v52 = vpop.eup %5369 }
 0x7f1   :  { %v4344_v37 = vmul.f32 %v5370_v52, %v3889_v56  ;;  %vm4349_vm5 = vweird.f32 %v5370_v52 }
 0x7f2   :  { %v4336_v14 = vsel %vm4335_vm3, %v5368_v49, %v4332_v25  ;;  %v3892_v53 = vpop.xlane.xlu1 %3891  ;;  %vm4350_vm8 = vmor %vm4348_vm7, %vm4349_vm5 }
 0x7f3   :  { %v4341_v47 = vsel %vm4338_vm4, %v4340_v55, %v4336_v14  ;;  %v4345_v39 = vsub.f32 1.0, %v4344_v37  ;;  %5371 = vrcp.f32 %v3892_v53  ;;  %v4369_v31 = vand.u32 2147483648, %v3892_v53 }
 0x7f4   :  { %v4342_v22 = vmul.f32 %v8927_v59, %v4341_v47  ;;  %v4367_v42 = vand.u32 2147483647, %v3892_v53  ;;  %vm4363_vm11 = vweird.f32 %v3892_v53 }
 0x7f5   :  { %v4346_v27 = vmul.f32 %v5370_v52, %v4345_v39  ;;  %v4370_v19 = vor.u32 1.1754944e-38, %v4369_v31 }
 0x7f6   :  { %4402 = vst.msk [vmem:[%s9222_s10 + $0xe8] sm:$0xff] %vm3604_vm6, %v4342_v22  ;;  %vm4368_vm13 = vcmp.eq.f32.partialorder %v4367_v42, 8.507059e+37 }
 0x7f7   :  { %v4347_v17 = vadd.f32 %v5370_v52, %v4346_v27 }
 0x7f9   :  { %v4351_v21 = vsel %vm4350_vm8, %v5370_v52, %v4347_v17  ;;  %v5372_v59 = vpop.eup %5371 }
 0x7fa   :  { %v4356_v36 = vsel %vm4353_vm9, %v4355_v3, %v4351_v21  ;;  %v4359_v13 = vmul.f32 %v5372_v59, %v3892_v53  ;;  %vm4364_vm10 = vweird.f32 %v5372_v59 }
 0x7fb   :  { %v4357_v30 = vmul.f32 %v8932_v34, %v4356_v36  ;;  %vm4365_vm12 = vmor %vm4363_vm11, %vm4364_vm10 }
 0x7fc   :  { %v4360_v12 = vsub.f32 1.0, %v4359_v13 }
 0x7fd   :  { %4403 = vst.msk [vmem:[%s9222_s10 + $0xf0] sm:$0xff] %vm3604_vm6, %v4357_v30 }
 0x7fe   :  { %v4361_v29 = vmul.f32 %v5372_v59, %v4360_v12 }
 0x800   :  { %v4362_v41 = vadd.f32 %v5372_v59, %v4361_v29 }
 0x802   :  { %v4366_v48 = vsel %vm4365_vm12, %v5372_v59, %v4362_v41 }
 0x803   :  { %v4371_v26 = vsel %vm4368_vm13, %v4370_v19, %v4366_v48 }
 0x804   :  { %v4372_v34 = vmul.f32 %v8945_v43, %v4371_v26 }
 0x806   :  { %4404 = vst.msk [vmem:[%s9222_s10 + $0xf8] sm:$0xff] %vm3604_vm6, %v4372_v34 }
 0x807   :  { %5399 = dma.done.wait [#allocation3], 8192  }
 0x808   :  { %5400 = vsyncadd [#allocation3], 4294959104 }
 0x809   :  { %4426 = vsyncpa [#allocation3], 1 }

</bundles_post_ra>
